<compile_context>
chip_gen: v6e
topology: v6e:2x2x1
jax: 0.10.0
libtpu: 0.0.40
codegen_flags: <defaults>
</compile_context>

<pallas_src>
import functools
import numpy as np
import jax
import jax.numpy as jnp
from jax.experimental import pallas as pl
from jax.experimental.pallas import tpu as pltpu

# ----- config (stand-ins for data_config / transformer_config / decoder_config)
VOCAB_SIZE = 50          # data_config['vocab_size']
D_EMBED = 32             # transformer_config['d_embed']
EXPANSION = 2            # transformer_config['expansion_factor']
N_HEADS = 4              # decoder_config['n_heads']
N_LAYERS = 2             # decoder_config['n_layers']
BATCH = 2
SEQ = 8
LN_EPS = 1e-5            # torch.nn.LayerNorm default eps
V_PAD = 128              # vocab padded to a full lane group (lane-dense store)
DFF = D_EMBED * EXPANSION


# ----------------------------- Pallas kernel ---------------------------------
def decoder_stack_kernel(x_ref, ekv_ref,
                         wqkv_ref, wcross_ref, wff1_ref, wff2_ref, vec_ref,
                         wlin_ref, blin_ref,
                         o_ref,
                         *, n_layers, n_heads, d_head, seq_len):
    d_embed = n_heads * d_head

    x = x_ref[0]                                                    # (S, D)
    ekv = ekv_ref[0]                                                # (S, 2D)
    ek = ekv[:, :d_embed]
    ev = ekv[:, d_embed:]

    # Causal mask: computed ONCE per grid step (hoisted out of the layer loop).
    row = jax.lax.broadcasted_iota(jnp.int32, (seq_len, seq_len), 0)
    col = jax.lax.broadcasted_iota(jnp.int32, (seq_len, seq_len), 1)
    causal = col <= row                                             # tril mask

    def layer_norm(y, g, b):
        mu = jnp.mean(y, axis=-1, keepdims=True)
        var = jnp.mean((y - mu) ** 2, axis=-1, keepdims=True)
        return (y - mu) * jax.lax.rsqrt(var + LN_EPS) * g + b

    def attend(q, k, v, mask):
        # q/k/v: (S, D); per-head slices of width d_head; the 1/sqrt(d_head)
        # scale is already folded into the packed Wq.  Head outputs stay as
        # values (no masked scratch stores) and are assembled once.
        outs = []
        for h in range(n_heads):
            lo = h * d_head
            qh = q[:, lo:lo + d_head]
            kh = k[:, lo:lo + d_head]
            vh = v[:, lo:lo + d_head]
            s = jax.lax.dot_general(qh, kh, (((1,), (1,)), ((), ())),
                                    preferred_element_type=jnp.float32)  # (S,S)
            if mask is not None:
                # spec: masked_fill_(mask == 0, 1e-19) BEFORE softmax
                s = jnp.where(mask, s, 1e-19)
            s = s - jnp.max(s, axis=-1, keepdims=True)
            p = jnp.exp(s)
            p = p * pl.reciprocal(jnp.sum(p, axis=-1, keepdims=True), approx=True)
            outs.append(jnp.dot(p, vh, preferred_element_type=jnp.float32))
        return jnp.concatenate(outs, axis=-1)                      # (S, D)

    # ---- static in-kernel loop over the decoder layers -----------------------
    for l in range(n_layers):
        wqkv = wqkv_ref[l]                                          # (D, 3D)
        wcross = wcross_ref[l]                                      # (D, 3D)
        w1 = wff1_ref[l]                                            # (D, dff)
        w2 = wff2_ref[l]                                            # (dff, D)
        vec = vec_ref[l]                                            # (8, dff)
        g1 = vec[0:1, :d_embed]; b1 = vec[1:2, :d_embed]
        g2 = vec[2:3, :d_embed]; b2 = vec[3:4, :d_embed]
        g3 = vec[4:5, :d_embed]; b3 = vec[5:6, :d_embed]
        bb2 = vec[6:7, :d_embed]; bb1 = vec[7:8, :]

        # masked self-attention (fused QKV packed matmul, scale folded in)
        qkv = jnp.dot(x, wqkv, preferred_element_type=jnp.float32)  # (S, 3D)
        q = qkv[:, :d_embed]
        k = qkv[:, d_embed:2 * d_embed]
        v = qkv[:, 2 * d_embed:]
        self_attn = attend(q, k, v, causal)
        y1 = layer_norm(self_attn + x, g1, b1)

        # cross-attention: k = encoder_k, q = y1, v = encoder_v
        qc = jnp.dot(y1, wcross[:, :d_embed],
                     preferred_element_type=jnp.float32)
        kc = jnp.dot(ek, wcross[:, d_embed:2 * d_embed],
                     preferred_element_type=jnp.float32)
        vc = jnp.dot(ev, wcross[:, 2 * d_embed:],
                     preferred_element_type=jnp.float32)
        cross_attn = attend(qc, kc, vc, None)
        y2 = layer_norm(cross_attn + y1, g2, b2)

        # feed-forward: Linear -> ReLU -> Linear
        h1 = jnp.maximum(
            jnp.dot(y2, w1, preferred_element_type=jnp.float32) + bb1, 0.0)
        h2 = jnp.dot(h1, w2, preferred_element_type=jnp.float32) + bb2
        x = layer_norm(h2 + y2, g3, b3)

    # ---- final vocab projection (lane-dense 128-wide) -------------------------
    logits = jnp.dot(x, wlin_ref[...],
                     preferred_element_type=jnp.float32) + blin_ref[...]
    o_ref[0] = logits.astype(o_ref.dtype)


def decoder_stack_pallas(emb, enc_kv, packed, n_heads):
    B, S, D = emb.shape
    L = packed['wqkv'].shape[0]
    dff = packed['wff1'].shape[-1]
    dh = D // n_heads

    kernel = functools.partial(decoder_stack_kernel, n_layers=L,
                               n_heads=n_heads, d_head=dh, seq_len=S)

    def bspec(shape):                      # per-batch blocks
        return pl.BlockSpec(shape, lambda b: (b,) + (0,) * (len(shape) - 1))

    def cspec(shape):                      # constant (grid-invariant) blocks
        return pl.BlockSpec(shape, lambda b, _n=len(shape): (0,) * _n)

    # Advisory cost estimate for XLA's scheduler.
    flops_layer = (2 * S * D * 3 * D        # fused self-attn QKV
                   + 4 * S * S * D          # self-attn scores + p@v
                   + 3 * 2 * S * D * D      # cross-attn projections
                   + 4 * S * S * D          # cross-attn scores + p@v
                   + 4 * S * D * dff)       # FFN
    flops = int(B * (L * flops_layer + 2 * S * D * V_PAD))
    transcendentals = int(B * L * (2 * n_heads * S * S + 2 * n_heads * S + 3 * S))
    bytes_accessed = int(4 * (emb.size + enc_kv.size
                              + sum(int(v.size) for v in packed.values())
                              + B * S * V_PAD))

    return pl.pallas_call(
        kernel,
        out_shape=jax.ShapeDtypeStruct((B, S, V_PAD), jnp.float32),
        grid=(B,),
        in_specs=[
            bspec((1, S, D)),                      # embedded input
            bspec((1, S, 2 * D)),                  # packed enc_k | enc_v
            cspec((L, D, 3 * D)),                  # self-attn fused QKV (scaled)
            cspec((L, D, 3 * D)),                  # cross-attn fused QKV (scaled)
            cspec((L, D, dff)),                    # FF W1^T
            cspec((L, dff, D)),                    # FF W2^T
            cspec((L, 8, dff)),                    # LN gammas/betas + FF biases
            cspec((D, V_PAD)),                     # final linear W^T (padded)
            cspec((1, V_PAD)),                     # final linear bias (padded)
        ],
        out_specs=pl.BlockSpec((1, S, V_PAD), lambda b: (b, 0, 0)),
        compiler_params=pltpu.CompilerParams(
            dimension_semantics=("parallel",)),
        cost_estimate=pl.CostEstimate(flops=flops,
                                      transcendentals=transcendentals,
                                      bytes_accessed=bytes_accessed),
    )(emb, enc_kv,
      packed['wqkv'], packed['wcross'], packed['wff1'], packed['wff2'],
      packed['vec'], packed['wlin'], packed['blin'])


# --------------------------- weight packing (init-time) ----------------------
def pack_for_pallas(params, n_heads):
    """Precompute block-diagonal / transposed / padded / merged weights once."""
    D = D_EMBED
    dh = D // n_heads
    dff = D * EXPANSION
    scale = 1.0 / float(np.sqrt(dh))

    def bd(w):  # per-head (dh, dh): y = x @ w.T per head == x_full @ blockdiag(w.T)
        return jax.scipy.linalg.block_diag(*([w.T] * n_heads)).astype(jnp.float32)

    def pad_row(v):  # pad a D- or dff-wide vector to dff lanes
        return jnp.zeros((dff,), jnp.float32).at[:v.shape[0]].set(
            v.astype(jnp.float32))

    wqkv, wcross, wff1, wff2, vec = [], [], [], [], []
    for lp in params['layers']:
        wqkv.append(jnp.concatenate(
            [bd(lp['wq_s']) * scale, bd(lp['wk_s']), bd(lp['wv_s'])], axis=1))
        wcross.append(jnp.concatenate(
            [bd(lp['wq_c']) * scale, bd(lp['wk_c']), bd(lp['wv_c'])], axis=1))
        wff1.append(lp['w1'].T.astype(jnp.float32))
        wff2.append(lp['w2'].T.astype(jnp.float32))
        vec.append(jnp.stack([pad_row(lp['g1']), pad_row(lp['b1']),
                              pad_row(lp['g2']), pad_row(lp['b2']),
                              pad_row(lp['g3']), pad_row(lp['b3']),
                              pad_row(lp['bb2']), pad_row(lp['bb1'])]))

    wlin_pad = jnp.zeros((D, V_PAD), jnp.float32).at[:, :VOCAB_SIZE].set(
        params['wlin'].T.astype(jnp.float32))
    blin_pad = jnp.zeros((1, V_PAD), jnp.float32).at[0, :VOCAB_SIZE].set(
        params['blin'].astype(jnp.float32))

    return dict(wqkv=jnp.stack(wqkv), wcross=jnp.stack(wcross),
                wff1=jnp.stack(wff1), wff2=jnp.stack(wff2),
                vec=jnp.stack(vec), wlin=wlin_pad, blin=blin_pad)


# ------------------------------- full model -----------------------------------
def positional_encoding(seq_len, d_embed):
    # matches the PyTorch loop: angle = pos / 10000**(2*i/d); sin if i even else cos
    pos = jnp.arange(seq_len, dtype=jnp.float32)[:, None]
    i = jnp.arange(d_embed, dtype=jnp.float32)[None, :]
    angle = pos / jnp.power(10000.0, 2.0 * i / d_embed)
    even = (jnp.arange(d_embed)[None, :] % 2) == 0
    return jnp.where(even, jnp.sin(angle), jnp.cos(angle)).astype(jnp.float32)


def transformer_decoder_pallas(tokens, enc_k, enc_v, params, packed):
    D = params['embedding'].shape[1]
    # TODO(synk): embedding gather + positional-encoding add + enc_k/enc_v
    # concat stay in plain JAX (cheap glue, not the hot path).
    emb = (params['embedding'][tokens] * np.sqrt(D)
           + params['pos_enc'][None]).astype(jnp.float32)
    enc_kv = jnp.concatenate([enc_k, enc_v], axis=-1).astype(jnp.float32)
    logits_pad = decoder_stack_pallas(emb, enc_kv, packed, N_HEADS)
    return logits_pad[:, :, :VOCAB_SIZE]


# --------------------------- pure-JAX reference -------------------------------
def _layernorm_ref(x, g, b):
    mu = x.mean(-1, keepdims=True)
    var = ((x - mu) ** 2).mean(-1, keepdims=True)
    return (x - mu) / jnp.sqrt(var + LN_EPS) * g + b


def _mha_ref(k_in, q_in, v_in, wk, wq, wv, n_heads, mask):
    B, S, D = k_in.shape
    dh = D // n_heads
    k = (k_in.reshape(B, S, n_heads, dh) @ wk.T).transpose(0, 2, 1, 3)
    q = (q_in.reshape(B, S, n_heads, dh) @ wq.T).transpose(0, 2, 1, 3)
    v = (v_in.reshape(B, S, n_heads, dh) @ wv.T).transpose(0, 2, 1, 3)
    s = (q @ k.transpose(0, 1, 3, 2)) / np.sqrt(dh)
    if mask is not None:
        s = jnp.where(mask, s, 1e-19)          # spec's masked_fill_(mask==0, 1e-19)
    p = jax.nn.softmax(s, axis=-1)
    return (p @ v).transpose(0, 2, 1, 3).reshape(B, S, D)


def transformer_decoder_ref(tokens, enc_k, enc_v, params):
    D = params['embedding'].shape[1]
    S = tokens.shape[1]
    emb = params['embedding'][tokens] * np.sqrt(D) + params['pos_enc'][None]
    causal = jnp.tril(jnp.ones((S, S))) > 0
    out = emb
    for lp in params['layers']:
        sa = _mha_ref(out, out, out, lp['wk_s'], lp['wq_s'], lp['wv_s'],
                      N_HEADS, causal)
        y1 = _layernorm_ref(sa + out, lp['g1'], lp['b1'])
        ca = _mha_ref(enc_k, y1, enc_v, lp['wk_c'], lp['wq_c'], lp['wv_c'],
                      N_HEADS, None)
        y2 = _layernorm_ref(ca + y1, lp['g2'], lp['b2'])
        h1 = jax.nn.relu(y2 @ lp['w1'].T + lp['bb1'])
        h2 = h1 @ lp['w2'].T + lp['bb2']
        out = _layernorm_ref(h2 + y2, lp['g3'], lp['b3'])
    return out @ params['wlin'].T + params['blin']


# --------------------------------- init ---------------------------------------
def init_params(key):
    dh = D_EMBED // N_HEADS
    dff = D_EMBED * EXPANSION
    keys = jax.random.split(key, 2 + N_LAYERS)
    emb = (jax.random.normal(keys[0], (VOCAB_SIZE, D_EMBED)) * 0.1).astype(jnp.float32)
    klin = jax.random.split(keys[1], 2)
    wlin = (jax.random.normal(klin[0], (VOCAB_SIZE, D_EMBED)) * 0.1).astype(jnp.float32)
    blin = (jax.random.normal(klin[1], (VOCAB_SIZE,)) * 0.05).astype(jnp.float32)
    layers = []
    for l in range(N_LAYERS):
        ks = jax.random.split(keys[2 + l], 16)
        layers.append(dict(
            wq_s=(jax.random.normal(ks[0], (dh, dh)) * 0.3).astype(jnp.float32),
            wk_s=(jax.random.normal(ks[1], (dh, dh)) * 0.3).astype(jnp.float32),
            wv_s=(jax.random.normal(ks[2], (dh, dh)) * 0.3).astype(jnp.float32),
            wq_c=(jax.random.normal(ks[3], (dh, dh)) * 0.3).astype(jnp.float32),
            wk_c=(jax.random.normal(ks[4], (dh, dh)) * 0.3).astype(jnp.float32),
            wv_c=(jax.random.normal(ks[5], (dh, dh)) * 0.3).astype(jnp.float32),
            g1=(1.0 + 0.1 * jax.random.normal(ks[6], (D_EMBED,))).astype(jnp.float32),
            b1=(0.05 * jax.random.normal(ks[7], (D_EMBED,))).astype(jnp.float32),
            g2=(1.0 + 0.1 * jax.random.normal(ks[8], (D_EMBED,))).astype(jnp.float32),
            b2=(0.05 * jax.random.normal(ks[9], (D_EMBED,))).astype(jnp.float32),
            g3=(1.0 + 0.1 * jax.random.normal(ks[10], (D_EMBED,))).astype(jnp.float32),
            b3=(0.05 * jax.random.normal(ks[11], (D_EMBED,))).astype(jnp.float32),
            w1=(jax.random.normal(ks[12], (dff, D_EMBED)) * 0.1).astype(jnp.float32),
            bb1=(jax.random.normal(ks[13], (dff,)) * 0.05).astype(jnp.float32),
            w2=(jax.random.normal(ks[14], (D_EMBED, dff)) * 0.1).astype(jnp.float32),
            bb2=(jax.random.normal(ks[15], (D_EMBED,)) * 0.05).astype(jnp.float32),
        ))
    return dict(embedding=emb, pos_enc=positional_encoding(SEQ, D_EMBED),
                wlin=wlin, blin=blin, layers=layers)


if __name__ == "__main__":
    key = jax.random.PRNGKey(0)
    k_params, k_tok, k_enck, k_encv = jax.random.split(key, 4)
    params = init_params(k_params)
    packed = pack_for_pallas(params, N_HEADS)      # one-time weight packing

    tokens = jax.random.randint(k_tok, (BATCH, SEQ), 0, VOCAB_SIZE)
    enc_k = (jax.random.normal(k_enck, (BATCH, SEQ, D_EMBED)) * 0.5).astype(jnp.float32)
    enc_v = (jax.random.normal(k_encv, (BATCH, SEQ, D_EMBED)) * 0.5).astype(jnp.float32)

    out = transformer_decoder_pallas(tokens, enc_k, enc_v, params, packed)
    out = jax.block_until_ready(out)

    ref = transformer_decoder_ref(tokens, enc_k, enc_v, params)
    np.testing.assert_allclose(np.asarray(out), np.asarray(ref),
                               rtol=2e-3, atol=2e-3)
    print("KERNEL_OK")
</pallas_src>

<mosaic_0001>
module attributes {stable_mosaic.version = 11 : i64} {
  func.func @decoder_stack_kernel(%arg0: i32, %arg1: memref<1x8x32xf32, #tpu.memory_space<vmem>>, %arg2: memref<1x8x64xf32, #tpu.memory_space<vmem>>, %arg3: memref<2x32x96xf32, #tpu.memory_space<vmem>>, %arg4: memref<2x32x96xf32, #tpu.memory_space<vmem>>, %arg5: memref<2x32x64xf32, #tpu.memory_space<vmem>>, %arg6: memref<2x64x32xf32, #tpu.memory_space<vmem>>, %arg7: memref<2x8x64xf32, #tpu.memory_space<vmem>>, %arg8: memref<32x128xf32, #tpu.memory_space<vmem>>, %arg9: memref<1x128xf32, #tpu.memory_space<vmem>>, %arg10: memref<1x8x128xf32, #tpu.memory_space<vmem>>) attributes {dimension_semantics = [#tpu.dimension_semantics<parallel>], iteration_bounds = array<i64: 2>, scalar_prefetch = 0 : i64, scratch_operands = 0 : i64, tpu.core_type = #tpu.core_type<tc>, window_params = [{transform_indices = @transform_0, window_bounds = array<i64: 1, 8, 32>}, {transform_indices = @transform_1, window_bounds = array<i64: 1, 8, 64>}, {pipeline_mode = #tpu.pipeline_mode<synchronous>, transform_indices = @transform_2, window_bounds = array<i64: 2, 32, 96>}, {pipeline_mode = #tpu.pipeline_mode<synchronous>, transform_indices = @transform_3, window_bounds = array<i64: 2, 32, 96>}, {pipeline_mode = #tpu.pipeline_mode<synchronous>, transform_indices = @transform_4, window_bounds = array<i64: 2, 32, 64>}, {pipeline_mode = #tpu.pipeline_mode<synchronous>, transform_indices = @transform_5, window_bounds = array<i64: 2, 64, 32>}, {pipeline_mode = #tpu.pipeline_mode<synchronous>, transform_indices = @transform_6, window_bounds = array<i64: 2, 8, 64>}, {pipeline_mode = #tpu.pipeline_mode<synchronous>, transform_indices = @transform_7, window_bounds = array<i64: 32, 128>}, {pipeline_mode = #tpu.pipeline_mode<synchronous>, transform_indices = @transform_8, window_bounds = array<i64: 1, 128>}, {transform_indices = @transform_9, window_bounds = array<i64: 1, 8, 128>}]} {
    %c0 = arith.constant 0 : index
    %c0_0 = arith.constant 0 : index
    %c0_1 = arith.constant 0 : index
    %0 = vector.load %arg1[%c0, %c0_0, %c0_1] : memref<1x8x32xf32, #tpu.memory_space<vmem>>, vector<1x8x32xf32>
    %1 = vector.shape_cast %0 : vector<1x8x32xf32> to vector<8x32xf32>
    %c0_2 = arith.constant 0 : index
    %c0_3 = arith.constant 0 : index
    %c0_4 = arith.constant 0 : index
    %2 = vector.load %arg2[%c0_2, %c0_3, %c0_4] : memref<1x8x64xf32, #tpu.memory_space<vmem>>, vector<1x8x64xf32>
    %3 = vector.shape_cast %2 : vector<1x8x64xf32> to vector<8x64xf32>
    %4 = vector.extract_strided_slice %3 {offsets = [0, 0], sizes = [8, 32], strides = [1, 1]} : vector<8x64xf32> to vector<8x32xf32>
    %5 = vector.extract_strided_slice %3 {offsets = [0, 32], sizes = [8, 32], strides = [1, 1]} : vector<8x64xf32> to vector<8x32xf32>
    %6 = tpu.iota {dimensions = array<i32: 0>} : vector<8x8xi32>
    %7 = tpu.iota {dimensions = array<i32: 1>} : vector<8x8xi32>
    %8 = arith.cmpi sle, %7, %6 : vector<8x8xi32>
    %c0_5 = arith.constant 0 : index
    %c0_6 = arith.constant 0 : index
    %c0_7 = arith.constant 0 : index
    %9 = vector.load %arg3[%c0_5, %c0_6, %c0_7] : memref<2x32x96xf32, #tpu.memory_space<vmem>>, vector<1x32x96xf32>
    %10 = vector.shape_cast %9 : vector<1x32x96xf32> to vector<32x96xf32>
    %c0_8 = arith.constant 0 : index
    %c0_9 = arith.constant 0 : index
    %c0_10 = arith.constant 0 : index
    %11 = vector.load %arg4[%c0_8, %c0_9, %c0_10] : memref<2x32x96xf32, #tpu.memory_space<vmem>>, vector<1x32x96xf32>
    %12 = vector.shape_cast %11 : vector<1x32x96xf32> to vector<32x96xf32>
    %c0_11 = arith.constant 0 : index
    %c0_12 = arith.constant 0 : index
    %c0_13 = arith.constant 0 : index
    %13 = vector.load %arg5[%c0_11, %c0_12, %c0_13] : memref<2x32x64xf32, #tpu.memory_space<vmem>>, vector<1x32x64xf32>
    %14 = vector.shape_cast %13 : vector<1x32x64xf32> to vector<32x64xf32>
    %c0_14 = arith.constant 0 : index
    %c0_15 = arith.constant 0 : index
    %c0_16 = arith.constant 0 : index
    %15 = vector.load %arg6[%c0_14, %c0_15, %c0_16] : memref<2x64x32xf32, #tpu.memory_space<vmem>>, vector<1x64x32xf32>
    %16 = vector.shape_cast %15 : vector<1x64x32xf32> to vector<64x32xf32>
    %c0_17 = arith.constant 0 : index
    %c0_18 = arith.constant 0 : index
    %c0_19 = arith.constant 0 : index
    %17 = vector.load %arg7[%c0_17, %c0_18, %c0_19] : memref<2x8x64xf32, #tpu.memory_space<vmem>>, vector<1x8x64xf32>
    %18 = vector.shape_cast %17 : vector<1x8x64xf32> to vector<8x64xf32>
    %19 = vector.extract_strided_slice %18 {offsets = [0, 0], sizes = [1, 32], strides = [1, 1]} : vector<8x64xf32> to vector<1x32xf32>
    %20 = vector.extract_strided_slice %18 {offsets = [1, 0], sizes = [1, 32], strides = [1, 1]} : vector<8x64xf32> to vector<1x32xf32>
    %21 = vector.extract_strided_slice %18 {offsets = [2, 0], sizes = [1, 32], strides = [1, 1]} : vector<8x64xf32> to vector<1x32xf32>
    %22 = vector.extract_strided_slice %18 {offsets = [3, 0], sizes = [1, 32], strides = [1, 1]} : vector<8x64xf32> to vector<1x32xf32>
    %23 = vector.extract_strided_slice %18 {offsets = [4, 0], sizes = [1, 32], strides = [1, 1]} : vector<8x64xf32> to vector<1x32xf32>
    %24 = vector.extract_strided_slice %18 {offsets = [5, 0], sizes = [1, 32], strides = [1, 1]} : vector<8x64xf32> to vector<1x32xf32>
    %25 = vector.extract_strided_slice %18 {offsets = [6, 0], sizes = [1, 32], strides = [1, 1]} : vector<8x64xf32> to vector<1x32xf32>
    %26 = vector.extract_strided_slice %18 {offsets = [7, 0], sizes = [1, 64], strides = [1, 1]} : vector<8x64xf32> to vector<1x64xf32>
    %cst = arith.constant dense<0.000000e+00> : vector<8x96xf32>
    %27 = tpu.matmul %1, %10, %cst {dimension_numbers = #tpu.dot_dimension_numbers<[1], [0], [0], [1], [0, 0, 1, 1], [], []>} : vector<8x32xf32>, vector<32x96xf32>, vector<8x96xf32> -> vector<8x96xf32>
    %28 = vector.extract_strided_slice %27 {offsets = [0, 0], sizes = [8, 32], strides = [1, 1]} : vector<8x96xf32> to vector<8x32xf32>
    %29 = vector.extract_strided_slice %27 {offsets = [0, 32], sizes = [8, 32], strides = [1, 1]} : vector<8x96xf32> to vector<8x32xf32>
    %30 = vector.extract_strided_slice %27 {offsets = [0, 64], sizes = [8, 32], strides = [1, 1]} : vector<8x96xf32> to vector<8x32xf32>
    %31 = vector.extract_strided_slice %28 {offsets = [0, 0], sizes = [8, 8], strides = [1, 1]} : vector<8x32xf32> to vector<8x8xf32>
    %32 = vector.extract_strided_slice %29 {offsets = [0, 0], sizes = [8, 8], strides = [1, 1]} : vector<8x32xf32> to vector<8x8xf32>
    %33 = vector.extract_strided_slice %30 {offsets = [0, 0], sizes = [8, 8], strides = [1, 1]} : vector<8x32xf32> to vector<8x8xf32>
    %cst_20 = arith.constant dense<0.000000e+00> : vector<8x8xf32>
    %34 = tpu.matmul %31, %32, %cst_20 {dimension_numbers = #tpu.dot_dimension_numbers<[1], [1], [0], [0], [0, 0, 1, 0], [], []>} : vector<8x8xf32>, vector<8x8xf32>, vector<8x8xf32> -> vector<8x8xf32>
    %cst_21 = arith.constant 9.99999968E-20 : f32
    %35 = vector.broadcast %cst_21 : f32 to vector<8x8xf32>
    %36 = arith.select %8, %34, %35 : vector<8x8xi1>, vector<8x8xf32>
    %cst_22 = arith.constant dense<0xFF800000> : vector<8xf32>
    %37 = vector.multi_reduction <maximumf>, %36, %cst_22 [1] : vector<8x8xf32> to vector<8xf32>
    %38 = vector.shape_cast %37 : vector<8xf32> to vector<8x1xf32>
    %39 = vector.broadcast %38 : vector<8x1xf32> to vector<8x8xf32>
    %40 = arith.subf %36, %39 : vector<8x8xf32>
    %41 = math.exp %40 : vector<8x8xf32>
    %cst_23 = arith.constant dense<0.000000e+00> : vector<8xf32>
    %42 = vector.multi_reduction <add>, %41, %cst_23 [1] : vector<8x8xf32> to vector<8xf32>
    %43 = vector.shape_cast %42 : vector<8xf32> to vector<8x1xf32>
    %44 = tpu.reciprocal %43 {approx = true} : vector<8x1xf32> -> vector<8x1xf32>
    %45 = vector.broadcast %44 : vector<8x1xf32> to vector<8x8xf32>
    %46 = arith.mulf %41, %45 : vector<8x8xf32>
    %cst_24 = arith.constant dense<0.000000e+00> : vector<8x8xf32>
    %47 = tpu.matmul %46, %33, %cst_24 {dimension_numbers = #tpu.dot_dimension_numbers<[1], [0], [0], [1], [0, 0, 1, 1], [], []>} : vector<8x8xf32>, vector<8x8xf32>, vector<8x8xf32> -> vector<8x8xf32>
    %48 = vector.extract_strided_slice %28 {offsets = [0, 8], sizes = [8, 8], strides = [1, 1]} : vector<8x32xf32> to vector<8x8xf32>
    %49 = vector.extract_strided_slice %29 {offsets = [0, 8], sizes = [8, 8], strides = [1, 1]} : vector<8x32xf32> to vector<8x8xf32>
    %50 = vector.extract_strided_slice %30 {offsets = [0, 8], sizes = [8, 8], strides = [1, 1]} : vector<8x32xf32> to vector<8x8xf32>
    %cst_25 = arith.constant dense<0.000000e+00> : vector<8x8xf32>
    %51 = tpu.matmul %48, %49, %cst_25 {dimension_numbers = #tpu.dot_dimension_numbers<[1], [1], [0], [0], [0, 0, 1, 0], [], []>} : vector<8x8xf32>, vector<8x8xf32>, vector<8x8xf32> -> vector<8x8xf32>
    %cst_26 = arith.constant 9.99999968E-20 : f32
    %52 = vector.broadcast %cst_26 : f32 to vector<8x8xf32>
    %53 = arith.select %8, %51, %52 : vector<8x8xi1>, vector<8x8xf32>
    %cst_27 = arith.constant dense<0xFF800000> : vector<8xf32>
    %54 = vector.multi_reduction <maximumf>, %53, %cst_27 [1] : vector<8x8xf32> to vector<8xf32>
    %55 = vector.shape_cast %54 : vector<8xf32> to vector<8x1xf32>
    %56 = vector.broadcast %55 : vector<8x1xf32> to vector<8x8xf32>
    %57 = arith.subf %53, %56 : vector<8x8xf32>
    %58 = math.exp %57 : vector<8x8xf32>
    %cst_28 = arith.constant dense<0.000000e+00> : vector<8xf32>
    %59 = vector.multi_reduction <add>, %58, %cst_28 [1] : vector<8x8xf32> to vector<8xf32>
    %60 = vector.shape_cast %59 : vector<8xf32> to vector<8x1xf32>
    %61 = tpu.reciprocal %60 {approx = true} : vector<8x1xf32> -> vector<8x1xf32>
    %62 = vector.broadcast %61 : vector<8x1xf32> to vector<8x8xf32>
    %63 = arith.mulf %58, %62 : vector<8x8xf32>
    %cst_29 = arith.constant dense<0.000000e+00> : vector<8x8xf32>
    %64 = tpu.matmul %63, %50, %cst_29 {dimension_numbers = #tpu.dot_dimension_numbers<[1], [0], [0], [1], [0, 0, 1, 1], [], []>} : vector<8x8xf32>, vector<8x8xf32>, vector<8x8xf32> -> vector<8x8xf32>
    %65 = vector.extract_strided_slice %28 {offsets = [0, 16], sizes = [8, 8], strides = [1, 1]} : vector<8x32xf32> to vector<8x8xf32>
    %66 = vector.extract_strided_slice %29 {offsets = [0, 16], sizes = [8, 8], strides = [1, 1]} : vector<8x32xf32> to vector<8x8xf32>
    %67 = vector.extract_strided_slice %30 {offsets = [0, 16], sizes = [8, 8], strides = [1, 1]} : vector<8x32xf32> to vector<8x8xf32>
    %cst_30 = arith.constant dense<0.000000e+00> : vector<8x8xf32>
    %68 = tpu.matmul %65, %66, %cst_30 {dimension_numbers = #tpu.dot_dimension_numbers<[1], [1], [0], [0], [0, 0, 1, 0], [], []>} : vector<8x8xf32>, vector<8x8xf32>, vector<8x8xf32> -> vector<8x8xf32>
    %cst_31 = arith.constant 9.99999968E-20 : f32
    %69 = vector.broadcast %cst_31 : f32 to vector<8x8xf32>
    %70 = arith.select %8, %68, %69 : vector<8x8xi1>, vector<8x8xf32>
    %cst_32 = arith.constant dense<0xFF800000> : vector<8xf32>
    %71 = vector.multi_reduction <maximumf>, %70, %cst_32 [1] : vector<8x8xf32> to vector<8xf32>
    %72 = vector.shape_cast %71 : vector<8xf32> to vector<8x1xf32>
    %73 = vector.broadcast %72 : vector<8x1xf32> to vector<8x8xf32>
    %74 = arith.subf %70, %73 : vector<8x8xf32>
    %75 = math.exp %74 : vector<8x8xf32>
    %cst_33 = arith.constant dense<0.000000e+00> : vector<8xf32>
    %76 = vector.multi_reduction <add>, %75, %cst_33 [1] : vector<8x8xf32> to vector<8xf32>
    %77 = vector.shape_cast %76 : vector<8xf32> to vector<8x1xf32>
    %78 = tpu.reciprocal %77 {approx = true} : vector<8x1xf32> -> vector<8x1xf32>
    %79 = vector.broadcast %78 : vector<8x1xf32> to vector<8x8xf32>
    %80 = arith.mulf %75, %79 : vector<8x8xf32>
    %cst_34 = arith.constant dense<0.000000e+00> : vector<8x8xf32>
    %81 = tpu.matmul %80, %67, %cst_34 {dimension_numbers = #tpu.dot_dimension_numbers<[1], [0], [0], [1], [0, 0, 1, 1], [], []>} : vector<8x8xf32>, vector<8x8xf32>, vector<8x8xf32> -> vector<8x8xf32>
    %82 = vector.extract_strided_slice %28 {offsets = [0, 24], sizes = [8, 8], strides = [1, 1]} : vector<8x32xf32> to vector<8x8xf32>
    %83 = vector.extract_strided_slice %29 {offsets = [0, 24], sizes = [8, 8], strides = [1, 1]} : vector<8x32xf32> to vector<8x8xf32>
    %84 = vector.extract_strided_slice %30 {offsets = [0, 24], sizes = [8, 8], strides = [1, 1]} : vector<8x32xf32> to vector<8x8xf32>
    %cst_35 = arith.constant dense<0.000000e+00> : vector<8x8xf32>
    %85 = tpu.matmul %82, %83, %cst_35 {dimension_numbers = #tpu.dot_dimension_numbers<[1], [1], [0], [0], [0, 0, 1, 0], [], []>} : vector<8x8xf32>, vector<8x8xf32>, vector<8x8xf32> -> vector<8x8xf32>
    %cst_36 = arith.constant 9.99999968E-20 : f32
    %86 = vector.broadcast %cst_36 : f32 to vector<8x8xf32>
    %87 = arith.select %8, %85, %86 : vector<8x8xi1>, vector<8x8xf32>
    %cst_37 = arith.constant dense<0xFF800000> : vector<8xf32>
    %88 = vector.multi_reduction <maximumf>, %87, %cst_37 [1] : vector<8x8xf32> to vector<8xf32>
    %89 = vector.shape_cast %88 : vector<8xf32> to vector<8x1xf32>
    %90 = vector.broadcast %89 : vector<8x1xf32> to vector<8x8xf32>
    %91 = arith.subf %87, %90 : vector<8x8xf32>
    %92 = math.exp %91 : vector<8x8xf32>
    %cst_38 = arith.constant dense<0.000000e+00> : vector<8xf32>
    %93 = vector.multi_reduction <add>, %92, %cst_38 [1] : vector<8x8xf32> to vector<8xf32>
    %94 = vector.shape_cast %93 : vector<8xf32> to vector<8x1xf32>
    %95 = tpu.reciprocal %94 {approx = true} : vector<8x1xf32> -> vector<8x1xf32>
    %96 = vector.broadcast %95 : vector<8x1xf32> to vector<8x8xf32>
    %97 = arith.mulf %92, %96 : vector<8x8xf32>
    %cst_39 = arith.constant dense<0.000000e+00> : vector<8x8xf32>
    %98 = tpu.matmul %97, %84, %cst_39 {dimension_numbers = #tpu.dot_dimension_numbers<[1], [0], [0], [1], [0, 0, 1, 1], [], []>} : vector<8x8xf32>, vector<8x8xf32>, vector<8x8xf32> -> vector<8x8xf32>
    %99 = tpu.concatenate %47, %64, %81, %98 in 1 : vector<8x8xf32>, vector<8x8xf32>, vector<8x8xf32>, vector<8x8xf32> -> vector<8x32xf32>
    %100 = arith.addf %99, %1 : vector<8x32xf32>
    %cst_40 = arith.constant dense<0.000000e+00> : vector<8xf32>
    %101 = vector.multi_reduction <add>, %100, %cst_40 [1] : vector<8x32xf32> to vector<8xf32>
    %102 = vector.shape_cast %101 : vector<8xf32> to vector<8x1xf32>
    %cst_41 = arith.constant 3.200000e+01 : f32
    %103 = vector.broadcast %cst_41 : f32 to vector<8x1xf32>
    %104 = arith.divf %102, %103 : vector<8x1xf32>
    %105 = vector.broadcast %104 : vector<8x1xf32> to vector<8x32xf32>
    %106 = arith.subf %100, %105 : vector<8x32xf32>
    %107 = arith.mulf %106, %106 : vector<8x32xf32>
    %cst_42 = arith.constant dense<0.000000e+00> : vector<8xf32>
    %108 = vector.multi_reduction <add>, %107, %cst_42 [1] : vector<8x32xf32> to vector<8xf32>
    %109 = vector.shape_cast %108 : vector<8xf32> to vector<8x1xf32>
    %cst_43 = arith.constant 3.200000e+01 : f32
    %110 = vector.broadcast %cst_43 : f32 to vector<8x1xf32>
    %111 = arith.divf %109, %110 : vector<8x1xf32>
    %112 = vector.broadcast %104 : vector<8x1xf32> to vector<8x32xf32>
    %113 = arith.subf %100, %112 : vector<8x32xf32>
    %cst_44 = arith.constant 9.99999974E-6 : f32
    %114 = vector.broadcast %cst_44 : f32 to vector<8x1xf32>
    %115 = arith.addf %111, %114 : vector<8x1xf32>
    %116 = math.rsqrt %115 : vector<8x1xf32>
    %117 = vector.broadcast %116 : vector<8x1xf32> to vector<8x32xf32>
    %118 = arith.mulf %113, %117 : vector<8x32xf32>
    %119 = vector.broadcast %19 : vector<1x32xf32> to vector<8x32xf32>
    %120 = arith.mulf %118, %119 : vector<8x32xf32>
    %121 = vector.broadcast %20 : vector<1x32xf32> to vector<8x32xf32>
    %122 = arith.addf %120, %121 : vector<8x32xf32>
    %123 = vector.extract_strided_slice %12 {offsets = [0, 0], sizes = [32, 32], strides = [1, 1]} : vector<32x96xf32> to vector<32x32xf32>
    %cst_45 = arith.constant dense<0.000000e+00> : vector<8x32xf32>
    %124 = tpu.matmul %122, %123, %cst_45 {dimension_numbers = #tpu.dot_dimension_numbers<[1], [0], [0], [1], [0, 0, 1, 1], [], []>} : vector<8x32xf32>, vector<32x32xf32>, vector<8x32xf32> -> vector<8x32xf32>
    %125 = vector.extract_strided_slice %12 {offsets = [0, 32], sizes = [32, 32], strides = [1, 1]} : vector<32x96xf32> to vector<32x32xf32>
    %cst_46 = arith.constant dense<0.000000e+00> : vector<8x32xf32>
    %126 = tpu.matmul %4, %125, %cst_46 {dimension_numbers = #tpu.dot_dimension_numbers<[1], [0], [0], [1], [0, 0, 1, 1], [], []>} : vector<8x32xf32>, vector<32x32xf32>, vector<8x32xf32> -> vector<8x32xf32>
    %127 = vector.extract_strided_slice %12 {offsets = [0, 64], sizes = [32, 32], strides = [1, 1]} : vector<32x96xf32> to vector<32x32xf32>
    %cst_47 = arith.constant dense<0.000000e+00> : vector<8x32xf32>
    %128 = tpu.matmul %5, %127, %cst_47 {dimension_numbers = #tpu.dot_dimension_numbers<[1], [0], [0], [1], [0, 0, 1, 1], [], []>} : vector<8x32xf32>, vector<32x32xf32>, vector<8x32xf32> -> vector<8x32xf32>
    %129 = vector.extract_strided_slice %124 {offsets = [0, 0], sizes = [8, 8], strides = [1, 1]} : vector<8x32xf32> to vector<8x8xf32>
    %130 = vector.extract_strided_slice %126 {offsets = [0, 0], sizes = [8, 8], strides = [1, 1]} : vector<8x32xf32> to vector<8x8xf32>
    %131 = vector.extract_strided_slice %128 {offsets = [0, 0], sizes = [8, 8], strides = [1, 1]} : vector<8x32xf32> to vector<8x8xf32>
    %cst_48 = arith.constant dense<0.000000e+00> : vector<8x8xf32>
    %132 = tpu.matmul %129, %130, %cst_48 {dimension_numbers = #tpu.dot_dimension_numbers<[1], [1], [0], [0], [0, 0, 1, 0], [], []>} : vector<8x8xf32>, vector<8x8xf32>, vector<8x8xf32> -> vector<8x8xf32>
    %cst_49 = arith.constant dense<0xFF800000> : vector<8xf32>
    %133 = vector.multi_reduction <maximumf>, %132, %cst_49 [1] : vector<8x8xf32> to vector<8xf32>
    %134 = vector.shape_cast %133 : vector<8xf32> to vector<8x1xf32>
    %135 = vector.broadcast %134 : vector<8x1xf32> to vector<8x8xf32>
    %136 = arith.subf %132, %135 : vector<8x8xf32>
    %137 = math.exp %136 : vector<8x8xf32>
    %cst_50 = arith.constant dense<0.000000e+00> : vector<8xf32>
    %138 = vector.multi_reduction <add>, %137, %cst_50 [1] : vector<8x8xf32> to vector<8xf32>
    %139 = vector.shape_cast %138 : vector<8xf32> to vector<8x1xf32>
    %140 = tpu.reciprocal %139 {approx = true} : vector<8x1xf32> -> vector<8x1xf32>
    %141 = vector.broadcast %140 : vector<8x1xf32> to vector<8x8xf32>
    %142 = arith.mulf %137, %141 : vector<8x8xf32>
    %cst_51 = arith.constant dense<0.000000e+00> : vector<8x8xf32>
    %143 = tpu.matmul %142, %131, %cst_51 {dimension_numbers = #tpu.dot_dimension_numbers<[1], [0], [0], [1], [0, 0, 1, 1], [], []>} : vector<8x8xf32>, vector<8x8xf32>, vector<8x8xf32> -> vector<8x8xf32>
    %144 = vector.extract_strided_slice %124 {offsets = [0, 8], sizes = [8, 8], strides = [1, 1]} : vector<8x32xf32> to vector<8x8xf32>
    %145 = vector.extract_strided_slice %126 {offsets = [0, 8], sizes = [8, 8], strides = [1, 1]} : vector<8x32xf32> to vector<8x8xf32>
    %146 = vector.extract_strided_slice %128 {offsets = [0, 8], sizes = [8, 8], strides = [1, 1]} : vector<8x32xf32> to vector<8x8xf32>
    %cst_52 = arith.constant dense<0.000000e+00> : vector<8x8xf32>
    %147 = tpu.matmul %144, %145, %cst_52 {dimension_numbers = #tpu.dot_dimension_numbers<[1], [1], [0], [0], [0, 0, 1, 0], [], []>} : vector<8x8xf32>, vector<8x8xf32>, vector<8x8xf32> -> vector<8x8xf32>
    %cst_53 = arith.constant dense<0xFF800000> : vector<8xf32>
    %148 = vector.multi_reduction <maximumf>, %147, %cst_53 [1] : vector<8x8xf32> to vector<8xf32>
    %149 = vector.shape_cast %148 : vector<8xf32> to vector<8x1xf32>
    %150 = vector.broadcast %149 : vector<8x1xf32> to vector<8x8xf32>
    %151 = arith.subf %147, %150 : vector<8x8xf32>
    %152 = math.exp %151 : vector<8x8xf32>
    %cst_54 = arith.constant dense<0.000000e+00> : vector<8xf32>
    %153 = vector.multi_reduction <add>, %152, %cst_54 [1] : vector<8x8xf32> to vector<8xf32>
    %154 = vector.shape_cast %153 : vector<8xf32> to vector<8x1xf32>
    %155 = tpu.reciprocal %154 {approx = true} : vector<8x1xf32> -> vector<8x1xf32>
    %156 = vector.broadcast %155 : vector<8x1xf32> to vector<8x8xf32>
    %157 = arith.mulf %152, %156 : vector<8x8xf32>
    %cst_55 = arith.constant dense<0.000000e+00> : vector<8x8xf32>
    %158 = tpu.matmul %157, %146, %cst_55 {dimension_numbers = #tpu.dot_dimension_numbers<[1], [0], [0], [1], [0, 0, 1, 1], [], []>} : vector<8x8xf32>, vector<8x8xf32>, vector<8x8xf32> -> vector<8x8xf32>
    %159 = vector.extract_strided_slice %124 {offsets = [0, 16], sizes = [8, 8], strides = [1, 1]} : vector<8x32xf32> to vector<8x8xf32>
    %160 = vector.extract_strided_slice %126 {offsets = [0, 16], sizes = [8, 8], strides = [1, 1]} : vector<8x32xf32> to vector<8x8xf32>
    %161 = vector.extract_strided_slice %128 {offsets = [0, 16], sizes = [8, 8], strides = [1, 1]} : vector<8x32xf32> to vector<8x8xf32>
    %cst_56 = arith.constant dense<0.000000e+00> : vector<8x8xf32>
    %162 = tpu.matmul %159, %160, %cst_56 {dimension_numbers = #tpu.dot_dimension_numbers<[1], [1], [0], [0], [0, 0, 1, 0], [], []>} : vector<8x8xf32>, vector<8x8xf32>, vector<8x8xf32> -> vector<8x8xf32>
    %cst_57 = arith.constant dense<0xFF800000> : vector<8xf32>
    %163 = vector.multi_reduction <maximumf>, %162, %cst_57 [1] : vector<8x8xf32> to vector<8xf32>
    %164 = vector.shape_cast %163 : vector<8xf32> to vector<8x1xf32>
    %165 = vector.broadcast %164 : vector<8x1xf32> to vector<8x8xf32>
    %166 = arith.subf %162, %165 : vector<8x8xf32>
    %167 = math.exp %166 : vector<8x8xf32>
    %cst_58 = arith.constant dense<0.000000e+00> : vector<8xf32>
    %168 = vector.multi_reduction <add>, %167, %cst_58 [1] : vector<8x8xf32> to vector<8xf32>
    %169 = vector.shape_cast %168 : vector<8xf32> to vector<8x1xf32>
    %170 = tpu.reciprocal %169 {approx = true} : vector<8x1xf32> -> vector<8x1xf32>
    %171 = vector.broadcast %170 : vector<8x1xf32> to vector<8x8xf32>
    %172 = arith.mulf %167, %171 : vector<8x8xf32>
    %cst_59 = arith.constant dense<0.000000e+00> : vector<8x8xf32>
    %173 = tpu.matmul %172, %161, %cst_59 {dimension_numbers = #tpu.dot_dimension_numbers<[1], [0], [0], [1], [0, 0, 1, 1], [], []>} : vector<8x8xf32>, vector<8x8xf32>, vector<8x8xf32> -> vector<8x8xf32>
    %174 = vector.extract_strided_slice %124 {offsets = [0, 24], sizes = [8, 8], strides = [1, 1]} : vector<8x32xf32> to vector<8x8xf32>
    %175 = vector.extract_strided_slice %126 {offsets = [0, 24], sizes = [8, 8], strides = [1, 1]} : vector<8x32xf32> to vector<8x8xf32>
    %176 = vector.extract_strided_slice %128 {offsets = [0, 24], sizes = [8, 8], strides = [1, 1]} : vector<8x32xf32> to vector<8x8xf32>
    %cst_60 = arith.constant dense<0.000000e+00> : vector<8x8xf32>
    %177 = tpu.matmul %174, %175, %cst_60 {dimension_numbers = #tpu.dot_dimension_numbers<[1], [1], [0], [0], [0, 0, 1, 0], [], []>} : vector<8x8xf32>, vector<8x8xf32>, vector<8x8xf32> -> vector<8x8xf32>
    %cst_61 = arith.constant dense<0xFF800000> : vector<8xf32>
    %178 = vector.multi_reduction <maximumf>, %177, %cst_61 [1] : vector<8x8xf32> to vector<8xf32>
    %179 = vector.shape_cast %178 : vector<8xf32> to vector<8x1xf32>
    %180 = vector.broadcast %179 : vector<8x1xf32> to vector<8x8xf32>
    %181 = arith.subf %177, %180 : vector<8x8xf32>
    %182 = math.exp %181 : vector<8x8xf32>
    %cst_62 = arith.constant dense<0.000000e+00> : vector<8xf32>
    %183 = vector.multi_reduction <add>, %182, %cst_62 [1] : vector<8x8xf32> to vector<8xf32>
    %184 = vector.shape_cast %183 : vector<8xf32> to vector<8x1xf32>
    %185 = tpu.reciprocal %184 {approx = true} : vector<8x1xf32> -> vector<8x1xf32>
    %186 = vector.broadcast %185 : vector<8x1xf32> to vector<8x8xf32>
    %187 = arith.mulf %182, %186 : vector<8x8xf32>
    %cst_63 = arith.constant dense<0.000000e+00> : vector<8x8xf32>
    %188 = tpu.matmul %187, %176, %cst_63 {dimension_numbers = #tpu.dot_dimension_numbers<[1], [0], [0], [1], [0, 0, 1, 1], [], []>} : vector<8x8xf32>, vector<8x8xf32>, vector<8x8xf32> -> vector<8x8xf32>
    %189 = tpu.concatenate %143, %158, %173, %188 in 1 : vector<8x8xf32>, vector<8x8xf32>, vector<8x8xf32>, vector<8x8xf32> -> vector<8x32xf32>
    %190 = arith.addf %189, %122 : vector<8x32xf32>
    %cst_64 = arith.constant dense<0.000000e+00> : vector<8xf32>
    %191 = vector.multi_reduction <add>, %190, %cst_64 [1] : vector<8x32xf32> to vector<8xf32>
    %192 = vector.shape_cast %191 : vector<8xf32> to vector<8x1xf32>
    %cst_65 = arith.constant 3.200000e+01 : f32
    %193 = vector.broadcast %cst_65 : f32 to vector<8x1xf32>
    %194 = arith.divf %192, %193 : vector<8x1xf32>
    %195 = vector.broadcast %194 : vector<8x1xf32> to vector<8x32xf32>
    %196 = arith.subf %190, %195 : vector<8x32xf32>
    %197 = arith.mulf %196, %196 : vector<8x32xf32>
    %cst_66 = arith.constant dense<0.000000e+00> : vector<8xf32>
    %198 = vector.multi_reduction <add>, %197, %cst_66 [1] : vector<8x32xf32> to vector<8xf32>
    %199 = vector.shape_cast %198 : vector<8xf32> to vector<8x1xf32>
    %cst_67 = arith.constant 3.200000e+01 : f32
    %200 = vector.broadcast %cst_67 : f32 to vector<8x1xf32>
    %201 = arith.divf %199, %200 : vector<8x1xf32>
    %202 = vector.broadcast %194 : vector<8x1xf32> to vector<8x32xf32>
    %203 = arith.subf %190, %202 : vector<8x32xf32>
    %cst_68 = arith.constant 9.99999974E-6 : f32
    %204 = vector.broadcast %cst_68 : f32 to vector<8x1xf32>
    %205 = arith.addf %201, %204 : vector<8x1xf32>
    %206 = math.rsqrt %205 : vector<8x1xf32>
    %207 = vector.broadcast %206 : vector<8x1xf32> to vector<8x32xf32>
    %208 = arith.mulf %203, %207 : vector<8x32xf32>
    %209 = vector.broadcast %21 : vector<1x32xf32> to vector<8x32xf32>
    %210 = arith.mulf %208, %209 : vector<8x32xf32>
    %211 = vector.broadcast %22 : vector<1x32xf32> to vector<8x32xf32>
    %212 = arith.addf %210, %211 : vector<8x32xf32>
    %cst_69 = arith.constant dense<0.000000e+00> : vector<8x64xf32>
    %213 = tpu.matmul %212, %14, %cst_69 {dimension_numbers = #tpu.dot_dimension_numbers<[1], [0], [0], [1], [0, 0, 1, 1], [], []>} : vector<8x32xf32>, vector<32x64xf32>, vector<8x64xf32> -> vector<8x64xf32>
    %214 = vector.broadcast %26 : vector<1x64xf32> to vector<8x64xf32>
    %215 = arith.addf %213, %214 : vector<8x64xf32>
    %cst_70 = arith.constant 0.000000e+00 : f32
    %216 = vector.broadcast %cst_70 : f32 to vector<8x64xf32>
    %217 = arith.maximumf %215, %216 : vector<8x64xf32>
    %cst_71 = arith.constant dense<0.000000e+00> : vector<8x32xf32>
    %218 = tpu.matmul %217, %16, %cst_71 {dimension_numbers = #tpu.dot_dimension_numbers<[1], [0], [0], [1], [0, 0, 1, 1], [], []>} : vector<8x64xf32>, vector<64x32xf32>, vector<8x32xf32> -> vector<8x32xf32>
    %219 = vector.broadcast %25 : vector<1x32xf32> to vector<8x32xf32>
    %220 = arith.addf %218, %219 : vector<8x32xf32>
    %221 = arith.addf %220, %212 : vector<8x32xf32>
    %cst_72 = arith.constant dense<0.000000e+00> : vector<8xf32>
    %222 = vector.multi_reduction <add>, %221, %cst_72 [1] : vector<8x32xf32> to vector<8xf32>
    %223 = vector.shape_cast %222 : vector<8xf32> to vector<8x1xf32>
    %cst_73 = arith.constant 3.200000e+01 : f32
    %224 = vector.broadcast %cst_73 : f32 to vector<8x1xf32>
    %225 = arith.divf %223, %224 : vector<8x1xf32>
    %226 = vector.broadcast %225 : vector<8x1xf32> to vector<8x32xf32>
    %227 = arith.subf %221, %226 : vector<8x32xf32>
    %228 = arith.mulf %227, %227 : vector<8x32xf32>
    %cst_74 = arith.constant dense<0.000000e+00> : vector<8xf32>
    %229 = vector.multi_reduction <add>, %228, %cst_74 [1] : vector<8x32xf32> to vector<8xf32>
    %230 = vector.shape_cast %229 : vector<8xf32> to vector<8x1xf32>
    %cst_75 = arith.constant 3.200000e+01 : f32
    %231 = vector.broadcast %cst_75 : f32 to vector<8x1xf32>
    %232 = arith.divf %230, %231 : vector<8x1xf32>
    %233 = vector.broadcast %225 : vector<8x1xf32> to vector<8x32xf32>
    %234 = arith.subf %221, %233 : vector<8x32xf32>
    %cst_76 = arith.constant 9.99999974E-6 : f32
    %235 = vector.broadcast %cst_76 : f32 to vector<8x1xf32>
    %236 = arith.addf %232, %235 : vector<8x1xf32>
    %237 = math.rsqrt %236 : vector<8x1xf32>
    %238 = vector.broadcast %237 : vector<8x1xf32> to vector<8x32xf32>
    %239 = arith.mulf %234, %238 : vector<8x32xf32>
    %240 = vector.broadcast %23 : vector<1x32xf32> to vector<8x32xf32>
    %241 = arith.mulf %239, %240 : vector<8x32xf32>
    %242 = vector.broadcast %24 : vector<1x32xf32> to vector<8x32xf32>
    %243 = arith.addf %241, %242 : vector<8x32xf32>
    %c1 = arith.constant 1 : index
    %c0_77 = arith.constant 0 : index
    %c0_78 = arith.constant 0 : index
    %244 = vector.load %arg3[%c1, %c0_77, %c0_78] : memref<2x32x96xf32, #tpu.memory_space<vmem>>, vector<1x32x96xf32>
    %245 = vector.shape_cast %244 : vector<1x32x96xf32> to vector<32x96xf32>
    %c1_79 = arith.constant 1 : index
    %c0_80 = arith.constant 0 : index
    %c0_81 = arith.constant 0 : index
    %246 = vector.load %arg4[%c1_79, %c0_80, %c0_81] : memref<2x32x96xf32, #tpu.memory_space<vmem>>, vector<1x32x96xf32>
    %247 = vector.shape_cast %246 : vector<1x32x96xf32> to vector<32x96xf32>
    %c1_82 = arith.constant 1 : index
    %c0_83 = arith.constant 0 : index
    %c0_84 = arith.constant 0 : index
    %248 = vector.load %arg5[%c1_82, %c0_83, %c0_84] : memref<2x32x64xf32, #tpu.memory_space<vmem>>, vector<1x32x64xf32>
    %249 = vector.shape_cast %248 : vector<1x32x64xf32> to vector<32x64xf32>
    %c1_85 = arith.constant 1 : index
    %c0_86 = arith.constant 0 : index
    %c0_87 = arith.constant 0 : index
    %250 = vector.load %arg6[%c1_85, %c0_86, %c0_87] : memref<2x64x32xf32, #tpu.memory_space<vmem>>, vector<1x64x32xf32>
    %251 = vector.shape_cast %250 : vector<1x64x32xf32> to vector<64x32xf32>
    %c1_88 = arith.constant 1 : index
    %c0_89 = arith.constant 0 : index
    %c0_90 = arith.constant 0 : index
    %252 = vector.load %arg7[%c1_88, %c0_89, %c0_90] : memref<2x8x64xf32, #tpu.memory_space<vmem>>, vector<1x8x64xf32>
    %253 = vector.shape_cast %252 : vector<1x8x64xf32> to vector<8x64xf32>
    %254 = vector.extract_strided_slice %253 {offsets = [0, 0], sizes = [1, 32], strides = [1, 1]} : vector<8x64xf32> to vector<1x32xf32>
    %255 = vector.extract_strided_slice %253 {offsets = [1, 0], sizes = [1, 32], strides = [1, 1]} : vector<8x64xf32> to vector<1x32xf32>
    %256 = vector.extract_strided_slice %253 {offsets = [2, 0], sizes = [1, 32], strides = [1, 1]} : vector<8x64xf32> to vector<1x32xf32>
    %257 = vector.extract_strided_slice %253 {offsets = [3, 0], sizes = [1, 32], strides = [1, 1]} : vector<8x64xf32> to vector<1x32xf32>
    %258 = vector.extract_strided_slice %253 {offsets = [4, 0], sizes = [1, 32], strides = [1, 1]} : vector<8x64xf32> to vector<1x32xf32>
    %259 = vector.extract_strided_slice %253 {offsets = [5, 0], sizes = [1, 32], strides = [1, 1]} : vector<8x64xf32> to vector<1x32xf32>
    %260 = vector.extract_strided_slice %253 {offsets = [6, 0], sizes = [1, 32], strides = [1, 1]} : vector<8x64xf32> to vector<1x32xf32>
    %261 = vector.extract_strided_slice %253 {offsets = [7, 0], sizes = [1, 64], strides = [1, 1]} : vector<8x64xf32> to vector<1x64xf32>
    %cst_91 = arith.constant dense<0.000000e+00> : vector<8x96xf32>
    %262 = tpu.matmul %243, %245, %cst_91 {dimension_numbers = #tpu.dot_dimension_numbers<[1], [0], [0], [1], [0, 0, 1, 1], [], []>} : vector<8x32xf32>, vector<32x96xf32>, vector<8x96xf32> -> vector<8x96xf32>
    %263 = vector.extract_strided_slice %262 {offsets = [0, 0], sizes = [8, 32], strides = [1, 1]} : vector<8x96xf32> to vector<8x32xf32>
    %264 = vector.extract_strided_slice %262 {offsets = [0, 32], sizes = [8, 32], strides = [1, 1]} : vector<8x96xf32> to vector<8x32xf32>
    %265 = vector.extract_strided_slice %262 {offsets = [0, 64], sizes = [8, 32], strides = [1, 1]} : vector<8x96xf32> to vector<8x32xf32>
    %266 = vector.extract_strided_slice %263 {offsets = [0, 0], sizes = [8, 8], strides = [1, 1]} : vector<8x32xf32> to vector<8x8xf32>
    %267 = vector.extract_strided_slice %264 {offsets = [0, 0], sizes = [8, 8], strides = [1, 1]} : vector<8x32xf32> to vector<8x8xf32>
    %268 = vector.extract_strided_slice %265 {offsets = [0, 0], sizes = [8, 8], strides = [1, 1]} : vector<8x32xf32> to vector<8x8xf32>
    %cst_92 = arith.constant dense<0.000000e+00> : vector<8x8xf32>
    %269 = tpu.matmul %266, %267, %cst_92 {dimension_numbers = #tpu.dot_dimension_numbers<[1], [1], [0], [0], [0, 0, 1, 0], [], []>} : vector<8x8xf32>, vector<8x8xf32>, vector<8x8xf32> -> vector<8x8xf32>
    %cst_93 = arith.constant 9.99999968E-20 : f32
    %270 = vector.broadcast %cst_93 : f32 to vector<8x8xf32>
    %271 = arith.select %8, %269, %270 : vector<8x8xi1>, vector<8x8xf32>
    %cst_94 = arith.constant dense<0xFF800000> : vector<8xf32>
    %272 = vector.multi_reduction <maximumf>, %271, %cst_94 [1] : vector<8x8xf32> to vector<8xf32>
    %273 = vector.shape_cast %272 : vector<8xf32> to vector<8x1xf32>
    %274 = vector.broadcast %273 : vector<8x1xf32> to vector<8x8xf32>
    %275 = arith.subf %271, %274 : vector<8x8xf32>
    %276 = math.exp %275 : vector<8x8xf32>
    %cst_95 = arith.constant dense<0.000000e+00> : vector<8xf32>
    %277 = vector.multi_reduction <add>, %276, %cst_95 [1] : vector<8x8xf32> to vector<8xf32>
    %278 = vector.shape_cast %277 : vector<8xf32> to vector<8x1xf32>
    %279 = tpu.reciprocal %278 {approx = true} : vector<8x1xf32> -> vector<8x1xf32>
    %280 = vector.broadcast %279 : vector<8x1xf32> to vector<8x8xf32>
    %281 = arith.mulf %276, %280 : vector<8x8xf32>
    %cst_96 = arith.constant dense<0.000000e+00> : vector<8x8xf32>
    %282 = tpu.matmul %281, %268, %cst_96 {dimension_numbers = #tpu.dot_dimension_numbers<[1], [0], [0], [1], [0, 0, 1, 1], [], []>} : vector<8x8xf32>, vector<8x8xf32>, vector<8x8xf32> -> vector<8x8xf32>
    %283 = vector.extract_strided_slice %263 {offsets = [0, 8], sizes = [8, 8], strides = [1, 1]} : vector<8x32xf32> to vector<8x8xf32>
    %284 = vector.extract_strided_slice %264 {offsets = [0, 8], sizes = [8, 8], strides = [1, 1]} : vector<8x32xf32> to vector<8x8xf32>
    %285 = vector.extract_strided_slice %265 {offsets = [0, 8], sizes = [8, 8], strides = [1, 1]} : vector<8x32xf32> to vector<8x8xf32>
    %cst_97 = arith.constant dense<0.000000e+00> : vector<8x8xf32>
    %286 = tpu.matmul %283, %284, %cst_97 {dimension_numbers = #tpu.dot_dimension_numbers<[1], [1], [0], [0], [0, 0, 1, 0], [], []>} : vector<8x8xf32>, vector<8x8xf32>, vector<8x8xf32> -> vector<8x8xf32>
    %cst_98 = arith.constant 9.99999968E-20 : f32
    %287 = vector.broadcast %cst_98 : f32 to vector<8x8xf32>
    %288 = arith.select %8, %286, %287 : vector<8x8xi1>, vector<8x8xf32>
    %cst_99 = arith.constant dense<0xFF800000> : vector<8xf32>
    %289 = vector.multi_reduction <maximumf>, %288, %cst_99 [1] : vector<8x8xf32> to vector<8xf32>
    %290 = vector.shape_cast %289 : vector<8xf32> to vector<8x1xf32>
    %291 = vector.broadcast %290 : vector<8x1xf32> to vector<8x8xf32>
    %292 = arith.subf %288, %291 : vector<8x8xf32>
    %293 = math.exp %292 : vector<8x8xf32>
    %cst_100 = arith.constant dense<0.000000e+00> : vector<8xf32>
    %294 = vector.multi_reduction <add>, %293, %cst_100 [1] : vector<8x8xf32> to vector<8xf32>
    %295 = vector.shape_cast %294 : vector<8xf32> to vector<8x1xf32>
    %296 = tpu.reciprocal %295 {approx = true} : vector<8x1xf32> -> vector<8x1xf32>
    %297 = vector.broadcast %296 : vector<8x1xf32> to vector<8x8xf32>
    %298 = arith.mulf %293, %297 : vector<8x8xf32>
    %cst_101 = arith.constant dense<0.000000e+00> : vector<8x8xf32>
    %299 = tpu.matmul %298, %285, %cst_101 {dimension_numbers = #tpu.dot_dimension_numbers<[1], [0], [0], [1], [0, 0, 1, 1], [], []>} : vector<8x8xf32>, vector<8x8xf32>, vector<8x8xf32> -> vector<8x8xf32>
    %300 = vector.extract_strided_slice %263 {offsets = [0, 16], sizes = [8, 8], strides = [1, 1]} : vector<8x32xf32> to vector<8x8xf32>
    %301 = vector.extract_strided_slice %264 {offsets = [0, 16], sizes = [8, 8], strides = [1, 1]} : vector<8x32xf32> to vector<8x8xf32>
    %302 = vector.extract_strided_slice %265 {offsets = [0, 16], sizes = [8, 8], strides = [1, 1]} : vector<8x32xf32> to vector<8x8xf32>
    %cst_102 = arith.constant dense<0.000000e+00> : vector<8x8xf32>
    %303 = tpu.matmul %300, %301, %cst_102 {dimension_numbers = #tpu.dot_dimension_numbers<[1], [1], [0], [0], [0, 0, 1, 0], [], []>} : vector<8x8xf32>, vector<8x8xf32>, vector<8x8xf32> -> vector<8x8xf32>
    %cst_103 = arith.constant 9.99999968E-20 : f32
    %304 = vector.broadcast %cst_103 : f32 to vector<8x8xf32>
    %305 = arith.select %8, %303, %304 : vector<8x8xi1>, vector<8x8xf32>
    %cst_104 = arith.constant dense<0xFF800000> : vector<8xf32>
    %306 = vector.multi_reduction <maximumf>, %305, %cst_104 [1] : vector<8x8xf32> to vector<8xf32>
    %307 = vector.shape_cast %306 : vector<8xf32> to vector<8x1xf32>
    %308 = vector.broadcast %307 : vector<8x1xf32> to vector<8x8xf32>
    %309 = arith.subf %305, %308 : vector<8x8xf32>
    %310 = math.exp %309 : vector<8x8xf32>
    %cst_105 = arith.constant dense<0.000000e+00> : vector<8xf32>
    %311 = vector.multi_reduction <add>, %310, %cst_105 [1] : vector<8x8xf32> to vector<8xf32>
    %312 = vector.shape_cast %311 : vector<8xf32> to vector<8x1xf32>
    %313 = tpu.reciprocal %312 {approx = true} : vector<8x1xf32> -> vector<8x1xf32>
    %314 = vector.broadcast %313 : vector<8x1xf32> to vector<8x8xf32>
    %315 = arith.mulf %310, %314 : vector<8x8xf32>
    %cst_106 = arith.constant dense<0.000000e+00> : vector<8x8xf32>
    %316 = tpu.matmul %315, %302, %cst_106 {dimension_numbers = #tpu.dot_dimension_numbers<[1], [0], [0], [1], [0, 0, 1, 1], [], []>} : vector<8x8xf32>, vector<8x8xf32>, vector<8x8xf32> -> vector<8x8xf32>
    %317 = vector.extract_strided_slice %263 {offsets = [0, 24], sizes = [8, 8], strides = [1, 1]} : vector<8x32xf32> to vector<8x8xf32>
    %318 = vector.extract_strided_slice %264 {offsets = [0, 24], sizes = [8, 8], strides = [1, 1]} : vector<8x32xf32> to vector<8x8xf32>
    %319 = vector.extract_strided_slice %265 {offsets = [0, 24], sizes = [8, 8], strides = [1, 1]} : vector<8x32xf32> to vector<8x8xf32>
    %cst_107 = arith.constant dense<0.000000e+00> : vector<8x8xf32>
    %320 = tpu.matmul %317, %318, %cst_107 {dimension_numbers = #tpu.dot_dimension_numbers<[1], [1], [0], [0], [0, 0, 1, 0], [], []>} : vector<8x8xf32>, vector<8x8xf32>, vector<8x8xf32> -> vector<8x8xf32>
    %cst_108 = arith.constant 9.99999968E-20 : f32
    %321 = vector.broadcast %cst_108 : f32 to vector<8x8xf32>
    %322 = arith.select %8, %320, %321 : vector<8x8xi1>, vector<8x8xf32>
    %cst_109 = arith.constant dense<0xFF800000> : vector<8xf32>
    %323 = vector.multi_reduction <maximumf>, %322, %cst_109 [1] : vector<8x8xf32> to vector<8xf32>
    %324 = vector.shape_cast %323 : vector<8xf32> to vector<8x1xf32>
    %325 = vector.broadcast %324 : vector<8x1xf32> to vector<8x8xf32>
    %326 = arith.subf %322, %325 : vector<8x8xf32>
    %327 = math.exp %326 : vector<8x8xf32>
    %cst_110 = arith.constant dense<0.000000e+00> : vector<8xf32>
    %328 = vector.multi_reduction <add>, %327, %cst_110 [1] : vector<8x8xf32> to vector<8xf32>
    %329 = vector.shape_cast %328 : vector<8xf32> to vector<8x1xf32>
    %330 = tpu.reciprocal %329 {approx = true} : vector<8x1xf32> -> vector<8x1xf32>
    %331 = vector.broadcast %330 : vector<8x1xf32> to vector<8x8xf32>
    %332 = arith.mulf %327, %331 : vector<8x8xf32>
    %cst_111 = arith.constant dense<0.000000e+00> : vector<8x8xf32>
    %333 = tpu.matmul %332, %319, %cst_111 {dimension_numbers = #tpu.dot_dimension_numbers<[1], [0], [0], [1], [0, 0, 1, 1], [], []>} : vector<8x8xf32>, vector<8x8xf32>, vector<8x8xf32> -> vector<8x8xf32>
    %334 = tpu.concatenate %282, %299, %316, %333 in 1 : vector<8x8xf32>, vector<8x8xf32>, vector<8x8xf32>, vector<8x8xf32> -> vector<8x32xf32>
    %335 = arith.addf %334, %243 : vector<8x32xf32>
    %cst_112 = arith.constant dense<0.000000e+00> : vector<8xf32>
    %336 = vector.multi_reduction <add>, %335, %cst_112 [1] : vector<8x32xf32> to vector<8xf32>
    %337 = vector.shape_cast %336 : vector<8xf32> to vector<8x1xf32>
    %cst_113 = arith.constant 3.200000e+01 : f32
    %338 = vector.broadcast %cst_113 : f32 to vector<8x1xf32>
    %339 = arith.divf %337, %338 : vector<8x1xf32>
    %340 = vector.broadcast %339 : vector<8x1xf32> to vector<8x32xf32>
    %341 = arith.subf %335, %340 : vector<8x32xf32>
    %342 = arith.mulf %341, %341 : vector<8x32xf32>
    %cst_114 = arith.constant dense<0.000000e+00> : vector<8xf32>
    %343 = vector.multi_reduction <add>, %342, %cst_114 [1] : vector<8x32xf32> to vector<8xf32>
    %344 = vector.shape_cast %343 : vector<8xf32> to vector<8x1xf32>
    %cst_115 = arith.constant 3.200000e+01 : f32
    %345 = vector.broadcast %cst_115 : f32 to vector<8x1xf32>
    %346 = arith.divf %344, %345 : vector<8x1xf32>
    %347 = vector.broadcast %339 : vector<8x1xf32> to vector<8x32xf32>
    %348 = arith.subf %335, %347 : vector<8x32xf32>
    %cst_116 = arith.constant 9.99999974E-6 : f32
    %349 = vector.broadcast %cst_116 : f32 to vector<8x1xf32>
    %350 = arith.addf %346, %349 : vector<8x1xf32>
    %351 = math.rsqrt %350 : vector<8x1xf32>
    %352 = vector.broadcast %351 : vector<8x1xf32> to vector<8x32xf32>
    %353 = arith.mulf %348, %352 : vector<8x32xf32>
    %354 = vector.broadcast %254 : vector<1x32xf32> to vector<8x32xf32>
    %355 = arith.mulf %353, %354 : vector<8x32xf32>
    %356 = vector.broadcast %255 : vector<1x32xf32> to vector<8x32xf32>
    %357 = arith.addf %355, %356 : vector<8x32xf32>
    %358 = vector.extract_strided_slice %247 {offsets = [0, 0], sizes = [32, 32], strides = [1, 1]} : vector<32x96xf32> to vector<32x32xf32>
    %cst_117 = arith.constant dense<0.000000e+00> : vector<8x32xf32>
    %359 = tpu.matmul %357, %358, %cst_117 {dimension_numbers = #tpu.dot_dimension_numbers<[1], [0], [0], [1], [0, 0, 1, 1], [], []>} : vector<8x32xf32>, vector<32x32xf32>, vector<8x32xf32> -> vector<8x32xf32>
    %360 = vector.extract_strided_slice %247 {offsets = [0, 32], sizes = [32, 32], strides = [1, 1]} : vector<32x96xf32> to vector<32x32xf32>
    %cst_118 = arith.constant dense<0.000000e+00> : vector<8x32xf32>
    %361 = tpu.matmul %4, %360, %cst_118 {dimension_numbers = #tpu.dot_dimension_numbers<[1], [0], [0], [1], [0, 0, 1, 1], [], []>} : vector<8x32xf32>, vector<32x32xf32>, vector<8x32xf32> -> vector<8x32xf32>
    %362 = vector.extract_strided_slice %247 {offsets = [0, 64], sizes = [32, 32], strides = [1, 1]} : vector<32x96xf32> to vector<32x32xf32>
    %cst_119 = arith.constant dense<0.000000e+00> : vector<8x32xf32>
    %363 = tpu.matmul %5, %362, %cst_119 {dimension_numbers = #tpu.dot_dimension_numbers<[1], [0], [0], [1], [0, 0, 1, 1], [], []>} : vector<8x32xf32>, vector<32x32xf32>, vector<8x32xf32> -> vector<8x32xf32>
    %364 = vector.extract_strided_slice %359 {offsets = [0, 0], sizes = [8, 8], strides = [1, 1]} : vector<8x32xf32> to vector<8x8xf32>
    %365 = vector.extract_strided_slice %361 {offsets = [0, 0], sizes = [8, 8], strides = [1, 1]} : vector<8x32xf32> to vector<8x8xf32>
    %366 = vector.extract_strided_slice %363 {offsets = [0, 0], sizes = [8, 8], strides = [1, 1]} : vector<8x32xf32> to vector<8x8xf32>
    %cst_120 = arith.constant dense<0.000000e+00> : vector<8x8xf32>
    %367 = tpu.matmul %364, %365, %cst_120 {dimension_numbers = #tpu.dot_dimension_numbers<[1], [1], [0], [0], [0, 0, 1, 0], [], []>} : vector<8x8xf32>, vector<8x8xf32>, vector<8x8xf32> -> vector<8x8xf32>
    %cst_121 = arith.constant dense<0xFF800000> : vector<8xf32>
    %368 = vector.multi_reduction <maximumf>, %367, %cst_121 [1] : vector<8x8xf32> to vector<8xf32>
    %369 = vector.shape_cast %368 : vector<8xf32> to vector<8x1xf32>
    %370 = vector.broadcast %369 : vector<8x1xf32> to vector<8x8xf32>
    %371 = arith.subf %367, %370 : vector<8x8xf32>
    %372 = math.exp %371 : vector<8x8xf32>
    %cst_122 = arith.constant dense<0.000000e+00> : vector<8xf32>
    %373 = vector.multi_reduction <add>, %372, %cst_122 [1] : vector<8x8xf32> to vector<8xf32>
    %374 = vector.shape_cast %373 : vector<8xf32> to vector<8x1xf32>
    %375 = tpu.reciprocal %374 {approx = true} : vector<8x1xf32> -> vector<8x1xf32>
    %376 = vector.broadcast %375 : vector<8x1xf32> to vector<8x8xf32>
    %377 = arith.mulf %372, %376 : vector<8x8xf32>
    %cst_123 = arith.constant dense<0.000000e+00> : vector<8x8xf32>
    %378 = tpu.matmul %377, %366, %cst_123 {dimension_numbers = #tpu.dot_dimension_numbers<[1], [0], [0], [1], [0, 0, 1, 1], [], []>} : vector<8x8xf32>, vector<8x8xf32>, vector<8x8xf32> -> vector<8x8xf32>
    %379 = vector.extract_strided_slice %359 {offsets = [0, 8], sizes = [8, 8], strides = [1, 1]} : vector<8x32xf32> to vector<8x8xf32>
    %380 = vector.extract_strided_slice %361 {offsets = [0, 8], sizes = [8, 8], strides = [1, 1]} : vector<8x32xf32> to vector<8x8xf32>
    %381 = vector.extract_strided_slice %363 {offsets = [0, 8], sizes = [8, 8], strides = [1, 1]} : vector<8x32xf32> to vector<8x8xf32>
    %cst_124 = arith.constant dense<0.000000e+00> : vector<8x8xf32>
    %382 = tpu.matmul %379, %380, %cst_124 {dimension_numbers = #tpu.dot_dimension_numbers<[1], [1], [0], [0], [0, 0, 1, 0], [], []>} : vector<8x8xf32>, vector<8x8xf32>, vector<8x8xf32> -> vector<8x8xf32>
    %cst_125 = arith.constant dense<0xFF800000> : vector<8xf32>
    %383 = vector.multi_reduction <maximumf>, %382, %cst_125 [1] : vector<8x8xf32> to vector<8xf32>
    %384 = vector.shape_cast %383 : vector<8xf32> to vector<8x1xf32>
    %385 = vector.broadcast %384 : vector<8x1xf32> to vector<8x8xf32>
    %386 = arith.subf %382, %385 : vector<8x8xf32>
    %387 = math.exp %386 : vector<8x8xf32>
    %cst_126 = arith.constant dense<0.000000e+00> : vector<8xf32>
    %388 = vector.multi_reduction <add>, %387, %cst_126 [1] : vector<8x8xf32> to vector<8xf32>
    %389 = vector.shape_cast %388 : vector<8xf32> to vector<8x1xf32>
    %390 = tpu.reciprocal %389 {approx = true} : vector<8x1xf32> -> vector<8x1xf32>
    %391 = vector.broadcast %390 : vector<8x1xf32> to vector<8x8xf32>
    %392 = arith.mulf %387, %391 : vector<8x8xf32>
    %cst_127 = arith.constant dense<0.000000e+00> : vector<8x8xf32>
    %393 = tpu.matmul %392, %381, %cst_127 {dimension_numbers = #tpu.dot_dimension_numbers<[1], [0], [0], [1], [0, 0, 1, 1], [], []>} : vector<8x8xf32>, vector<8x8xf32>, vector<8x8xf32> -> vector<8x8xf32>
    %394 = vector.extract_strided_slice %359 {offsets = [0, 16], sizes = [8, 8], strides = [1, 1]} : vector<8x32xf32> to vector<8x8xf32>
    %395 = vector.extract_strided_slice %361 {offsets = [0, 16], sizes = [8, 8], strides = [1, 1]} : vector<8x32xf32> to vector<8x8xf32>
    %396 = vector.extract_strided_slice %363 {offsets = [0, 16], sizes = [8, 8], strides = [1, 1]} : vector<8x32xf32> to vector<8x8xf32>
    %cst_128 = arith.constant dense<0.000000e+00> : vector<8x8xf32>
    %397 = tpu.matmul %394, %395, %cst_128 {dimension_numbers = #tpu.dot_dimension_numbers<[1], [1], [0], [0], [0, 0, 1, 0], [], []>} : vector<8x8xf32>, vector<8x8xf32>, vector<8x8xf32> -> vector<8x8xf32>
    %cst_129 = arith.constant dense<0xFF800000> : vector<8xf32>
    %398 = vector.multi_reduction <maximumf>, %397, %cst_129 [1] : vector<8x8xf32> to vector<8xf32>
    %399 = vector.shape_cast %398 : vector<8xf32> to vector<8x1xf32>
    %400 = vector.broadcast %399 : vector<8x1xf32> to vector<8x8xf32>
    %401 = arith.subf %397, %400 : vector<8x8xf32>
    %402 = math.exp %401 : vector<8x8xf32>
    %cst_130 = arith.constant dense<0.000000e+00> : vector<8xf32>
    %403 = vector.multi_reduction <add>, %402, %cst_130 [1] : vector<8x8xf32> to vector<8xf32>
    %404 = vector.shape_cast %403 : vector<8xf32> to vector<8x1xf32>
    %405 = tpu.reciprocal %404 {approx = true} : vector<8x1xf32> -> vector<8x1xf32>
    %406 = vector.broadcast %405 : vector<8x1xf32> to vector<8x8xf32>
    %407 = arith.mulf %402, %406 : vector<8x8xf32>
    %cst_131 = arith.constant dense<0.000000e+00> : vector<8x8xf32>
    %408 = tpu.matmul %407, %396, %cst_131 {dimension_numbers = #tpu.dot_dimension_numbers<[1], [0], [0], [1], [0, 0, 1, 1], [], []>} : vector<8x8xf32>, vector<8x8xf32>, vector<8x8xf32> -> vector<8x8xf32>
    %409 = vector.extract_strided_slice %359 {offsets = [0, 24], sizes = [8, 8], strides = [1, 1]} : vector<8x32xf32> to vector<8x8xf32>
    %410 = vector.extract_strided_slice %361 {offsets = [0, 24], sizes = [8, 8], strides = [1, 1]} : vector<8x32xf32> to vector<8x8xf32>
    %411 = vector.extract_strided_slice %363 {offsets = [0, 24], sizes = [8, 8], strides = [1, 1]} : vector<8x32xf32> to vector<8x8xf32>
    %cst_132 = arith.constant dense<0.000000e+00> : vector<8x8xf32>
    %412 = tpu.matmul %409, %410, %cst_132 {dimension_numbers = #tpu.dot_dimension_numbers<[1], [1], [0], [0], [0, 0, 1, 0], [], []>} : vector<8x8xf32>, vector<8x8xf32>, vector<8x8xf32> -> vector<8x8xf32>
    %cst_133 = arith.constant dense<0xFF800000> : vector<8xf32>
    %413 = vector.multi_reduction <maximumf>, %412, %cst_133 [1] : vector<8x8xf32> to vector<8xf32>
    %414 = vector.shape_cast %413 : vector<8xf32> to vector<8x1xf32>
    %415 = vector.broadcast %414 : vector<8x1xf32> to vector<8x8xf32>
    %416 = arith.subf %412, %415 : vector<8x8xf32>
    %417 = math.exp %416 : vector<8x8xf32>
    %cst_134 = arith.constant dense<0.000000e+00> : vector<8xf32>
    %418 = vector.multi_reduction <add>, %417, %cst_134 [1] : vector<8x8xf32> to vector<8xf32>
    %419 = vector.shape_cast %418 : vector<8xf32> to vector<8x1xf32>
    %420 = tpu.reciprocal %419 {approx = true} : vector<8x1xf32> -> vector<8x1xf32>
    %421 = vector.broadcast %420 : vector<8x1xf32> to vector<8x8xf32>
    %422 = arith.mulf %417, %421 : vector<8x8xf32>
    %cst_135 = arith.constant dense<0.000000e+00> : vector<8x8xf32>
    %423 = tpu.matmul %422, %411, %cst_135 {dimension_numbers = #tpu.dot_dimension_numbers<[1], [0], [0], [1], [0, 0, 1, 1], [], []>} : vector<8x8xf32>, vector<8x8xf32>, vector<8x8xf32> -> vector<8x8xf32>
    %424 = tpu.concatenate %378, %393, %408, %423 in 1 : vector<8x8xf32>, vector<8x8xf32>, vector<8x8xf32>, vector<8x8xf32> -> vector<8x32xf32>
    %425 = arith.addf %424, %357 : vector<8x32xf32>
    %cst_136 = arith.constant dense<0.000000e+00> : vector<8xf32>
    %426 = vector.multi_reduction <add>, %425, %cst_136 [1] : vector<8x32xf32> to vector<8xf32>
    %427 = vector.shape_cast %426 : vector<8xf32> to vector<8x1xf32>
    %cst_137 = arith.constant 3.200000e+01 : f32
    %428 = vector.broadcast %cst_137 : f32 to vector<8x1xf32>
    %429 = arith.divf %427, %428 : vector<8x1xf32>
    %430 = vector.broadcast %429 : vector<8x1xf32> to vector<8x32xf32>
    %431 = arith.subf %425, %430 : vector<8x32xf32>
    %432 = arith.mulf %431, %431 : vector<8x32xf32>
    %cst_138 = arith.constant dense<0.000000e+00> : vector<8xf32>
    %433 = vector.multi_reduction <add>, %432, %cst_138 [1] : vector<8x32xf32> to vector<8xf32>
    %434 = vector.shape_cast %433 : vector<8xf32> to vector<8x1xf32>
    %cst_139 = arith.constant 3.200000e+01 : f32
    %435 = vector.broadcast %cst_139 : f32 to vector<8x1xf32>
    %436 = arith.divf %434, %435 : vector<8x1xf32>
    %437 = vector.broadcast %429 : vector<8x1xf32> to vector<8x32xf32>
    %438 = arith.subf %425, %437 : vector<8x32xf32>
    %cst_140 = arith.constant 9.99999974E-6 : f32
    %439 = vector.broadcast %cst_140 : f32 to vector<8x1xf32>
    %440 = arith.addf %436, %439 : vector<8x1xf32>
    %441 = math.rsqrt %440 : vector<8x1xf32>
    %442 = vector.broadcast %441 : vector<8x1xf32> to vector<8x32xf32>
    %443 = arith.mulf %438, %442 : vector<8x32xf32>
    %444 = vector.broadcast %256 : vector<1x32xf32> to vector<8x32xf32>
    %445 = arith.mulf %443, %444 : vector<8x32xf32>
    %446 = vector.broadcast %257 : vector<1x32xf32> to vector<8x32xf32>
    %447 = arith.addf %445, %446 : vector<8x32xf32>
    %cst_141 = arith.constant dense<0.000000e+00> : vector<8x64xf32>
    %448 = tpu.matmul %447, %249, %cst_141 {dimension_numbers = #tpu.dot_dimension_numbers<[1], [0], [0], [1], [0, 0, 1, 1], [], []>} : vector<8x32xf32>, vector<32x64xf32>, vector<8x64xf32> -> vector<8x64xf32>
    %449 = vector.broadcast %261 : vector<1x64xf32> to vector<8x64xf32>
    %450 = arith.addf %448, %449 : vector<8x64xf32>
    %cst_142 = arith.constant 0.000000e+00 : f32
    %451 = vector.broadcast %cst_142 : f32 to vector<8x64xf32>
    %452 = arith.maximumf %450, %451 : vector<8x64xf32>
    %cst_143 = arith.constant dense<0.000000e+00> : vector<8x32xf32>
    %453 = tpu.matmul %452, %251, %cst_143 {dimension_numbers = #tpu.dot_dimension_numbers<[1], [0], [0], [1], [0, 0, 1, 1], [], []>} : vector<8x64xf32>, vector<64x32xf32>, vector<8x32xf32> -> vector<8x32xf32>
    %454 = vector.broadcast %260 : vector<1x32xf32> to vector<8x32xf32>
    %455 = arith.addf %453, %454 : vector<8x32xf32>
    %456 = arith.addf %455, %447 : vector<8x32xf32>
    %cst_144 = arith.constant dense<0.000000e+00> : vector<8xf32>
    %457 = vector.multi_reduction <add>, %456, %cst_144 [1] : vector<8x32xf32> to vector<8xf32>
    %458 = vector.shape_cast %457 : vector<8xf32> to vector<8x1xf32>
    %cst_145 = arith.constant 3.200000e+01 : f32
    %459 = vector.broadcast %cst_145 : f32 to vector<8x1xf32>
    %460 = arith.divf %458, %459 : vector<8x1xf32>
    %461 = vector.broadcast %460 : vector<8x1xf32> to vector<8x32xf32>
    %462 = arith.subf %456, %461 : vector<8x32xf32>
    %463 = arith.mulf %462, %462 : vector<8x32xf32>
    %cst_146 = arith.constant dense<0.000000e+00> : vector<8xf32>
    %464 = vector.multi_reduction <add>, %463, %cst_146 [1] : vector<8x32xf32> to vector<8xf32>
    %465 = vector.shape_cast %464 : vector<8xf32> to vector<8x1xf32>
    %cst_147 = arith.constant 3.200000e+01 : f32
    %466 = vector.broadcast %cst_147 : f32 to vector<8x1xf32>
    %467 = arith.divf %465, %466 : vector<8x1xf32>
    %468 = vector.broadcast %460 : vector<8x1xf32> to vector<8x32xf32>
    %469 = arith.subf %456, %468 : vector<8x32xf32>
    %cst_148 = arith.constant 9.99999974E-6 : f32
    %470 = vector.broadcast %cst_148 : f32 to vector<8x1xf32>
    %471 = arith.addf %467, %470 : vector<8x1xf32>
    %472 = math.rsqrt %471 : vector<8x1xf32>
    %473 = vector.broadcast %472 : vector<8x1xf32> to vector<8x32xf32>
    %474 = arith.mulf %469, %473 : vector<8x32xf32>
    %475 = vector.broadcast %258 : vector<1x32xf32> to vector<8x32xf32>
    %476 = arith.mulf %474, %475 : vector<8x32xf32>
    %477 = vector.broadcast %259 : vector<1x32xf32> to vector<8x32xf32>
    %478 = arith.addf %476, %477 : vector<8x32xf32>
    %c0_149 = arith.constant 0 : index
    %c0_150 = arith.constant 0 : index
    %479 = vector.load %arg8[%c0_149, %c0_150] : memref<32x128xf32, #tpu.memory_space<vmem>>, vector<32x128xf32>
    %cst_151 = arith.constant dense<0.000000e+00> : vector<8x128xf32>
    %480 = tpu.matmul %478, %479, %cst_151 {dimension_numbers = #tpu.dot_dimension_numbers<[1], [0], [0], [1], [0, 0, 1, 1], [], []>} : vector<8x32xf32>, vector<32x128xf32>, vector<8x128xf32> -> vector<8x128xf32>
    %c0_152 = arith.constant 0 : index
    %c0_153 = arith.constant 0 : index
    %481 = vector.load %arg9[%c0_152, %c0_153] : memref<1x128xf32, #tpu.memory_space<vmem>>, vector<1x128xf32>
    %482 = vector.broadcast %481 : vector<1x128xf32> to vector<8x128xf32>
    %483 = arith.addf %480, %482 : vector<8x128xf32>
    %c0_154 = arith.constant 0 : index
    %c0_155 = arith.constant 0 : index
    %c0_156 = arith.constant 0 : index
    %484 = vector.load %arg10[%c0_154, %c0_155, %c0_156] : memref<1x8x128xf32, #tpu.memory_space<vmem>>, vector<1x8x128xf32>
    %485 = vector.shape_cast %484 : vector<1x8x128xf32> to vector<8x128xf32>
    %486 = vector.shape_cast %483 : vector<8x128xf32> to vector<1x8x128xf32>
    tpu.vector_store %arg10[%c0_154, %c0_155, %c0_156], %486 {strides = array<i32>} : memref<1x8x128xf32, #tpu.memory_space<vmem>>, vector<1x8x128xf32>,
    return
  }
  func.func @transform_0(%arg0: i32) -> (i32, i32, i32) {
    %c0_i32 = arith.constant 0 : i32
    %c0_i32_0 = arith.constant 0 : i32
    %c0_i32_1 = arith.constant 0 : i32
    return %arg0, %c0_i32, %c0_i32_0 : i32, i32, i32
  }
  func.func @transform_1(%arg0: i32) -> (i32, i32, i32) {
    %c0_i32 = arith.constant 0 : i32
    %c0_i32_0 = arith.constant 0 : i32
    %c0_i32_1 = arith.constant 0 : i32
    return %arg0, %c0_i32, %c0_i32_0 : i32, i32, i32
  }
  func.func @transform_2(%arg0: i32) -> (i32, i32, i32) {
    %c0_i32 = arith.constant 0 : i32
    %c0_i32_0 = arith.constant 0 : i32
    %c0_i32_1 = arith.constant 0 : i32
    %c0_i32_2 = arith.constant 0 : i32
    return %c0_i32, %c0_i32_0, %c0_i32_1 : i32, i32, i32
  }
  func.func @transform_3(%arg0: i32) -> (i32, i32, i32) {
    %c0_i32 = arith.constant 0 : i32
    %c0_i32_0 = arith.constant 0 : i32
    %c0_i32_1 = arith.constant 0 : i32
    %c0_i32_2 = arith.constant 0 : i32
    return %c0_i32, %c0_i32_0, %c0_i32_1 : i32, i32, i32
  }
  func.func @transform_4(%arg0: i32) -> (i32, i32, i32) {
    %c0_i32 = arith.constant 0 : i32
    %c0_i32_0 = arith.constant 0 : i32
    %c0_i32_1 = arith.constant 0 : i32
    %c0_i32_2 = arith.constant 0 : i32
    return %c0_i32, %c0_i32_0, %c0_i32_1 : i32, i32, i32
  }
  func.func @transform_5(%arg0: i32) -> (i32, i32, i32) {
    %c0_i32 = arith.constant 0 : i32
    %c0_i32_0 = arith.constant 0 : i32
    %c0_i32_1 = arith.constant 0 : i32
    %c0_i32_2 = arith.constant 0 : i32
    return %c0_i32, %c0_i32_0, %c0_i32_1 : i32, i32, i32
  }
  func.func @transform_6(%arg0: i32) -> (i32, i32, i32) {
    %c0_i32 = arith.constant 0 : i32
    %c0_i32_0 = arith.constant 0 : i32
    %c0_i32_1 = arith.constant 0 : i32
    %c0_i32_2 = arith.constant 0 : i32
    return %c0_i32, %c0_i32_0, %c0_i32_1 : i32, i32, i32
  }
  func.func @transform_7(%arg0: i32) -> (i32, i32) {
    %c0_i32 = arith.constant 0 : i32
    %c0_i32_0 = arith.constant 0 : i32
    %c0_i32_1 = arith.constant 0 : i32
    return %c0_i32, %c0_i32_0 : i32, i32
  }
  func.func @transform_8(%arg0: i32) -> (i32, i32) {
    %c0_i32 = arith.constant 0 : i32
    %c0_i32_0 = arith.constant 0 : i32
    %c0_i32_1 = arith.constant 0 : i32
    return %c0_i32, %c0_i32_0 : i32, i32
  }
  func.func @transform_9(%arg0: i32) -> (i32, i32, i32) {
    %c0_i32 = arith.constant 0 : i32
    %c0_i32_0 = arith.constant 0 : i32
    %c0_i32_1 = arith.constant 0 : i32
    return %arg0, %c0_i32, %c0_i32_0 : i32, i32, i32
  }
}

</mosaic_0001>

<bundles_post_ra>
// kernel: tpu_custom_call.1
= control target key start
LH: loop header
LB: loop body
LE: loop exit
PB: predicated region body
PF: predicated region fallthrough
CT: control target
= control target key end

     0   :  { %s6316_s0 = inlined_call_operand.hbm [shape: f32[2,8,32], index: 0, kind: input, shape index: {}]   ;;  %s6317_s1 = inlined_call_operand.hbm [shape: f32[2,8,64], index: 1, kind: input, shape index: {}]   ;;  %s6318_s2 = inlined_call_operand.vmem [shape: f32[2,32,96], index: 2, kind: input, shape index: {}]   ;;  %s6319_s3 = inlined_call_operand.vmem [shape: f32[2,32,96], index: 3, kind: input, shape index: {}]   ;;  %s6320_s4 = inlined_call_operand.vmem [shape: f32[2,32,64], index: 4, kind: input, shape index: {}]   ;;  %s6321_s5 = inlined_call_operand.vmem [shape: f32[2,64,32], index: 5, kind: input, shape index: {}]   ;;  %s6322_s6 = inlined_call_operand.hbm [shape: f32[2,8,64], index: 6, kind: input, shape index: {}]   ;;  %s6323_s7 = inlined_call_operand.hbm [shape: f32[32,128], index: 7, kind: input, shape index: {}]   ;;  %s6324_s8 = inlined_call_operand.vmem [shape: f32[1,128], index: 8, kind: input, shape index: {}]   ;;  %s6325_s9 = inlined_call_operand.hbm [shape: f32[2,8,128], index: 9, kind: output, shape index: {}]  }
   0x1   :  { %6343 = sst [smem:[#allocation20_spill]] %s6322_s6 }
   0x2   :  { %6344 = sst [smem:[#allocation21_spill]] %s6323_s7 }
   0x3   :  { %14 = vsyncpa [#allocation3], 0 }
   0x4   :  { %16 = vsyncpa [#allocation3 + $0x1], 0 }
   0x5   :  { %17 = vsyncpa [#allocation6], 0 }
   0x6   :  { %19 = vsyncpa [#allocation6 + $0x1], 0 }
   0x7   :  { %20 = vsyncpa [#allocation9], 0 }
   0x8   :  { %21 = vsyncpa [#allocation4], 0 }
   0x9   :  { %23 = vsyncpa [#allocation4 + $0x1], 0  ;;  %s5454_s30 = smov 0   ;;  %s5456_s10 = smov 0  }
   0xa   :  { %s5458_s11 = smov 0   ;;  %s5460_s12 = smov 0  }
   0xb LB: > { %6345 = sst [smem:[#allocation16_spill]] %s5375_s11  ;;  %s5475_s13 = sadd.s32 4294967295, %s5379_s12   ;;  %s5379_s12 = sphi %s5460_s12, %s6376_s12   ;;  %s5375_s11 = sphi %s5458_s11, %s6378_s11   ;;  %s5371_s10 = sphi %s5456_s10, %s6380_s10   ;;  %s5367_s30 = sphi %s5454_s30, %s6379_s30  }
   0xc   : > { %s4472_s14 = sadd.s32 4294967294, %s5379_s12   ;;  %p49_p0 = scmp.ne.s32.totalorder %s5371_s10, %s5367_s30 }
   0xd   : > { %p6326_p1 = scmp.eq.s32.totalorder %s5475_s13, 0  ;;  %p252_p3 = scmp.eq.s32.totalorder %s4472_s14, 1 }
   0xe   : > { %p4473_p5 = scmp.ge.s32.totalorder %s5379_s12, 1  ;;  %p259_p7 = scmp.lt.s32.totalorder %s5379_s12, 3 }
   0xf   : > { %p5484_p4 = por %p6326_p1, %p49_p0  ;;  %p5489_p6 = por %p252_p3, %p49_p0 }
  0x10   : > { %p5494_p8 = pnand %p4473_p5, %p259_p7  ;;  %s5381_s18 = smov [#allocation7]  }
  0x11   : > { %s6346_s15 = scalar_select %p5484_p4, 1, 0 }
  0x12   : > { %s6347_s16 = scalar_select %p5489_p6, 1, 0 }
  0x13   : > { %s6349_s17 = scalar_select %p5494_p8, 1, 0 }
  0x14   : > { %6348 = sst [smem:[#allocation17_spill]] %s6347_s16  ;;  %s283_s19 = sshll.u32 %s5381_s18, 4  ;;  %s284_s19 = int_to_ptr.vmem [resolvable:$true] %s283_s19 }
  0x15   : > { %p5043_p9 = pneg %p5494_p8  ;;  %s5382_s21 = smov [#allocation8]  }
  0x16   : > { %s296_s22 = sshll.u32 %s5382_s21, 4  ;;  %s5206_s23 = scalar_lea.vmem %s284_s19, 256  ;;  %s297_s22 = int_to_ptr.vmem [resolvable:$true] %s296_s22 }
  0x17   : > { %p5503_p11 = pnand %p5043_p9, %p6326_p1  ;;  %p5207_p13 = scmp.ne.s32.totalorder %s284_s19, %s5206_s23 }
  0x18   : > { %p5214_p5 = scmp.lt.s32.totalorder %s284_s19, %s284_s19  ;;  %p5215_p7 = scmp.lt.s32.totalorder %s5206_s23, %s5206_s23 }
  0x19   : > { %p5197_p12 = pneg %p5503_p11 }
  0x1a   : > { %p5216_p10 = por %p5215_p7, %p5214_p5 }
  0x1b   : > { %p5209_p0 = pnand %p5207_p13, %p5197_p12 }
  0x1d   : > { %p5210_p3 = pneg %p5209_p0 }
  0x1f   : > { %p5217_p9 = pnand %p5216_p10, %p5210_p3 }
  0x21   : > { %5220 = shalt.err (!%p5217_p9)
}
  0x22   : > { %s5383_s24 = smov 128   ;;  %s5384_s25 = smov 8  }
  0x23   : > { %s6351_s6 = sld [smem:[#allocation20_spill]]  ;;  %s5232_s28 = scalar_lea.vmem %s297_s22, 512 }
  0x24   : > { %p5233_p1 = scmp.ne.s32.totalorder %s297_s22, %s5232_s28  ;;  %p5240_p2 = scmp.lt.s32.totalorder %s297_s22, %s297_s22 }
  0x25   : > { %p5241_p6 = scmp.lt.s32.totalorder %s5232_s28, %s5232_s28 }
  0x26   : > { %p5235_p13 = pnand %p5233_p1, %p5197_p12 }
  0x27   : > { %p5242_p5 = por %p5241_p6, %p5240_p2 }
  0x28   : > { %p5236_p0 = pneg %p5235_p13 }
  0x29   : > { %5046 = dma.hbm_to_vmem [thread:$0]  (!%p5503_p11), %s6351_s6, 256, %s284_s19, [#allocation6], %s5383_s24, %s5383_s24, %s5384_s25  }
  0x2a   : > { %p5243_p10 = pnand %p5242_p5, %p5236_p0 }
  0x2c   : > { %5246 = shalt.err (!%p5243_p10)
}
  0x2d   : > { %s6352_s7 = sld [smem:[#allocation21_spill]]  ;;  %s5526_s18 = sadd.s32 1, %s5379_s12  }
  0x2e   : > { %6353 = sst [smem:[#allocation18_spill]] %s5526_s18  ;;  %s36_s19 = sadd.s32 1, %s5375_s11 }
  0x2f   : > { %s33_s20 = ssub.s32 %s5379_s12, %s5526_s18  ;;  %p43_p1 = scmp.ne.s32.totalorder %s5375_s11, %s5371_s10 }
  0x30   : > { %p34_p2 = scmp.eq.s32.totalorder %s33_s20, 0  ;;  %p44_p6 = scmp.eq.s32.totalorder %s5379_s12, 0 }
  0x31   : > { %p6354_p12 = scmp.eq.s32.totalorder %s5475_s13, 1  ;;  %p5063_p7 = scmp.lt.s32.totalorder %s5379_s12, 2 }
  0x32   : > { %s5542_s23 = scalar_select %p34_p2, %s5375_s11, %s36_s19  }
  0x33   : > { %5049 = dma.hbm_to_vmem [thread:$0]  (!%p5503_p11), %s6352_s7, 512, %s297_s22, [#allocation9], %s5383_s24, %s5383_s24, %s5384_s25  }
  0x34   : > { %p5536_p3 = por %p6354_p12, %p43_p1  ;;  %6356 = sst [smem:[#allocation19_spill]] %s5542_s23 }
  0x35   : > { %p45_p9 = por %p44_p6, %p43_p1  ;;  %s313_s26 = sand.u32 1, %s5375_s11  }
  0x36   : > { %s6355_s21 = scalar_select %p5536_p3, 1, 0 }
  0x37   : > { %s5545_s22 = sshll.u32 %s313_s26, 3  ;;  %s4478_s24 = sshll.u32 %s5379_s12, 7 }
  0x38   : > { %s5551_s28 = scalar_lea.hbm %s6316_s0, %s4478_s24  ;;  %s317_s29 = scalar_lea.vmem [#allocation2], %s5545_s22 }
  0x39   : > { %s324_s14 = sshll.u32 %s317_s29, 4  ;;  %p5556_p11 = pnand %p5063_p7, %p45_p9  ;;  %s5554_s14 = int_to_ptr.vmem [resolvable:$true] %s324_s14 }
  0x3a   : > { %s5563_s7 = scalar_lea.hbm %s6317_s1, %s4478_s24  ;;  %s331_s25 = sand.u32 1, %s5379_s12  }
  0x3b   : > { %s314_s27 = scalar_lea.sflag [#allocation3], %s313_s26  ;;  %s5247_s23 = scalar_lea.hbm %s5551_s28, 128 }
  0x3c   : > { %p5248_p13 = scmp.ne.s32.totalorder %s5551_s28, %s5247_s23  ;;  %p5249_p0 = pneg %p5556_p11 }
  0x3d   : > { %s5252_s18 = scalar_lea.hbm %s6316_s0, 256  ;;  %p5253_p1 = scmp.lt.s32.totalorder %s5551_s28, %s6316_s0 }
  0x3e   : > { %p5250_p5 = pnand %p5249_p0, %p5248_p13  ;;  %p5254_p2 = scmp.lt.s32.totalorder %s5252_s18, %s5247_s23 }
  0x40   : > { %p5251_p10 = pneg %p5250_p5  ;;  %p5255_p6 = por %p5254_p2, %p5253_p1 }
  0x42   : > { %p5256_p12 = pnand %p5255_p6, %p5251_p10 }
  0x44   : > { %5259 = shalt.err (!%p5256_p12)
}
  0x45   : > { %s5260_s26 = scalar_lea.vmem %s5554_s14, 128  ;;  %s5385_s11 = smov [#allocation2]  }
  0x46   : > { %p5261_p7 = scmp.ne.s32.totalorder %s5554_s14, %s5260_s26  ;;  %s5265_s24 = sshll.u32 %s5385_s11, 4  ;;  %s5266_s24 = int_to_ptr.vmem [resolvable:$false] %s5265_s24 }
  0x47   : > { %s5267_s20 = scalar_lea.vmem %s5266_s24, 256  ;;  %p5268_p5 = scmp.lt.s32.totalorder %s5554_s14, %s5266_s24 }
  0x48   : > { %p5263_p9 = pnand %p5261_p7, %p5249_p0  ;;  %p5269_p3 = scmp.lt.s32.totalorder %s5267_s20, %s5260_s26 }
  0x4a   : > { %p5264_p13 = pneg %p5263_p9  ;;  %p5270_p4 = por %p5269_p3, %p5268_p5 }
  0x4c   : > { %p5271_p1 = pnand %p5270_p4, %p5264_p13 }
  0x4e   : > { %5274 = shalt.err (!%p5271_p1)
}
  0x4f   : > { %5053 = dma.hbm_to_vmem [thread:$0]  (!%p5556_p11), %s5551_s28, 128, %s5554_s14, %s314_s27  }
  0x50   : > { %s335_s16 = scalar_lea.vmem [#allocation5], %s5545_s22  ;;  %s332_s23 = scalar_lea.sflag [#allocation6], %s331_s25 }
  0x51   : > { %s342_s18 = sshll.u32 %s335_s16, 4  ;;  %s5275_s29 = scalar_lea.hbm %s5563_s7, 128  ;;  %s343_s18 = int_to_ptr.vmem [resolvable:$true] %s342_s18 }
  0x52   : > { %p5276_p3 = scmp.ne.s32.totalorder %s5563_s7, %s5275_s29  ;;  %s5280_s11 = scalar_lea.hbm %s6317_s1, 256 }
  0x53   : > { %p5281_p2 = scmp.lt.s32.totalorder %s5563_s7, %s6317_s1  ;;  %p5282_p6 = scmp.lt.s32.totalorder %s5280_s11, %s5275_s29 }
  0x54   : > { %p5278_p4 = pnand %p5276_p3, %p5249_p0 }
  0x55   : > { %p5283_p12 = por %p5282_p6, %p5281_p2 }
  0x56   : > { %p5279_p10 = pneg %p5278_p4 }
  0x58   : > { %p5284_p7 = pnand %p5283_p12, %p5279_p10 }
  0x5a   : > { %5287 = shalt.err (!%p5284_p7)
}
  0x5b   : > { %s5288_s22 = scalar_lea.vmem %s343_s18, 128  ;;  %s5386_s28 = smov [#allocation5]  }
  0x5c   : > { %p5289_p9 = scmp.ne.s32.totalorder %s343_s18, %s5288_s22  ;;  %s5293_s14 = sshll.u32 %s5386_s28, 4  ;;  %s5294_s14 = int_to_ptr.vmem [resolvable:$false] %s5293_s14 }
  0x5d   : > { %s5295_s25 = scalar_lea.vmem %s5294_s14, 256  ;;  %p5296_p1 = scmp.lt.s32.totalorder %s343_s18, %s5294_s14 }
  0x5e   : > { %p5291_p13 = pnand %p5289_p9, %p5249_p0  ;;  %p5297_p3 = scmp.lt.s32.totalorder %s5295_s25, %s5288_s22 }
  0x60   : > { %p5292_p5 = pneg %p5291_p13  ;;  %p5298_p4 = por %p5297_p3, %p5296_p1 }
  0x62   : > { %p5299_p8 = pnand %p5298_p4, %p5292_p5 }
  0x64   : > { %5302 = shalt.err (!%p5299_p8)
}
  0x65   : > { %5056 = dma.hbm_to_vmem [thread:$0]  (!%p5556_p11), %s5563_s7, 128, %s343_s18, %s332_s23  }
  0x66   : > { %p6358_p10 = scmp.ne.s32.totalorder %s6349_s17, 0 }
  0x67   : > { %s5614_s27 = sand.u32 (!%p6358_p10), 1, %s5371_s10   ;;  %p6359_p0 = scmp.ne.s32.totalorder (!%p6358_p10), %s6346_s15, 0 }
  0x68   : > { %351 = sbr.rel (%p6358_p10) target bundleno = 7652 (0x1de4), region = 56  ;;  %s5617_s16 = sshll.u32 (!%p6358_p10), %s5614_s27, 3 }
  0x69   : > { %s354_s29 = scalar_lea.sflag (!%p6358_p10), [#allocation3], %s5614_s27  ;;  %s357_s6 = scalar_lea.vmem (!%p6358_p10), [#allocation2], %s5617_s16 }
  0x6d   : > { %5346 = dma.done.wait (%p6359_p0), %s354_s29, 128  }
  0x6e   : > { %5348 = vsyncadd (%p6359_p0), %s354_s29, 4294967168  ;;  %s362_s7 = sand.u32 1, %s5475_s13   ;;  %s366_s19 = scalar_lea.vmem [#allocation5], %s5617_s16 }
  0x6f   : > { %s363_s17 = scalar_lea.sflag [#allocation6], %s362_s7 }
  0x70   : > { %5350 = dma.done.wait (%p6359_p0), %s363_s17, 128  }
  0x71   : > { %5352 = vsyncadd (%p6359_p0), %s363_s17, 4294967168  ;;  %p6360_p8 = scmp.eq.s32.totalorder %s5475_s13, 0 }
  0x73   : > { %5354 = dma.done.wait (%p6360_p8), [#allocation6], 256   ;;  %p6361_p11 = pmov %p6360_p8 }
  0x74   : > { %p6362_p2 = pmov %p6360_p8 }
  0x75   : > { %5356 = vsyncadd (%p6361_p11), [#allocation6], 4294967040 }
  0x76   : > { %5358 = dma.done.wait (%p6362_p2), [#allocation9], 512   ;;  %p6363_p6 = pmov %p6362_p2 }
  0x77   : > { %v5387_v0 = vmov 0.0   ;;  %vm5388_vm0 = vmmov 0   ;;  %v424_v1 = vld [vmem:[%s6318_s2 + $0x18] sm:$0xff]  ;;  %v423_v2 = vld [vmem:[%s6318_s2 + $0x10] sm:$0xff]  ;;  %v422_v3 = vld [vmem:[%s6318_s2 + $0x8] sm:$0xff]  ;;  %vm442_vm1 = vcmask 261120   ;;  %v416_v15 = vlaneseq }
  0x78   : > { %5360 = vsyncadd (%p6363_p6), [#allocation9], 4294966784  ;;  %4710 = vmatprep.subr.mxu0 %v5387_v0  ;;  %4718 = vmatprep.mubr.msk.f32.mxu0 %vm5388_vm0, %v5387_v0  ;;  %v421_v4 = vld [vmem:[%s6318_s2] sm:$0xff]  ;;  %s5389_s28 = smov 120   ;;  %s5390_s14 = smov 96   ;;  %vm519_vm2 = vcmask 64512  }
  0x79   : > { %4721 = vmatprep.subr.mxu1 %v5387_v0  ;;  %4723 = vmatprep.mubr.msk.f32.mxu1 %vm5388_vm0, %v5387_v0  ;;  %v5659_v5 = vld [vmem:[%s357_s6] sm:$0xff]  ;;  %s5391_s25 = smov 80   ;;  %s5392_s29 = smov 88   ;;  %v5704_v16 = vshrl.u32 %v416_v15, 7  ;;  %v419_v17 = vand.u32 127, %v416_v15  ;;  %vm1193_vm4 = vcmask 130048  }
  0x7a   : > { %4711 = vmatpush3.msra.mxu0 %v424_v1  ;;  %s5393_s6 = smov 72   ;;  %s5394_s7 = smov 112   ;;  %vm1195_vm5 = vcmask 195584   ;;  %vm2247_vm6 = vcmask 523264  }
  0x7b   : > { %4712 = vmatprep.subr.mxu0 %v5387_v0  ;;  %s5395_s17 = smov 104   ;;  %vm5707_vm3 = vcmp.le.s32.totalorder %v419_v17, %v5704_v16  ;;  %s6334_s15 = smov 56  }
  0x7c   : > { %4713 = vmatpush3.msra.mxu0 %v423_v2  ;;  %s5397_s18 = smov 64   ;;  %s6336_s23 = smov 48  }
  0x7d   : > { %4714 = vmatprep.subr.mxu0 %v5387_v0  ;;  %s6335_s26 = smov 40   ;;  %s6341_s11 = smov 8  }
  0x7e   : > { %4715 = vmatpush3.msra.mxu0 %v422_v3  ;;  %s6339_s22 = smov 16   ;;  %p6372_p7 = scmp.ne.s32.totalorder %s6355_s21, 0 }
  0x7f   : > { %4716 = vmatprep.subr.mxu0 %v5387_v0 }
  0x80   : > { %4717 = vmatpush3.msra.mxu0 %v421_v4 }
  0x81   : > { %4719 = vmatmul.mubr.msk.f32.vlgmr.msra.gmra.mxu0 %vm442_vm1, %v5659_v5  ;;  %4731 = vmatprep.subr.mxu0 %v5387_v0 }
  0x82   : > { %4733 = vmatprep.mubr.msk.f32.mxu0 %vm5388_vm0, %v5387_v0 }
 0x141   : > { %v5667_v6 = vpop.f32.mrf.mxu0 }
 0x142   : > { %682 = vrot.lane.b32.xlu1 %v5667_v6, %s5389_s28  ;;  %517 = vrot.lane.b32.xlu0 %v5667_v6, %s5390_s14 }
 0x143   : > { %v4720_v7 = vpop.f32.mrf.mxu0 }
 0x146   : > { %850 = vrot.lane.b32.xlu1 %v5667_v6, %s5391_s25  ;;  %684 = vrot.lane.b32.xlu0 %v5667_v6, %s5392_s29 }
 0x14a   : > { %1016 = vrot.lane.b32.xlu1 %v5667_v6, %s5393_s6  ;;  %848 = vrot.lane.b32.xlu0 %v5667_v6, %s5394_s7 }
 0x14e   : > { %1014 = vrot.lane.b32.xlu0 %v5667_v6, %s5395_s17 }
 0x1b4   : > { %v683_v8 = vpop.permute.xlu1 %682  ;;  %v518_v9 = vpop.permute.xlu0 %517 }
 0x1b5   : > { %4722 = vmatpush3.xpose.msk.msra.mxu1 %vm519_vm2, %v518_v9 }
 0x1b6   : > { %4726 = vmatprep.subr.mxu1 %v5387_v0 }
 0x1b8   : > { %4724 = vmatmul.mubr.msk.f32.vlgmr.msra.gmra.mxu1 %vm519_vm2, %v5667_v6  ;;  %v685_v10 = vpop.permute.xlu0 %684  ;;  %v851_v11 = vpop.permute.xlu1 %850 }
 0x1b9   : > { %4732 = vmatpush3.xpose.msk.msra.mxu0 %vm519_vm2, %v685_v10  ;;  %4728 = vmatprep.mubr.msk.f32.mxu1 %vm5388_vm0, %v5387_v0 }
 0x1ba   : > { %4741 = vmatprep.subr.mxu0 %v5387_v0 }
 0x1bc   : > { %4734 = vmatmul.mubr.msk.f32.vlgmr.msra.gmra.mxu0 %vm519_vm2, %v683_v8  ;;  %v849_v12 = vpop.permute.xlu0 %848  ;;  %v1017_v13 = vpop.permute.xlu1 %1016 }
 0x1bd   : > { %4742 = vmatpush3.xpose.msk.msra.mxu0 %vm519_vm2, %v851_v11  ;;  %4743 = vmatprep.mubr.msk.f32.mxu0 %vm5388_vm0, %v5387_v0 }
 0x1be   : > { %4751 = vmatprep.subr.mxu0 %v5387_v0 }
 0x1c0   : > { %4744 = vmatmul.mubr.msk.f32.vlgmr.msra.gmra.mxu0 %vm519_vm2, %v849_v12  ;;  %v1015_v14 = vpop.permute.xlu0 %1014 }
 0x1c1   : > { %4752 = vmatpush3.xpose.msk.msra.mxu0 %vm519_vm2, %v1017_v13  ;;  %4753 = vmatprep.mubr.msk.f32.mxu0 %vm5388_vm0, %v5387_v0  ;;  %v428_v13 = vld [vmem:[%s6319_s3 + $0x18] sm:$0xff] }
 0x1c2   : > { %4761 = vmatprep.subr.mxu0 %v5387_v0 }
 0x1c4   : > { %4754 = vmatmul.mubr.msk.f32.vlgmr.msra.gmra.mxu0 %vm519_vm2, %v1015_v14 }
 0x1c5   : > { %4769 = vmatprep.mubr.msk.f32.mxu0 %vm5388_vm0, %v5387_v0  ;;  %4762 = vmatpush3.msra.mxu0 %v428_v13 }
 0x1c6   : > { %4763 = vmatprep.subr.mxu0 %v5387_v0 }
 0x278   : > { %v590_v19 = vpop.f32.mrf.mxu1 }
 0x279   : > { %v594_v20 = vsel %vm5707_vm3, %v590_v19, 1e-19 }
 0x27a   : > { %v4725_v21 = vpop.f32.mrf.mxu1  ;;  %v595_v22 = vsel %vm519_vm2, %v594_v20, -inf }
 0x27b   : > { %596 = vmax.xlane.f32.xlu1 %v595_v22 }
 0x27c   : > { %v756_v23 = vpop.f32.mrf.mxu0 }
 0x27d   : > { %v760_v24 = vsel %vm5707_vm3, %v756_v23, 1e-19 }
 0x27e   : > { %v4735_v25 = vpop.f32.mrf.mxu0  ;;  %v761_v26 = vsel %vm519_vm2, %v760_v24, -inf }
 0x27f   : > { %762 = vmax.xlane.f32.xlu0 %v761_v26 }
 0x280   : > { %v922_v27 = vpop.f32.mrf.mxu0 }
 0x281   : > { %v926_v28 = vsel %vm5707_vm3, %v922_v27, 1e-19 }
 0x282   : > { %v4745_v29 = vpop.f32.mrf.mxu0  ;;  %v927_v30 = vsel %vm519_vm2, %v926_v28, -inf }
 0x283   : > { %928 = vmax.xlane.f32.xlu0 %v927_v30  ;;  %v426_v29 = vld [vmem:[%s6319_s3 + $0x8] sm:$0xff]  ;;  %v425_v30 = vld [vmem:[%s6319_s3] sm:$0xff] }
 0x284   : > { %v1088_v31 = vpop.f32.mrf.mxu0 }
 0x285   : > { %v1092_v32 = vsel %vm5707_vm3, %v1088_v31, 1e-19 }
 0x286   : > { %v4755_v33 = vpop.f32.mrf.mxu0  ;;  %v1093_v34 = vsel %vm519_vm2, %v1092_v32, -inf }
 0x287   : > { %1094 = vmax.xlane.f32.xlu1 %v1093_v34 }
 0x298   : > { %772 = vrot.lane.b32.xlu1 %v5667_v6, %s6334_s15  ;;  %s6337_s15 = smov 24  }
 0x304   : > { %v597_v35 = vpop.xlane.xlu1 %596 }
 0x305   : > { %v598_v36 = vsub.f32 %v594_v20, %v597_v35  ;;  %v427_v20 = vld [vmem:[%s6319_s3 + $0x10] sm:$0xff] }
 0x306   : > { %4764 = vmatpush3.msra.mxu0 %v427_v20 }
 0x307   : > { %v599_v37 = vmul.f32 1.442695, %v598_v36  ;;  %4765 = vmatprep.subr.mxu0 %v5387_v0 }
 0x308   : > { %v763_v38 = vpop.xlane.xlu0 %762  ;;  %4766 = vmatpush3.msra.mxu0 %v426_v29 }
 0x309   : > { %5119 = vpow2.f32 %v599_v37  ;;  %v764_v39 = vsub.f32 %v760_v24, %v763_v38  ;;  %4767 = vmatprep.subr.mxu0 %v5387_v0  ;;  %v5788_v38 = vld [vmem:[%s366_s19] sm:$0xff]  ;;  %s6369_s19 = smov 8  }
 0x30a   : > { %4768 = vmatpush3.msra.mxu0 %v425_v30 }
 0x30b   : > { %v765_v40 = vmul.f32 1.442695, %v764_v39  ;;  %4783 = vmatprep.subr.mxu0 %v5387_v0 }
 0x30c   : > { %v929_v50 = vpop.xlane.xlu0 %928 }
 0x30d   : > { %5121 = vpow2.f32 %v765_v40  ;;  %v930_v51 = vsub.f32 %v926_v28, %v929_v50 }
 0x30f   : > { %v931_v52 = vmul.f32 1.442695, %v930_v51 }
 0x310   : > { %v1095_v41 = vpop.xlane.xlu1 %1094 }
 0x311   : > { %v1096_v42 = vsub.f32 %v1092_v32, %v1095_v41 }
 0x313   : > { %v1097_v43 = vmul.f32 1.442695, %v1096_v42 }
 0x314   : > { %v773_v55 = vpop.permute.xlu1 %772 }
 0x315   : > { %5123 = vpow2.f32 %v1097_v43  ;;  %v1214_v43 = vsub.s32 0, %v5704_v16 }
 0x316   : > { %v5120_v44 = vpop.eup %5119  ;;  %5125 = vpow2.f32 %v931_v52 }
 0x317   : > { %v601_v45 = vsel %vm519_vm2, %v5120_v44, 0.0 }
 0x318   : > { %602 = vadd.xlane.f32.xlu0 %v601_v45  ;;  %v1219_v45 = vsub.s32 1, %v5704_v16 }
 0x31a   : > { %v5122_v46 = vpop.eup %5121 }
 0x31b   : > { %v767_v47 = vsel %vm519_vm2, %v5122_v46, 0.0 }
 0x31c   : > { %768 = vadd.xlane.f32.xlu1 %v767_v47 }
 0x322   : > { %v5124_v48 = vpop.eup %5123 }
 0x323   : > { %v1099_v49 = vsel %vm519_vm2, %v5124_v48, 0.0  ;;  %v5126_v53 = vpop.eup %5125 }
 0x324   : > { %1100 = vadd.xlane.f32.xlu1 %v1099_v49  ;;  %v933_v54 = vsel %vm519_vm2, %v5126_v53, 0.0 }
 0x32e   : > { %606 = vrot.lane.b32.xlu0 %v5667_v6, %s5397_s18 }
 0x335   : > { %938 = vrot.lane.b32.xlu1 %v5667_v6, %s6336_s23  ;;  %s6370_s23 = smov 16  }
 0x34d   : > { %934 = vadd.xlane.f32.xlu0 %v933_v54 }
 0x363   : > { %1104 = vrot.lane.b32.xlu0 %v5667_v6, %s6335_s26  ;;  %s6371_s26 = smov 24  }
 0x3a1   : > { %v603_v56 = vpop.xlane.xlu0 %602 }
 0x3a2   : > { %5127 = vrcp.f32 %v603_v56 }
 0x3a5   : > { %v607_v57 = vpop.permute.xlu0 %606  ;;  %v769_v58 = vpop.xlane.xlu1 %768 }
 0x3a6   : > { %5129 = vrcp.f32 %v769_v58  ;;  %4727 = vmatpush3.msra.mxu1 %v607_v57 }
 0x3a7   : > { %4736 = vmatprep.subr.mxu1 %v5387_v0 }
 0x3ad   : > { %v1101_v60 = vpop.xlane.xlu1 %1100 }
 0x3af   : > { %v5128_v59 = vpop.eup %5127 }
 0x3b0   : > { %v605_v61 = vmul.f32 %v5128_v59, %v5120_v44  ;;  %v5799_v44 = vld [vmem:[#allocation7] sm:$0xff] }
 0x3b1   : > { %v939_v1 = vpop.permute.xlu1 %938  ;;  %v1220_v49 = vrot.slane %v5799_v44, %v1219_v45 }
 0x3b2   : > { %4729 = vmatmul.mubr.msk.f32.vlgmr.msra.gmra.mxu1 %vm519_vm2, %v605_v61 }
 0x3b3   : > { %v5130_v62 = vpop.eup %5129  ;;  %4737 = vmatpush3.msra.mxu1 %v773_v55  ;;  %4738 = vmatprep.mubr.msk.f32.mxu1 %vm5388_vm0, %v5387_v0 }
 0x3b4   : > { %4746 = vmatprep.subr.mxu1 %v5387_v0  ;;  %v771_v63 = vmul.f32 %v5130_v62, %v5122_v46  ;;  %v1215_v46 = vrot.slane %v5799_v44, %v1214_v43 }
 0x3b6   : > { %4739 = vmatmul.mubr.msk.f32.vlgmr.msra.gmra.mxu1 %vm519_vm2, %v771_v63 }
 0x3b7   : > { %4747 = vmatpush3.msra.mxu1 %v939_v1  ;;  %4748 = vmatprep.mubr.msk.f32.mxu1 %vm5388_vm0, %v5387_v0 }
 0x3b8   : > { %4756 = vmatprep.subr.mxu1 %v5387_v0 }
 0x3d6   : > { %v935_v2 = vpop.xlane.xlu0 %934 }
 0x3d7   : > { %5131 = vrcp.f32 %v935_v2 }
 0x3d8   : > { %5133 = vrcp.f32 %v1101_v60 }
 0x3da   : > { %v1105_v7 = vpop.permute.xlu0 %1104 }
 0x3e4   : > { %v5132_v3 = vpop.eup %5131 }
 0x3e5   : > { %v937_v4 = vmul.f32 %v5132_v3, %v5126_v53  ;;  %v5134_v6 = vpop.eup %5133 }
 0x3e6   : > { %v1103_v8 = vmul.f32 %v5134_v6, %v5124_v48 }
 0x3e7   : > { %4749 = vmatmul.mubr.msk.f32.vlgmr.msra.gmra.mxu1 %vm519_vm2, %v937_v4 }
 0x3e8   : > { %4757 = vmatpush3.msra.mxu1 %v1105_v7  ;;  %4758 = vmatprep.mubr.msk.f32.mxu1 %vm5388_vm0, %v5387_v0 }
 0x3e9   : > { %4772 = vmatprep.subr.mxu1 %v5387_v0 }
 0x3eb   : > { %4759 = vmatmul.mubr.msk.f32.vlgmr.msra.gmra.mxu1 %vm519_vm2, %v1103_v8 }
 0x3ec   : > { %4780 = vmatprep.mubr.msk.f32.mxu1 %vm5388_vm0, %v5387_v0 }
 0x472   : > { %v678_v9 = vpop.f32.mrf.mxu1 }
 0x474   : > { %v4730_v10 = vpop.f32.mrf.mxu1 }
 0x476   : > { %v844_v11 = vpop.f32.mrf.mxu1 }
 0x477   : > { %1181 = vrot.lane.b32.xlu1 %v844_v11, %s6341_s11 }
 0x478   : > { %v4740_v12 = vpop.f32.mrf.mxu1 }
 0x4a7   : > { %v1010_v14 = vpop.f32.mrf.mxu1 }
 0x4a8   : > { %1185 = vrot.lane.b32.xlu0 %v1010_v14, %s6339_s22 }
 0x4a9   : > { %v4750_v15 = vpop.f32.mrf.mxu1 }
 0x4ab   : > { %v1176_v17 = vpop.f32.mrf.mxu1 }
 0x4ac   : > { %1189 = vrot.lane.b32.xlu1 %v1176_v17, %s6337_s15 }
 0x4ad   : > { %v4760_v19 = vpop.f32.mrf.mxu1 }
 0x4b0   : > { %1303 = vrot.lane.b32.xlu1 %v427_v20, %s5390_s14 }
 0x4e9   : > { %v1182_v21 = vpop.permute.xlu1 %1181 }
 0x4ea   : > { %v1192_v23 = vsel %vm519_vm2, %v678_v9, %v1182_v21 }
 0x51a   : > { %v1186_v22 = vpop.permute.xlu0 %1185 }
 0x51b   : > { %v1194_v24 = vsel %vm1193_vm4, %v1192_v23, %v1186_v22 }
 0x51e   : > { %v1190_v25 = vpop.permute.xlu1 %1189 }
 0x51f   : > { %v1196_v26 = vsel %vm1195_vm5, %v1194_v24, %v1190_v25 }
 0x520   : > { %v1197_v27 = vadd.f32 %v1196_v26, %v5659_v5 }
 0x522   : > { %v1198_v28 = vsel %vm442_vm1, %v1197_v27, 0.0  ;;  %v1304_v34 = vpop.permute.xlu1 %1303 }
 0x523   : > { %1199 = vadd.xlane.f32.xlu0 %v1198_v28 }
 0x539   : > { %1305 = vrot.lane.b32.xlu0 %v428_v13, %s5390_s14 }
 0x53d   : > { %1301 = vrot.lane.b32.xlu0 %v426_v29, %s5390_s14 }
 0x541   : > { %1392 = vrot.lane.b32.xlu0 %v428_v13, %s5397_s18 }
 0x545   : > { %1388 = vrot.lane.b32.xlu0 %v426_v29, %s5397_s18 }
 0x549   : > { %1384 = vrot.lane.b32.xlu0 %v5788_v38, %s5390_s14 }
 0x5ac   : > { %v1200_v5 = vpop.xlane.xlu0 %1199 }
 0x5ad   : > { %v1202_v31 = vmul.f32 0.03125, %v1200_v5 }
 0x5af   : > { %v1203_v32 = vsub.f32 %v1197_v27, %v1202_v31 }
 0x5b0   : > { %v1306_v33 = vpop.permute.xlu0 %1305 }
 0x5b1   : > { %v1204_v35 = vmul.f32 %v1203_v32, %v1203_v32  ;;  %4773 = vmatpush3.msra.mxu1 %v1306_v33 }
 0x5b2   : > { %4774 = vmatprep.subr.mxu1 %v5387_v0 }
 0x5b3   : > { %v1205_v36 = vsel %vm442_vm1, %v1204_v35, 0.0  ;;  %4775 = vmatpush3.msra.mxu1 %v1304_v34 }
 0x5b4   : > { %1206 = vadd.xlane.f32.xlu1 %v1205_v36  ;;  %4776 = vmatprep.subr.mxu1 %v5387_v0  ;;  %v1302_v37 = vpop.permute.xlu0 %1301 }
 0x5b5   : > { %4777 = vmatpush3.msra.mxu1 %v1302_v37 }
 0x5b6   : > { %4778 = vmatprep.subr.mxu1 %v5387_v0 }
 0x5b8   : > { %v1393_v52 = vpop.permute.xlu0 %1392 }
 0x5bc   : > { %v1389_v54 = vpop.permute.xlu0 %1388 }
 0x5c0   : > { %v5817_v56 = vpop.permute.xlu0 %1384 }
 0x5c5   : > { %1299 = vrot.lane.b32.xlu1 %v425_v30, %s5390_s14 }
 0x5c9   : > { %1390 = vrot.lane.b32.xlu1 %v427_v20, %s5397_s18 }
 0x5cd   : > { %1386 = vrot.lane.b32.xlu1 %v425_v30, %s5397_s18 }
 0x63d   : > { %v1207_v39 = vpop.xlane.xlu1 %1206 }
 0x63e   : > { %v1208_v40 = vmul.f32 0.03125, %v1207_v39 }
 0x640   : > { %v1209_v41 = vadd.f32 1e-05, %v1208_v40 }
 0x641   : > { %v1300_v42 = vpop.permute.xlu1 %1299 }
 0x642   : > { %5135 = vrsqrt.f32 %v1209_v41  ;;  %4779 = vmatpush3.msra.mxu1 %v1300_v42 }
 0x643   : > { %4781 = vmatmul.mubr.msk.f32.vlgmr.msra.gmra.mxu1 %vm442_vm1, %v5788_v38  ;;  %4794 = vmatprep.subr.mxu1 %v5387_v0 }
 0x644   : > { %4796 = vmatprep.mubr.msk.f32.mxu1 %vm5388_vm0, %v5387_v0 }
 0x645   : > { %v1391_v53 = vpop.permute.xlu1 %1390 }
 0x649   : > { %v1387_v55 = vpop.permute.xlu1 %1386 }
 0x64f   : > { %v5136_v47 = vpop.eup %5135 }
 0x650   : > { %v1211_v48 = vmul.f32 %v5136_v47, %v1203_v32 }
 0x652   : > { %v1216_v50 = vmul.f32 %v1215_v46, %v1211_v48 }
 0x654   : > { %v5808_v51 = vadd.f32 %v1220_v49, %v1216_v50 }
 0x656   : > { %4770 = vmatmul.mubr.msk.f32.vlgmr.msra.gmra.mxu0 %vm442_vm1, %v5808_v51 }
 0x657   : > { %4791 = vmatprep.mubr.msk.f32.mxu0 %vm5388_vm0, %v5387_v0  ;;  %4784 = vmatpush3.msra.mxu0 %v1393_v52 }
 0x658   : > { %4785 = vmatprep.subr.mxu0 %v5387_v0 }
 0x659   : > { %4786 = vmatpush3.msra.mxu0 %v1391_v53 }
 0x65a   : > { %4787 = vmatprep.subr.mxu0 %v5387_v0 }
 0x65b   : > { %4788 = vmatpush3.msra.mxu0 %v1389_v54 }
 0x65c   : > { %4789 = vmatprep.subr.mxu0 %v5387_v0 }
 0x65d   : > { %4790 = vmatpush3.msra.mxu0 %v1387_v55 }
 0x65e   : > { %4804 = vmatprep.subr.mxu0 %v5387_v0  ;;  %4792 = vmatmul.mubr.msk.f32.vlgmr.msra.gmra.mxu0 %vm442_vm1, %v5817_v56 }
 0x65f   : > { %4806 = vmatprep.mubr.msk.f32.mxu0 %vm5388_vm0, %v5387_v0 }
 0x703   : > { %v1380_v57 = vpop.f32.mrf.mxu1 }
 0x704   : > { %1632 = vrot.lane.b32.xlu1 %v1380_v57, %s5389_s28  ;;  %4795 = vmatpush3.xpose.msk.msra.mxu1 %vm519_vm2, %v1380_v57 }
 0x705   : > { %v4782_v58 = vpop.f32.mrf.mxu1  ;;  %4799 = vmatprep.subr.mxu1 %v5387_v0 }
 0x708   : > { %1798 = vrot.lane.b32.xlu1 %v1380_v57, %s5394_s7 }
 0x70c   : > { %1963 = vrot.lane.b32.xlu1 %v1380_v57, %s5395_s17 }
 0x716   : > { %v1291_v59 = vpop.f32.mrf.mxu0 }
 0x717   : > { %1630 = vrot.lane.b32.xlu0 %v1291_v59, %s5389_s28  ;;  %4797 = vmatmul.mubr.msk.f32.vlgmr.msra.gmra.mxu1 %vm519_vm2, %v1291_v59 }
 0x718   : > { %v4771_v60 = vpop.f32.mrf.mxu0  ;;  %4801 = vmatprep.mubr.msk.f32.mxu1 %vm5388_vm0, %v5387_v0 }
 0x71b   : > { %1796 = vrot.lane.b32.xlu0 %v1291_v59, %s5394_s7 }
 0x71e   : > { %v1466_v4 = vpop.f32.mrf.mxu0 }
 0x71f   : > { %1961 = vrot.lane.b32.xlu0 %v1291_v59, %s5395_s17  ;;  %4800 = vmatpush3.msra.mxu1 %v1466_v4 }
 0x720   : > { %v4793_v6 = vpop.f32.mrf.mxu0  ;;  %4809 = vmatprep.subr.mxu1 %v5387_v0 }
 0x776   : > { %v1633_v61 = vpop.permute.xlu1 %1632 }
 0x777   : > { %4805 = vmatpush3.xpose.msk.msra.mxu0 %vm519_vm2, %v1633_v61 }
 0x778   : > { %4814 = vmatprep.subr.mxu0 %v5387_v0 }
 0x77a   : > { %v1799_v62 = vpop.permute.xlu1 %1798 }
 0x77e   : > { %v1964_v2 = vpop.permute.xlu1 %1963 }
 0x789   : > { %v1631_v63 = vpop.permute.xlu0 %1630 }
 0x78a   : > { %4807 = vmatmul.mubr.msk.f32.vlgmr.msra.gmra.mxu0 %vm519_vm2, %v1631_v63 }
 0x78b   : > { %4815 = vmatpush3.xpose.msk.msra.mxu0 %vm519_vm2, %v1799_v62  ;;  %4816 = vmatprep.mubr.msk.f32.mxu0 %vm5388_vm0, %v5387_v0 }
 0x78c   : > { %4824 = vmatprep.subr.mxu0 %v5387_v0 }
 0x78d   : > { %v1797_v1 = vpop.permute.xlu0 %1796 }
 0x78e   : > { %4817 = vmatmul.mubr.msk.f32.vlgmr.msra.gmra.mxu0 %vm519_vm2, %v1797_v1 }
 0x78f   : > { %4825 = vmatpush3.xpose.msk.msra.mxu0 %vm519_vm2, %v1964_v2  ;;  %4826 = vmatprep.mubr.msk.f32.mxu0 %vm5388_vm0, %v5387_v0 }
 0x790   : > { %4834 = vmatprep.subr.mxu0 %v5387_v0 }
 0x791   : > { %v1962_v3 = vpop.permute.xlu0 %1961 }
 0x792   : > { %4827 = vmatmul.mubr.msk.f32.vlgmr.msra.gmra.mxu0 %vm519_vm2, %v1962_v3 }
 0x793   : > { %4842 = vmatprep.mubr.msk.f32.mxu0 %vm5388_vm0, %v5387_v0 }
 0x7d7   : > { %v1542_v7 = vpop.f32.mrf.mxu1 }
 0x7d8   : > { %v1546_v8 = vsel %vm519_vm2, %v1542_v7, -inf }
 0x7d9   : > { %1547 = vmax.xlane.f32.xlu1 %v1546_v8  ;;  %v4798_v9 = vpop.f32.mrf.mxu1 }
 0x84a   : > { %v1704_v10 = vpop.f32.mrf.mxu0 }
 0x84b   : > { %v1708_v11 = vsel %vm519_vm2, %v1704_v10, -inf }
 0x84c   : > { %1709 = vmax.xlane.f32.xlu0 %v1708_v11  ;;  %v4808_v12 = vpop.f32.mrf.mxu0 }
 0x84e   : > { %v1870_v13 = vpop.f32.mrf.mxu0 }
 0x84f   : > { %v1874_v14 = vsel %vm519_vm2, %v1870_v13, -inf }
 0x850   : > { %1875 = vmax.xlane.f32.xlu0 %v1874_v14  ;;  %v4818_v15 = vpop.f32.mrf.mxu0 }
 0x852   : > { %v2035_v17 = vpop.f32.mrf.mxu0 }
 0x853   : > { %v2039_v19 = vsel %vm519_vm2, %v2035_v17, -inf }
 0x854   : > { %2040 = vmax.xlane.f32.xlu1 %v2039_v19  ;;  %v4828_v20 = vpop.f32.mrf.mxu0 }
 0x862   : > { %v1548_v21 = vpop.xlane.xlu1 %1547 }
 0x863   : > { %v1549_v22 = vsub.f32 %v1542_v7, %v1548_v21 }
 0x865   : > { %v1550_v23 = vmul.f32 1.442695, %v1549_v22  ;;  %v432_v22 = vld [vmem:[%s6320_s4 + $0x18] sm:$0xff] }
 0x866   : > { %4835 = vmatpush3.msra.mxu0 %v432_v22 }
 0x867   : > { %5137 = vpow2.f32 %v1550_v23  ;;  %v431_v23 = vld [vmem:[%s6320_s4 + $0x10] sm:$0xff]  ;;  %4836 = vmatprep.subr.mxu0 %v5387_v0 }
 0x868   : > { %4837 = vmatpush3.msra.mxu0 %v431_v23 }
 0x869   : > { %4838 = vmatprep.subr.mxu0 %v5387_v0 }
 0x874   : > { %v5138_v24 = vpop.eup %5137 }
 0x875   : > { %v1552_v25 = vsel %vm519_vm2, %v5138_v24, 0.0 }
 0x876   : > { %1553 = vadd.xlane.f32.xlu0 %v1552_v25  ;;  %v440_v25 = vld [vmem:[%s6321_s5 + $0x38] sm:$0xff] }
 0x8d5   : > { %v1710_v26 = vpop.xlane.xlu0 %1709 }
 0x8d6   : > { %v1711_v27 = vsub.f32 %v1704_v10, %v1710_v26  ;;  %v439_v26 = vld [vmem:[%s6321_s5 + $0x30] sm:$0xff] }
 0x8d8   : > { %v1712_v28 = vmul.f32 1.442695, %v1711_v27  ;;  %v438_v27 = vld [vmem:[%s6321_s5 + $0x28] sm:$0xff] }
 0x8d9   : > { %v1876_v29 = vpop.xlane.xlu0 %1875 }
 0x8da   : > { %5139 = vpow2.f32 %v1712_v28  ;;  %v1877_v30 = vsub.f32 %v1870_v13, %v1876_v29  ;;  %v437_v28 = vld [vmem:[%s6321_s5 + $0x20] sm:$0xff]  ;;  %v436_v29 = vld [vmem:[%s6321_s5 + $0x18] sm:$0xff] }
 0x8dc   : > { %v1878_v5 = vmul.f32 1.442695, %v1877_v30 }
 0x8dd   : > { %v2041_v36 = vpop.xlane.xlu1 %2040 }
 0x8de   : > { %5141 = vpow2.f32 %v1878_v5  ;;  %v2042_v37 = vsub.f32 %v2035_v17, %v2041_v36 }
 0x8e0   : > { %v2043_v39 = vmul.f32 1.442695, %v2042_v37 }
 0x8e7   : > { %v5140_v31 = vpop.eup %5139 }
 0x8e8   : > { %v1714_v32 = vsel %vm519_vm2, %v5140_v31, 0.0 }
 0x8e9   : > { %1715 = vadd.xlane.f32.xlu1 %v1714_v32  ;;  %v2157_v32 = vsub.s32 2, %v5704_v16 }
 0x8eb   : > { %v5142_v33 = vpop.eup %5141 }
 0x8ec   : > { %v1880_v34 = vsel %vm519_vm2, %v5142_v33, 0.0 }
 0x8ed   : > { %1881 = vadd.xlane.f32.xlu0 %v1880_v34  ;;  %v2158_v34 = vrot.slane %v5799_v44, %v2157_v32 }
 0x8fa   : > { %1885 = vrot.lane.b32.xlu1 %v1466_v4, %s5394_s7 }
 0x8ff   : > { %v1554_v35 = vpop.xlane.xlu0 %1553 }
 0x900   : > { %5143 = vrcp.f32 %v1554_v35 }
 0x901   : > { %5145 = vpow2.f32 %v2043_v39 }
 0x903   : > { %1720 = vrot.lane.b32.xlu0 %v1466_v4, %s5389_s28 }
 0x90d   : > { %v5144_v40 = vpop.eup %5143 }
 0x90e   : > { %v1556_v41 = vmul.f32 %v5144_v40, %v5138_v24  ;;  %v5146_v42 = vpop.eup %5145  ;;  %v429_v24 = vld [vmem:[%s6320_s4] sm:$0xff] }
 0x90f   : > { %v2045_v46 = vsel %vm519_vm2, %v5146_v42, 0.0 }
 0x910   : > { %4802 = vmatmul.mubr.msk.f32.vlgmr.msra.gmra.mxu1 %vm519_vm2, %v1556_v41  ;;  %v435_v41 = vld [vmem:[%s6321_s5 + $0x10] sm:$0xff] }
 0x911   : > { %4811 = vmatprep.mubr.msk.f32.mxu1 %vm5388_vm0, %v5387_v0 }
 0x91e   : > { %2046 = vadd.xlane.f32.xlu1 %v2045_v46  ;;  %v433_v46 = vld [vmem:[%s6321_s5] sm:$0xff] }
 0x92f   : > { %2050 = vrot.lane.b32.xlu1 %v1466_v4, %s5395_s17 }
 0x972   : > { %v1716_v47 = vpop.xlane.xlu1 %1715 }
 0x973   : > { %5147 = vrcp.f32 %v1716_v47  ;;  %v2167_v47 = vsub.s32 7, %v5704_v16 }
 0x976   : > { %v1882_v48 = vpop.xlane.xlu0 %1881  ;;  %v1886_v53 = vpop.permute.xlu1 %1885 }
 0x977   : > { %5149 = vrcp.f32 %v1882_v48  ;;  %v2168_v48 = vrot.slane %v5799_v44, %v2167_v47 }
 0x97a   : > { %v1721_v49 = vpop.permute.xlu0 %1720 }
 0x97b   : > { %4810 = vmatpush3.msra.mxu1 %v1721_v49 }
 0x97c   : > { %4819 = vmatprep.subr.mxu1 %v5387_v0 }
 0x980   : > { %v5148_v50 = vpop.eup %5147 }
 0x981   : > { %v1718_v52 = vmul.f32 %v5148_v50, %v5140_v31 }
 0x983   : > { %4812 = vmatmul.mubr.msk.f32.vlgmr.msra.gmra.mxu1 %vm519_vm2, %v1718_v52 }
 0x984   : > { %v5150_v54 = vpop.eup %5149  ;;  %4820 = vmatpush3.msra.mxu1 %v1886_v53  ;;  %4821 = vmatprep.mubr.msk.f32.mxu1 %vm5388_vm0, %v5387_v0 }
 0x985   : > { %v1884_v55 = vmul.f32 %v5150_v54, %v5142_v33  ;;  %4829 = vmatprep.subr.mxu1 %v5387_v0  ;;  %v2162_v33 = vsub.s32 3, %v5704_v16  ;;  %v2245_v54 = vsub.s32 6, %v5704_v16 }
 0x987   : > { %4822 = vmatmul.mubr.msk.f32.vlgmr.msra.gmra.mxu1 %vm519_vm2, %v1884_v55  ;;  %v2163_v37 = vrot.slane %v5799_v44, %v2162_v33  ;;  %v2246_v55 = vrot.slane %v5799_v44, %v2245_v54 }
 0x988   : > { %4831 = vmatprep.mubr.msk.f32.mxu1 %vm5388_vm0, %v5387_v0 }
 0x9a7   : > { %v2047_v57 = vpop.xlane.xlu1 %2046 }
 0x9a8   : > { %5151 = vrcp.f32 %v2047_v57 }
 0x9ab   : > { %v2051_v58 = vpop.permute.xlu1 %2050 }
 0x9ac   : > { %4830 = vmatpush3.msra.mxu1 %v2051_v58 }
 0x9ad   : > { %4845 = vmatprep.subr.mxu1 %v5387_v0 }
 0x9b5   : > { %v5152_v59 = vpop.eup %5151 }
 0x9b6   : > { %v2049_v60 = vmul.f32 %v5152_v59, %v5146_v42  ;;  %v434_v42 = vld [vmem:[%s6321_s5 + $0x8] sm:$0xff] }
 0x9b8   : > { %4832 = vmatmul.mubr.msk.f32.vlgmr.msra.gmra.mxu1 %vm519_vm2, %v2049_v60 }
 0x9b9   : > { %4861 = vmatprep.mubr.msk.f32.mxu1 %vm5388_vm0, %v5387_v0  ;;  %4846 = vmatpush3.msra.mxu1 %v440_v25 }
 0x9ba   : > { %4847 = vmatprep.subr.mxu1 %v5387_v0 }
 0x9bb   : > { %4848 = vmatpush3.msra.mxu1 %v439_v26 }
 0x9bc   : > { %4849 = vmatprep.subr.mxu1 %v5387_v0 }
 0x9bd   : > { %4850 = vmatpush3.msra.mxu1 %v438_v27 }
 0x9be   : > { %4851 = vmatprep.subr.mxu1 %v5387_v0 }
 0x9bf   : > { %4852 = vmatpush3.msra.mxu1 %v437_v28 }
 0x9c0   : > { %4853 = vmatprep.subr.mxu1 %v5387_v0 }
 0x9c1   : > { %4854 = vmatpush3.msra.mxu1 %v436_v29 }
 0x9c2   : > { %4855 = vmatprep.subr.mxu1 %v5387_v0 }
 0x9c3   : > { %4856 = vmatpush3.msra.mxu1 %v435_v41 }
 0x9c4   : > { %4857 = vmatprep.subr.mxu1 %v5387_v0 }
 0x9c5   : > { %4858 = vmatpush3.msra.mxu1 %v434_v42 }
 0x9c6   : > { %4859 = vmatprep.subr.mxu1 %v5387_v0 }
 0x9c7   : > { %4860 = vmatpush3.msra.mxu1 %v433_v46 }
 0x9c8   : > { %4880 = vmatprep.subr.mxu1 %v5387_v0 }
 0x9d0   : > { %v1626_v61 = vpop.f32.mrf.mxu1 }
 0x9d2   : > { %v4803_v62 = vpop.f32.mrf.mxu1 }
 0xa43   : > { %v1792_v63 = vpop.f32.mrf.mxu1 }
 0xa44   : > { %2127 = vrot.lane.b32.xlu0 %v1792_v63, %s6341_s11  ;;  %s4570_s11 = sshll.u32 %s5475_s13, 7 }
 0xa45   : > { %v4813_v1 = vpop.f32.mrf.mxu1 }
 0xa47   : > { %v1957_v2 = vpop.f32.mrf.mxu1 }
 0xa48   : > { %2131 = vrot.lane.b32.xlu1 %v1957_v2, %s6339_s22  ;;  %s413_s22 = scalar_lea.vmem [#allocation10], %s5617_s16 }
 0xa49   : > { %v4823_v3 = vpop.f32.mrf.mxu1  ;;  %s4360_s20 = sshll.u32 %s413_s22, 4  ;;  %s4361_s20 = int_to_ptr.vmem [resolvable:$true] %s4360_s20 }
 0xa78   : > { %v2122_v4 = vpop.f32.mrf.mxu1 }
 0xa79   : > { %2135 = vrot.lane.b32.xlu0 %v2122_v4, %s6337_s15  ;;  %v4520_v4 = vld [vmem:[%s6318_s2 + $0x38] sm:$0xff] }
 0xa7a   : > { %v4833_v6 = vpop.f32.mrf.mxu1 }
 0xa7b   : > { %v4519_v6 = vld [vmem:[%s6318_s2 + $0x30] sm:$0xff] }
 0xab6   : > { %v2128_v7 = vpop.permute.xlu0 %2127 }
 0xab7   : > { %v2138_v9 = vsel %vm519_vm2, %v1626_v61, %v2128_v7  ;;  %v4518_v7 = vld [vmem:[%s6318_s2 + $0x28] sm:$0xff] }
 0xaba   : > { %v2132_v8 = vpop.permute.xlu1 %2131 }
 0xabb   : > { %v2139_v10 = vsel %vm1193_vm4, %v2138_v9, %v2132_v8  ;;  %v4517_v8 = vld [vmem:[%s6318_s2 + $0x20] sm:$0xff] }
 0xaeb   : > { %v2136_v11 = vpop.permute.xlu0 %2135 }
 0xaec   : > { %v2140_v12 = vsel %vm1195_vm5, %v2139_v10, %v2136_v11 }
 0xaed   : > { %v2141_v13 = vadd.f32 %v2140_v12, %v5808_v51  ;;  %v430_v51 = vld [vmem:[%s6320_s4 + $0x8] sm:$0xff]  ;;  %v2337_v12 = vsub.s32 4, %v5704_v16 }
 0xaee   : > { %4839 = vmatpush3.msra.mxu0 %v430_v51 }
 0xaef   : > { %v2142_v14 = vsel %vm442_vm1, %v2141_v13, 0.0  ;;  %4840 = vmatprep.subr.mxu0 %v5387_v0 }
 0xaf0   : > { %2143 = vadd.xlane.f32.xlu1 %v2142_v14  ;;  %4841 = vmatpush3.msra.mxu0 %v429_v24  ;;  %v2338_v14 = vrot.slane %v5799_v44, %v2337_v12 }
 0xaf1   : > { %4864 = vmatprep.subr.mxu0 %v5387_v0 }
 0xb79   : > { %v2144_v15 = vpop.xlane.xlu1 %2143 }
 0xb7a   : > { %v2145_v17 = vmul.f32 0.03125, %v2144_v15 }
 0xb7c   : > { %v2146_v19 = vsub.f32 %v2141_v13, %v2145_v17  ;;  %v2342_v13 = vsub.s32 5, %v5704_v16 }
 0xb7e   : > { %v2147_v20 = vmul.f32 %v2146_v19, %v2146_v19 }
 0xb80   : > { %v2148_v21 = vsel %vm442_vm1, %v2147_v20, 0.0 }
 0xb81   : > { %2149 = vadd.xlane.f32.xlu0 %v2148_v21 }
 0xc0a   : > { %v2150_v30 = vpop.xlane.xlu0 %2149 }
 0xc0b   : > { %v2151_v5 = vmul.f32 0.03125, %v2150_v30 }
 0xc0d   : > { %v2152_v31 = vadd.f32 1e-05, %v2151_v5 }
 0xc0f   : > { %5153 = vrsqrt.f32 %v2152_v31 }
 0xc1c   : > { %v5154_v35 = vpop.eup %5153 }
 0xc1d   : > { %v2154_v36 = vmul.f32 %v5154_v35, %v2146_v19  ;;  %v2343_v19 = vrot.slane %v5799_v44, %v2342_v13 }
 0xc1f   : > { %v2159_v39 = vmul.f32 %v2158_v34, %v2154_v36 }
 0xc21   : > { %v2164_v40 = vadd.f32 %v2163_v37, %v2159_v39 }
 0xc23   : > { %4843 = vmatmul.mubr.msk.f32.vlgmr.msra.gmra.mxu0 %vm442_vm1, %v2164_v40 }
 0xc24   : > { %4872 = vmatprep.mubr.msk.f32.mxu0 %vm5388_vm0, %v5387_v0  ;;  %4865 = vmatpush3.msra.mxu0 %v4520_v4 }
 0xc25   : > { %4866 = vmatprep.subr.mxu0 %v5387_v0 }
 0xc26   : > { %4867 = vmatpush3.msra.mxu0 %v4519_v6 }
 0xc27   : > { %4868 = vmatprep.subr.mxu0 %v5387_v0 }
 0xc28   : > { %4869 = vmatpush3.msra.mxu0 %v4518_v7 }
 0xc29   : > { %4870 = vmatprep.subr.mxu0 %v5387_v0 }
 0xc2a   : > { %4871 = vmatpush3.msra.mxu0 %v4517_v8 }
 0xc2b   : > { %4875 = vmatprep.subr.mxu0 %v5387_v0 }
 0xce3   : > { %v2238_v49 = vpop.f32.mrf.mxu0 }
 0xce4   : > { %v2239_v50 = vadd.f32 %v2238_v49, %v2168_v48 }
 0xce5   : > { %v4844_v52 = vpop.f32.mrf.mxu0 }
 0xce6   : > { %v2242_v53 = vmax.f32 %v2239_v50, 0.0 }
 0xce8   : > { %4862 = vmatmul.mubr.msk.f32.vlgmr.msra.gmra.mxu1 %vm2247_vm6, %v2242_v53 }
 0xce9   : > { %4882 = vmatprep.mubr.msk.f32.mxu1 %vm5388_vm0, %v5387_v0 }
 0xda8   : > { %v2317_v57 = vpop.f32.mrf.mxu1 }
 0xda9   : > { %v2318_v58 = vadd.f32 %v2317_v57, %v2246_v55 }
 0xdaa   : > { %v4863_v59 = vpop.f32.mrf.mxu1 }
 0xdab   : > { %v2321_v60 = vadd.f32 %v2318_v58, %v2164_v40 }
 0xdad   : > { %v2322_v61 = vsel %vm442_vm1, %v2321_v60, 0.0 }
 0xdae   : > { %2323 = vadd.xlane.f32.xlu0 %v2322_v61 }
 0xe37   : > { %v2324_v62 = vpop.xlane.xlu0 %2323 }
 0xe38   : > { %v2325_v63 = vmul.f32 0.03125, %v2324_v62 }
 0xe3a   : > { %v2326_v1 = vsub.f32 %v2321_v60, %v2325_v63 }
 0xe3c   : > { %v2327_v2 = vmul.f32 %v2326_v1, %v2326_v1 }
 0xe3e   : > { %v2328_v3 = vsel %vm442_vm1, %v2327_v2, 0.0 }
 0xe3f   : > { %2329 = vadd.xlane.f32.xlu1 %v2328_v3 }
 0xec8   : > { %v2330_v9 = vpop.xlane.xlu1 %2329 }
 0xec9   : > { %v2331_v10 = vmul.f32 0.03125, %v2330_v9 }
 0xecb   : > { %v2332_v11 = vadd.f32 1e-05, %v2331_v10 }
 0xecd   : > { %5155 = vrsqrt.f32 %v2332_v11 }
 0xeda   : > { %v5156_v15 = vpop.eup %5155 }
 0xedb   : > { %v2334_v17 = vmul.f32 %v5156_v15, %v2326_v1 }
 0xedd   : > { %v2339_v20 = vmul.f32 %v2338_v14, %v2334_v17 }
 0xedf   : > { %v5982_v21 = vadd.f32 %v2343_v19, %v2339_v20 }
 0xee1   : > { %4873 = vmatmul.mubr.msk.f32.vlgmr.msra.gmra.mxu0 %vm442_vm1, %v5982_v21 }
 0xee2   : > { %4877 = vmatprep.mubr.msk.f32.mxu0 %vm5388_vm0, %v5387_v0 }
 0xfa1   : > { %v5988_v22 = vpop.f32.mrf.mxu0 }
 0xfa2   : > { %2611 = vrot.lane.b32.xlu1 %v5988_v22, %s5392_s29  ;;  %2445 = vrot.lane.b32.xlu0 %v5988_v22, %s5390_s14  ;;  %s6367_s29 = smov 40  }
 0xfa3   : > { %v4874_v23 = vpop.f32.mrf.mxu0 }
 0xfa6   : > { %2609 = vrot.lane.b32.xlu1 %v5988_v22, %s5389_s28  ;;  %2777 = vrot.lane.b32.xlu0 %v5988_v22, %s5391_s25  ;;  %s6366_s25 = smov 48  }
 0xfaa   : > { %2775 = vrot.lane.b32.xlu1 %v5988_v22, %s5394_s7  ;;  %2943 = vrot.lane.b32.xlu0 %v5988_v22, %s5393_s6  ;;  %s6368_s6 = smov 56  }
 0xfae   : > { %2941 = vrot.lane.b32.xlu1 %v5988_v22, %s5395_s17 }
0x1014   : > { %v2612_v44 = vpop.permute.xlu1 %2611  ;;  %v2446_v51 = vpop.permute.xlu0 %2445 }
0x1015   : > { %4876 = vmatpush3.xpose.msk.msra.mxu0 %vm519_vm2, %v2446_v51 }
0x1016   : > { %4885 = vmatprep.subr.mxu0 %v5387_v0 }
0x1018   : > { %v2610_v24 = vpop.permute.xlu1 %2609  ;;  %4878 = vmatmul.mubr.msk.f32.vlgmr.msra.gmra.mxu0 %vm519_vm2, %v5988_v22  ;;  %v2778_v25 = vpop.permute.xlu0 %2777 }
0x1019   : > { %4886 = vmatpush3.xpose.msk.msra.mxu0 %vm519_vm2, %v2612_v44  ;;  %4887 = vmatprep.mubr.msk.f32.mxu0 %vm5388_vm0, %v5387_v0 }
0x101a   : > { %4895 = vmatprep.subr.mxu0 %v5387_v0 }
0x101c   : > { %4888 = vmatmul.mubr.msk.f32.vlgmr.msra.gmra.mxu0 %vm519_vm2, %v2610_v24  ;;  %v2776_v26 = vpop.permute.xlu1 %2775  ;;  %v2944_v27 = vpop.permute.xlu0 %2943 }
0x101d   : > { %4896 = vmatpush3.xpose.msk.msra.mxu0 %vm519_vm2, %v2778_v25  ;;  %4897 = vmatprep.mubr.msk.f32.mxu0 %vm5388_vm0, %v5387_v0 }
0x101e   : > { %4905 = vmatprep.subr.mxu0 %v5387_v0 }
0x1020   : > { %4898 = vmatmul.mubr.msk.f32.vlgmr.msra.gmra.mxu0 %vm519_vm2, %v2776_v26  ;;  %v2942_v28 = vpop.permute.xlu1 %2941 }
0x1021   : > { %4906 = vmatpush3.xpose.msk.msra.mxu0 %vm519_vm2, %v2944_v27  ;;  %4907 = vmatprep.mubr.msk.f32.mxu0 %vm5388_vm0, %v5387_v0 }
0x1022   : > { %4915 = vmatprep.subr.mxu0 %v5387_v0 }
0x1024   : > { %4908 = vmatmul.mubr.msk.f32.vlgmr.msra.gmra.mxu0 %vm519_vm2, %v2942_v28 }
0x1025   : > { %4923 = vmatprep.mubr.msk.f32.mxu0 %vm5388_vm0, %v5387_v0 }
0x10d8   : > { %v2517_v29 = vpop.f32.mrf.mxu0 }
0x10d9   : > { %v2521_v30 = vsel %vm5707_vm3, %v2517_v29, 1e-19 }
0x10da   : > { %v4879_v5 = vpop.f32.mrf.mxu0  ;;  %v2522_v31 = vsel %vm519_vm2, %v2521_v30, -inf }
0x10db   : > { %2523 = vmax.xlane.f32.xlu0 %v2522_v31 }
0x10dc   : > { %v2683_v34 = vpop.f32.mrf.mxu0 }
0x10dd   : > { %v2687_v35 = vsel %vm5707_vm3, %v2683_v34, 1e-19 }
0x10de   : > { %v4889_v36 = vpop.f32.mrf.mxu0  ;;  %v2688_v37 = vsel %vm519_vm2, %v2687_v35, -inf }
0x10df   : > { %2689 = vmax.xlane.f32.xlu1 %v2688_v37 }
0x10e0   : > { %v2849_v39 = vpop.f32.mrf.mxu0 }
0x10e1   : > { %v2853_v40 = vsel %vm5707_vm3, %v2849_v39, 1e-19 }
0x10e2   : > { %v4899_v41 = vpop.f32.mrf.mxu0  ;;  %v2854_v42 = vsel %vm519_vm2, %v2853_v40, -inf }
0x10e3   : > { %2855 = vmax.xlane.f32.xlu0 %v2854_v42 }
0x10e4   : > { %v3015_v46 = vpop.f32.mrf.mxu0 }
0x10e5   : > { %v3019_v48 = vsel %vm5707_vm3, %v3015_v46, 1e-19 }
0x10e6   : > { %v4909_v49 = vpop.f32.mrf.mxu0  ;;  %v3020_v50 = vsel %vm519_vm2, %v3019_v48, -inf }
0x10e7   : > { %3021 = vmax.xlane.f32.xlu0 %v3020_v50 }
0x10f0   : > { %2533 = vrot.lane.b32.xlu1 %v5988_v22, %s5397_s18 }
0x1164   : > { %v2524_v52 = vpop.xlane.xlu0 %2523 }
0x1165   : > { %v2525_v53 = vsub.f32 %v2521_v30, %v2524_v52 }
0x1167   : > { %v2526_v55 = vmul.f32 1.442695, %v2525_v53  ;;  %v4523_v53 = vld [vmem:[%s6319_s3 + $0x30] sm:$0xff] }
0x1168   : > { %v2690_v57 = vpop.xlane.xlu1 %2689 }
0x1169   : > { %5157 = vpow2.f32 %v2526_v55  ;;  %v2691_v58 = vsub.f32 %v2687_v35, %v2690_v57  ;;  %v4524_v55 = vld [vmem:[%s6319_s3 + $0x38] sm:$0xff]  ;;  %v4521_v57 = vld [vmem:[%s6319_s3 + $0x20] sm:$0xff] }
0x116a   : > { %4916 = vmatpush3.msra.mxu0 %v4524_v55 }
0x116b   : > { %v2692_v59 = vmul.f32 1.442695, %v2691_v58  ;;  %4917 = vmatprep.subr.mxu0 %v5387_v0 }
0x116c   : > { %v2534_v60 = vpop.permute.xlu1 %2533  ;;  %v2856_v61 = vpop.xlane.xlu0 %2855  ;;  %4918 = vmatpush3.msra.mxu0 %v4523_v53 }
0x116d   : > { %5159 = vpow2.f32 %v2692_v59  ;;  %v2857_v62 = vsub.f32 %v2853_v40, %v2856_v61  ;;  %4881 = vmatpush3.msra.mxu1 %v2534_v60  ;;  %4919 = vmatprep.subr.mxu0 %v5387_v0 }
0x116e   : > { %4890 = vmatprep.subr.mxu1 %v5387_v0 }
0x116f   : > { %v2858_v18 = vmul.f32 1.442695, %v2857_v62 }
0x1170   : > { %v3022_v63 = vpop.xlane.xlu0 %3021 }
0x1171   : > { %5161 = vpow2.f32 %v2858_v18  ;;  %v3023_v1 = vsub.f32 %v3019_v48, %v3022_v63 }
0x1173   : > { %v3024_v2 = vmul.f32 1.442695, %v3023_v1 }
0x1175   : > { %5163 = vpow2.f32 %v3024_v2 }
0x1176   : > { %v5158_v3 = vpop.eup %5157 }
0x1177   : > { %v2528_v4 = vsel %vm519_vm2, %v5158_v3, 0.0 }
0x1178   : > { %2529 = vadd.xlane.f32.xlu1 %v2528_v4 }
0x117a   : > { %v5160_v6 = vpop.eup %5159 }
0x117b   : > { %v2694_v7 = vsel %vm519_vm2, %v5160_v6, 0.0 }
0x117c   : > { %2695 = vadd.xlane.f32.xlu0 %v2694_v7  ;;  %v6106_v7 = vld [vmem:[#allocation7 + $0x8] sm:$0xff] }
0x117e   : > { %v5162_v8 = vpop.eup %5161 }
0x117f   : > { %v2860_v9 = vsel %vm519_vm2, %v5162_v8, 0.0 }
0x1180   : > { %2861 = vadd.xlane.f32.xlu1 %v2860_v9 }
0x1182   : > { %v5164_v10 = vpop.eup %5163 }
0x1183   : > { %v3026_v11 = vsel %vm519_vm2, %v5164_v10, 0.0 }
0x1184   : > { %3027 = vadd.xlane.f32.xlu0 %v3026_v11  ;;  %v3144_v11 = vrot.slane %v6106_v7, %v1219_v45 }
0x1191   : > { %2865 = vrot.lane.b32.xlu1 %v5988_v22, %s6366_s25 }
0x1195   : > { %3031 = vrot.lane.b32.xlu1 %v5988_v22, %s6367_s29 }
0x119a   : > { %2699 = vrot.lane.b32.xlu0 %v5988_v22, %s6368_s6  ;;  %s6279_s6 = scalar_lea.hbm %s6325_s9, %s4570_s11 }
0x1201   : > { %v2530_v14 = vpop.xlane.xlu1 %2529 }
0x1202   : > { %5165 = vrcp.f32 %v2530_v14 }
0x1205   : > { %v2696_v15 = vpop.xlane.xlu0 %2695 }
0x1206   : > { %5167 = vrcp.f32 %v2696_v15 }
0x1209   : > { %v2862_v17 = vpop.xlane.xlu1 %2861 }
0x120a   : > { %5169 = vrcp.f32 %v2862_v17 }
0x120d   : > { %v3028_v19 = vpop.xlane.xlu0 %3027  ;;  %v2866_v24 = vpop.permute.xlu1 %2865 }
0x120e   : > { %5171 = vrcp.f32 %v3028_v19 }
0x120f   : > { %v5166_v20 = vpop.eup %5165 }
0x1210   : > { %v2532_v23 = vmul.f32 %v5166_v20, %v5158_v3 }
0x1211   : > { %v2700_v44 = vpop.permute.xlu0 %2699  ;;  %v3032_v27 = vpop.permute.xlu1 %3031 }
0x1212   : > { %4883 = vmatmul.mubr.msk.f32.vlgmr.msra.gmra.mxu1 %vm519_vm2, %v2532_v23 }
0x1213   : > { %v5168_v51 = vpop.eup %5167  ;;  %4891 = vmatpush3.msra.mxu1 %v2700_v44  ;;  %4892 = vmatprep.mubr.msk.f32.mxu1 %vm5388_vm0, %v5387_v0 }
0x1214   : > { %4900 = vmatprep.subr.mxu1 %v5387_v0  ;;  %v2698_v22 = vmul.f32 %v5168_v51, %v5160_v6 }
0x1216   : > { %4893 = vmatmul.mubr.msk.f32.vlgmr.msra.gmra.mxu1 %vm519_vm2, %v2698_v22 }
0x1217   : > { %v5170_v25 = vpop.eup %5169  ;;  %4901 = vmatpush3.msra.mxu1 %v2866_v24  ;;  %4902 = vmatprep.mubr.msk.f32.mxu1 %vm5388_vm0, %v5387_v0 }
0x1218   : > { %4910 = vmatprep.subr.mxu1 %v5387_v0  ;;  %v2864_v26 = vmul.f32 %v5170_v25, %v5162_v8  ;;  %v3139_v8 = vrot.slane %v6106_v7, %v1214_v43 }
0x121a   : > { %4903 = vmatmul.mubr.msk.f32.vlgmr.msra.gmra.mxu1 %vm519_vm2, %v2864_v26 }
0x121b   : > { %v5172_v28 = vpop.eup %5171  ;;  %4911 = vmatpush3.msra.mxu1 %v3032_v27  ;;  %4912 = vmatprep.mubr.msk.f32.mxu1 %vm5388_vm0, %v5387_v0 }
0x121c   : > { %v3030_v29 = vmul.f32 %v5172_v28, %v5164_v10  ;;  %4926 = vmatprep.subr.mxu1 %v5387_v0 }
0x121e   : > { %4913 = vmatmul.mubr.msk.f32.vlgmr.msra.gmra.mxu1 %vm519_vm2, %v3030_v29 }
0x121f   : > { %4934 = vmatprep.mubr.msk.f32.mxu1 %vm5388_vm0, %v5387_v0 }
0x12d2   : > { %v2605_v30 = vpop.f32.mrf.mxu1 }
0x12d4   : > { %v4884_v5 = vpop.f32.mrf.mxu1 }
0x12d6   : > { %v2771_v31 = vpop.f32.mrf.mxu1 }
0x12d7   : > { %3108 = vrot.lane.b32.xlu0 %v2771_v31, %s6369_s19 }
0x12d8   : > { %v4894_v34 = vpop.f32.mrf.mxu1 }
0x12da   : > { %v2937_v35 = vpop.f32.mrf.mxu1 }
0x12db   : > { %3112 = vrot.lane.b32.xlu1 %v2937_v35, %s6370_s23 }
0x12dc   : > { %v4904_v36 = vpop.f32.mrf.mxu1 }
0x12de   : > { %v3103_v37 = vpop.f32.mrf.mxu1 }
0x12df   : > { %3116 = vrot.lane.b32.xlu0 %v3103_v37, %s6371_s26 }
0x12e0   : > { %v4914_v39 = vpop.f32.mrf.mxu1 }
0x1349   : > { %v3109_v40 = vpop.permute.xlu0 %3108 }
0x134a   : > { %v3119_v42 = vsel %vm519_vm2, %v2605_v30, %v3109_v40 }
0x134d   : > { %v3113_v41 = vpop.permute.xlu1 %3112 }
0x134e   : > { %v3120_v46 = vsel %vm1193_vm4, %v3119_v42, %v3113_v41 }
0x1351   : > { %v3117_v48 = vpop.permute.xlu0 %3116 }
0x1352   : > { %v3121_v49 = vsel %vm1195_vm5, %v3120_v46, %v3117_v48 }
0x1353   : > { %v3122_v50 = vadd.f32 %v3121_v49, %v5982_v21  ;;  %v4522_v21 = vld [vmem:[%s6319_s3 + $0x28] sm:$0xff] }
0x1354   : > { %4920 = vmatpush3.msra.mxu0 %v4522_v21 }
0x1355   : > { %v3123_v52 = vsel %vm442_vm1, %v3122_v50, 0.0  ;;  %4921 = vmatprep.subr.mxu0 %v5387_v0 }
0x1356   : > { %3124 = vadd.xlane.f32.xlu1 %v3123_v52  ;;  %4922 = vmatpush3.msra.mxu0 %v4521_v57 }
0x1357   : > { %4937 = vmatprep.subr.mxu0 %v5387_v0 }
0x1367   : > { %3227 = vrot.lane.b32.xlu1 %v4523_v53, %s5390_s14 }
0x136b   : > { %3225 = vrot.lane.b32.xlu1 %v4522_v21, %s5390_s14 }
0x136f   : > { %3311 = vrot.lane.b32.xlu1 %v4524_v55, %s5397_s18 }
0x1373   : > { %3307 = vrot.lane.b32.xlu1 %v4522_v21, %s5397_s18 }
0x13df   : > { %v3125_v58 = vpop.xlane.xlu1 %3124 }
0x13e0   : > { %v3126_v59 = vmul.f32 0.03125, %v3125_v58 }
0x13e2   : > { %v3127_v60 = vsub.f32 %v3122_v50, %v3126_v59 }
0x13e3   : > { %v3228_v63 = vpop.permute.xlu1 %3227 }
0x13e4   : > { %v3128_v61 = vmul.f32 %v3127_v60, %v3127_v60 }
0x13e6   : > { %v3129_v62 = vsel %vm442_vm1, %v3128_v61, 0.0 }
0x13e7   : > { %3130 = vadd.xlane.f32.xlu0 %v3129_v62  ;;  %v3226_v4 = vpop.permute.xlu1 %3225 }
0x13eb   : > { %v3312_v14 = vpop.permute.xlu1 %3311 }
0x13ef   : > { %v3308_v43 = vpop.permute.xlu1 %3307 }
0x13fd   : > { %3229 = vrot.lane.b32.xlu0 %v4524_v55, %s5390_s14 }
0x1401   : > { %3223 = vrot.lane.b32.xlu0 %v4521_v57, %s5390_s14  ;;  %s5303_s14 = scalar_lea.vmem %s4361_s20, 128 }
0x1402   : > { %p5304_p12 = scmp.ne.s32.totalorder %s4361_s20, %s5303_s14 }
0x1404   : > { %p5305_p9 = pnand %p5304_p12, %p6372_p7 }
0x1405   : > { %3309 = vrot.lane.b32.xlu0 %v4523_v53, %s5397_s18 }
0x1406   : > { %p5306_p13 = pneg %p5305_p9 }
0x1409   : > { %3305 = vrot.lane.b32.xlu0 %v4521_v57, %s5397_s18 }
0x1470   : > { %v3131_v18 = vpop.xlane.xlu0 %3130 }
0x1471   : > { %v3132_v1 = vmul.f32 0.03125, %v3131_v18 }
0x1473   : > { %v3133_v2 = vadd.f32 1e-05, %v3132_v1 }
0x1474   : > { %v3230_v3 = vpop.permute.xlu0 %3229 }
0x1475   : > { %5173 = vrsqrt.f32 %v3133_v2  ;;  %4927 = vmatpush3.msra.mxu1 %v3230_v3 }
0x1476   : > { %4928 = vmatprep.subr.mxu1 %v5387_v0 }
0x1477   : > { %4929 = vmatpush3.msra.mxu1 %v3228_v63 }
0x1478   : > { %4930 = vmatprep.subr.mxu1 %v5387_v0  ;;  %v3224_v6 = vpop.permute.xlu0 %3223 }
0x1479   : > { %4931 = vmatpush3.msra.mxu1 %v3226_v4 }
0x147a   : > { %4932 = vmatprep.subr.mxu1 %v5387_v0 }
0x147b   : > { %4933 = vmatpush3.msra.mxu1 %v3224_v6 }
0x147c   : > { %4935 = vmatmul.mubr.msk.f32.vlgmr.msra.gmra.mxu1 %vm442_vm1, %v5788_v38  ;;  %4948 = vmatprep.subr.mxu1 %v5387_v0  ;;  %v3310_v17 = vpop.permute.xlu0 %3309 }
0x147d   : > { %4950 = vmatprep.mubr.msk.f32.mxu1 %vm5388_vm0, %v5387_v0 }
0x1480   : > { %v3306_v19 = vpop.permute.xlu0 %3305 }
0x1482   : > { %v5174_v9 = vpop.eup %5173 }
0x1483   : > { %v3135_v10 = vmul.f32 %v5174_v9, %v3127_v60 }
0x1485   : > { %v3140_v15 = vmul.f32 %v3139_v8, %v3135_v10 }
0x1487   : > { %v6114_v38 = vadd.f32 %v3144_v11, %v3140_v15 }
0x1489   : > { %4924 = vmatmul.mubr.msk.f32.vlgmr.msra.gmra.mxu0 %vm442_vm1, %v6114_v38 }
0x148a   : > { %4938 = vmatpush3.msra.mxu0 %v3312_v14  ;;  %4945 = vmatprep.mubr.msk.f32.mxu0 %vm5388_vm0, %v5387_v0 }
0x148b   : > { %4939 = vmatprep.subr.mxu0 %v5387_v0 }
0x148c   : > { %4940 = vmatpush3.msra.mxu0 %v3310_v17 }
0x148d   : > { %4941 = vmatprep.subr.mxu0 %v5387_v0 }
0x148e   : > { %4942 = vmatpush3.msra.mxu0 %v3308_v43 }
0x148f   : > { %4943 = vmatprep.subr.mxu0 %v5387_v0 }
0x1490   : > { %4944 = vmatpush3.msra.mxu0 %v3306_v19 }
0x1491   : > { %4946 = vmatmul.mubr.msk.f32.vlgmr.msra.gmra.mxu0 %vm442_vm1, %v5817_v56  ;;  %4958 = vmatprep.subr.mxu0 %v5387_v0 }
0x1492   : > { %4960 = vmatprep.mubr.msk.f32.mxu0 %vm5388_vm0, %v5387_v0 }
0x153c   : > { %v3301_v45 = vpop.f32.mrf.mxu1 }
0x153d   : > { %3549 = vrot.lane.b32.xlu1 %v3301_v45, %s5389_s28  ;;  %4949 = vmatpush3.xpose.msk.msra.mxu1 %vm519_vm2, %v3301_v45 }
0x153e   : > { %v4936_v20 = vpop.f32.mrf.mxu1  ;;  %4953 = vmatprep.subr.mxu1 %v5387_v0 }
0x1541   : > { %3715 = vrot.lane.b32.xlu1 %v3301_v45, %s5394_s7 }
0x1545   : > { %3880 = vrot.lane.b32.xlu1 %v3301_v45, %s5395_s17 }
0x1549   : > { %v3215_v23 = vpop.f32.mrf.mxu0 }
0x154a   : > { %3547 = vrot.lane.b32.xlu0 %v3215_v23, %s5389_s28  ;;  %4951 = vmatmul.mubr.msk.f32.vlgmr.msra.gmra.mxu1 %vm519_vm2, %v3215_v23 }
0x154b   : > { %v4925_v56 = vpop.f32.mrf.mxu0  ;;  %4955 = vmatprep.mubr.msk.f32.mxu1 %vm5388_vm0, %v5387_v0 }
0x154e   : > { %3713 = vrot.lane.b32.xlu0 %v3215_v23, %s5394_s7 }
0x1551   : > { %v6138_v44 = vpop.f32.mrf.mxu0 }
0x1552   : > { %4954 = vmatpush3.msra.mxu1 %v6138_v44  ;;  %3878 = vrot.lane.b32.xlu0 %v3215_v23, %s5395_s17 }
0x1553   : > { %v4947_v51 = vpop.f32.mrf.mxu0  ;;  %4963 = vmatprep.subr.mxu1 %v5387_v0 }
0x15af   : > { %v3550_v24 = vpop.permute.xlu1 %3549 }
0x15b0   : > { %4959 = vmatpush3.xpose.msk.msra.mxu0 %vm519_vm2, %v3550_v24 }
0x15b1   : > { %4968 = vmatprep.subr.mxu0 %v5387_v0 }
0x15b3   : > { %v3716_v22 = vpop.permute.xlu1 %3715 }
0x15b7   : > { %v3881_v27 = vpop.permute.xlu1 %3880 }
0x15bc   : > { %v3548_v25 = vpop.permute.xlu0 %3547 }
0x15bd   : > { %4961 = vmatmul.mubr.msk.f32.vlgmr.msra.gmra.mxu0 %vm519_vm2, %v3548_v25 }
0x15be   : > { %4969 = vmatpush3.xpose.msk.msra.mxu0 %vm519_vm2, %v3716_v22  ;;  %4970 = vmatprep.mubr.msk.f32.mxu0 %vm5388_vm0, %v5387_v0 }
0x15bf   : > { %4978 = vmatprep.subr.mxu0 %v5387_v0 }
0x15c0   : > { %v3714_v26 = vpop.permute.xlu0 %3713 }
0x15c1   : > { %4971 = vmatmul.mubr.msk.f32.vlgmr.msra.gmra.mxu0 %vm519_vm2, %v3714_v26 }
0x15c2   : > { %4979 = vmatpush3.xpose.msk.msra.mxu0 %vm519_vm2, %v3881_v27  ;;  %4980 = vmatprep.mubr.msk.f32.mxu0 %vm5388_vm0, %v5387_v0 }
0x15c3   : > { %4988 = vmatprep.subr.mxu0 %v5387_v0 }
0x15c4   : > { %v3879_v28 = vpop.permute.xlu0 %3878 }
0x15c5   : > { %4981 = vmatmul.mubr.msk.f32.vlgmr.msra.gmra.mxu0 %vm519_vm2, %v3879_v28 }
0x15c6   : > { %4996 = vmatprep.mubr.msk.f32.mxu0 %vm5388_vm0, %v5387_v0 }
0x160a   : > { %v3459_v29 = vpop.f32.mrf.mxu1 }
0x160b   : > { %v3463_v30 = vsel %vm519_vm2, %v3459_v29, -inf }
0x160c   : > { %3464 = vmax.xlane.f32.xlu1 %v3463_v30  ;;  %v4952_v5 = vpop.f32.mrf.mxu1 }
0x167d   : > { %v3621_v31 = vpop.f32.mrf.mxu0 }
0x167e   : > { %v3625_v34 = vsel %vm519_vm2, %v3621_v31, -inf }
0x167f   : > { %3626 = vmax.xlane.f32.xlu0 %v3625_v34  ;;  %v4962_v35 = vpop.f32.mrf.mxu0 }
0x1681   : > { %v3787_v36 = vpop.f32.mrf.mxu0 }
0x1682   : > { %v3791_v37 = vsel %vm519_vm2, %v3787_v36, -inf }
0x1683   : > { %3792 = vmax.xlane.f32.xlu0 %v3791_v37  ;;  %v4972_v39 = vpop.f32.mrf.mxu0 }
0x1685   : > { %v3952_v40 = vpop.f32.mrf.mxu0 }
0x1686   : > { %v3956_v41 = vsel %vm519_vm2, %v3952_v40, -inf }
0x1687   : > { %3957 = vmax.xlane.f32.xlu1 %v3956_v41  ;;  %v4982_v42 = vpop.f32.mrf.mxu0 }
0x1695   : > { %v3465_v46 = vpop.xlane.xlu1 %3464 }
0x1696   : > { %v3466_v48 = vsub.f32 %v3459_v29, %v3465_v46 }
0x1698   : > { %v3467_v49 = vmul.f32 1.442695, %v3466_v48 }
0x169a   : > { %5175 = vpow2.f32 %v3467_v49  ;;  %v4528_v49 = vld [vmem:[%s6320_s4 + $0x38] sm:$0xff] }
0x169b   : > { %4989 = vmatpush3.msra.mxu0 %v4528_v49 }
0x169c   : > { %4990 = vmatprep.subr.mxu0 %v5387_v0 }
0x16a7   : > { %v5176_v50 = vpop.eup %5175 }
0x16a8   : > { %v3469_v52 = vsel %vm519_vm2, %v5176_v50, 0.0 }
0x16a9   : > { %3470 = vadd.xlane.f32.xlu0 %v3469_v52  ;;  %v4525_v52 = vld [vmem:[%s6320_s4 + $0x20] sm:$0xff] }
0x1708   : > { %v3627_v53 = vpop.xlane.xlu0 %3626 }
0x1709   : > { %v3628_v55 = vsub.f32 %v3621_v31, %v3627_v53  ;;  %v4536_v53 = vld [vmem:[%s6321_s5 + $0x78] sm:$0xff] }
0x170b   : > { %v3629_v21 = vmul.f32 1.442695, %v3628_v55  ;;  %v4535_v55 = vld [vmem:[%s6321_s5 + $0x70] sm:$0xff] }
0x170c   : > { %v3793_v57 = vpop.xlane.xlu0 %3792 }
0x170d   : > { %5177 = vpow2.f32 %v3629_v21  ;;  %v3794_v58 = vsub.f32 %v3787_v36, %v3793_v57  ;;  %v4534_v21 = vld [vmem:[%s6321_s5 + $0x68] sm:$0xff]  ;;  %v4533_v57 = vld [vmem:[%s6321_s5 + $0x60] sm:$0xff] }
0x170f   : > { %v3795_v59 = vmul.f32 1.442695, %v3794_v58  ;;  %v4532_v58 = vld [vmem:[%s6321_s5 + $0x58] sm:$0xff] }
0x1710   : > { %v3958_v1 = vpop.xlane.xlu1 %3957 }
0x1711   : > { %5179 = vpow2.f32 %v3795_v59  ;;  %v3959_v2 = vsub.f32 %v3952_v40, %v3958_v1  ;;  %v4080_v1 = vrot.slane %v6106_v7, %v2162_v33  ;;  %v4529_v33 = vld [vmem:[%s6321_s5 + $0x40] sm:$0xff] }
0x1713   : > { %v3960_v3 = vmul.f32 1.442695, %v3959_v2 }
0x171a   : > { %v5178_v60 = vpop.eup %5177 }
0x171b   : > { %v3631_v61 = vsel %vm519_vm2, %v5178_v60, 0.0 }
0x171c   : > { %3632 = vadd.xlane.f32.xlu1 %v3631_v61 }
0x171e   : > { %v5180_v62 = vpop.eup %5179 }
0x171f   : > { %v3797_v18 = vsel %vm519_vm2, %v5180_v62, 0.0 }
0x1720   : > { %3798 = vadd.xlane.f32.xlu0 %v3797_v18 }
0x172d   : > { %3802 = vrot.lane.b32.xlu1 %v6138_v44, %s5394_s7  ;;  %s5403_s7 = smov [#allocation10]  }
0x172e   : > { %s5307_s13 = sshll.u32 %s5403_s7, 4  ;;  %s5308_s13 = int_to_ptr.vmem [resolvable:$false] %s5307_s13 }
0x172f   : > { %s5309_s16 = scalar_lea.vmem %s5308_s13, 256  ;;  %p5310_p5 = scmp.lt.s32.totalorder %s4361_s20, %s5308_s13 }
0x1730   : > { %p5311_p1 = scmp.lt.s32.totalorder %s5309_s16, %s5303_s14 }
0x1732   : > { %v3471_v63 = vpop.xlane.xlu0 %3470  ;;  %p5312_p3 = por %p5311_p1, %p5310_p5 }
0x1733   : > { %5181 = vrcp.f32 %v3471_v63 }
0x1734   : > { %5183 = vpow2.f32 %v3960_v3  ;;  %p5313_p4 = pnand %p5312_p3, %p5306_p13 }
0x1736   : > { %3637 = vrot.lane.b32.xlu0 %v6138_v44, %s5389_s28  ;;  %s4347_s28 = scalar_lea.sflag [#allocation4], %s5614_s27 }
0x1740   : > { %v5182_v4 = vpop.eup %5181 }
0x1741   : > { %v3473_v6 = vmul.f32 %v5182_v4, %v5176_v50  ;;  %v5184_v8 = vpop.eup %5183  ;;  %v4527_v50 = vld [vmem:[%s6320_s4 + $0x30] sm:$0xff] }
0x1742   : > { %v3962_v9 = vsel %vm519_vm2, %v5184_v8, 0.0  ;;  %4991 = vmatpush3.msra.mxu0 %v4527_v50  ;;  %v4531_v4 = vld [vmem:[%s6321_s5 + $0x50] sm:$0xff] }
0x1743   : > { %4956 = vmatmul.mubr.msk.f32.vlgmr.msra.gmra.mxu1 %vm519_vm2, %v3473_v6  ;;  %4992 = vmatprep.subr.mxu0 %v5387_v0  ;;  %v4085_v6 = vrot.slane %v6106_v7, %v2167_v47 }
0x1744   : > { %4965 = vmatprep.mubr.msk.f32.mxu1 %vm5388_vm0, %v5387_v0 }
0x1751   : > { %3963 = vadd.xlane.f32.xlu1 %v3962_v9 }
0x1762   : > { %3967 = vrot.lane.b32.xlu1 %v6138_v44, %s5395_s17 }
0x17a5   : > { %v3633_v10 = vpop.xlane.xlu1 %3632 }
0x17a6   : > { %5185 = vrcp.f32 %v3633_v10 }
0x17a9   : > { %v3799_v11 = vpop.xlane.xlu0 %3798  ;;  %v3803_v43 = vpop.permute.xlu1 %3802 }
0x17aa   : > { %5187 = vrcp.f32 %v3799_v11 }
0x17ad   : > { %v3638_v14 = vpop.permute.xlu0 %3637 }
0x17ae   : > { %4964 = vmatpush3.msra.mxu1 %v3638_v14  ;;  %v4163_v14 = vrot.slane %v6106_v7, %v2245_v54  ;;  %v4262_v54 = vld [vmem:[#allocation8 + $0x8] sm:$0xff] }
0x17af   : > { %4973 = vmatprep.subr.mxu1 %v5387_v0 }
0x17b3   : > { %v5186_v15 = vpop.eup %5185 }
0x17b4   : > { %v3635_v17 = vmul.f32 %v5186_v15, %v5178_v60 }
0x17b6   : > { %4966 = vmatmul.mubr.msk.f32.vlgmr.msra.gmra.mxu1 %vm519_vm2, %v3635_v17 }
0x17b7   : > { %v5188_v19 = vpop.eup %5187  ;;  %4974 = vmatpush3.msra.mxu1 %v3803_v43  ;;  %4975 = vmatprep.mubr.msk.f32.mxu1 %vm5388_vm0, %v5387_v0 }
0x17b8   : > { %v3801_v45 = vmul.f32 %v5188_v19, %v5180_v62  ;;  %4983 = vmatprep.subr.mxu1 %v5387_v0  ;;  %v4075_v62 = vrot.slane %v6106_v7, %v2157_v32  ;;  %v4530_v32 = vld [vmem:[%s6321_s5 + $0x48] sm:$0xff] }
0x17ba   : > { %4976 = vmatmul.mubr.msk.f32.vlgmr.msra.gmra.mxu1 %vm519_vm2, %v3801_v45 }
0x17bb   : > { %4985 = vmatprep.mubr.msk.f32.mxu1 %vm5388_vm0, %v5387_v0 }
0x17da   : > { %v3964_v20 = vpop.xlane.xlu1 %3963 }
0x17db   : > { %5189 = vrcp.f32 %v3964_v20 }
0x17de   : > { %v3968_v23 = vpop.permute.xlu1 %3967 }
0x17df   : > { %4984 = vmatpush3.msra.mxu1 %v3968_v23 }
0x17e0   : > { %4999 = vmatprep.subr.mxu1 %v5387_v0 }
0x17e8   : > { %v5190_v56 = vpop.eup %5189 }
0x17e9   : > { %v3966_v44 = vmul.f32 %v5190_v56, %v5184_v8 }
0x17eb   : > { %4986 = vmatmul.mubr.msk.f32.vlgmr.msra.gmra.mxu1 %vm519_vm2, %v3966_v44 }
0x17ec   : > { %5015 = vmatprep.mubr.msk.f32.mxu1 %vm5388_vm0, %v5387_v0  ;;  %5000 = vmatpush3.msra.mxu1 %v4536_v53 }
0x17ed   : > { %5001 = vmatprep.subr.mxu1 %v5387_v0 }
0x17ee   : > { %5002 = vmatpush3.msra.mxu1 %v4535_v55 }
0x17ef   : > { %5003 = vmatprep.subr.mxu1 %v5387_v0 }
0x17f0   : > { %5004 = vmatpush3.msra.mxu1 %v4534_v21 }
0x17f1   : > { %5005 = vmatprep.subr.mxu1 %v5387_v0 }
0x17f2   : > { %5006 = vmatpush3.msra.mxu1 %v4533_v57 }
0x17f3   : > { %5007 = vmatprep.subr.mxu1 %v5387_v0 }
0x17f4   : > { %5008 = vmatpush3.msra.mxu1 %v4532_v58 }
0x17f5   : > { %5009 = vmatprep.subr.mxu1 %v5387_v0 }
0x17f6   : > { %5010 = vmatpush3.msra.mxu1 %v4531_v4 }
0x17f7   : > { %5011 = vmatprep.subr.mxu1 %v5387_v0 }
0x17f8   : > { %5012 = vmatpush3.msra.mxu1 %v4530_v32 }
0x17f9   : > { %5013 = vmatprep.subr.mxu1 %v5387_v0 }
0x17fa   : > { %5014 = vmatpush3.msra.mxu1 %v4529_v33 }
0x1803   : > { %v3543_v51 = vpop.f32.mrf.mxu1 }
0x1805   : > { %v4957_v24 = vpop.f32.mrf.mxu1 }
0x1806   : > { %v4263_v24 = vld [vmem:[#allocation8 + $0x10] sm:$0xff] }
0x1876   : > { %v3709_v22 = vpop.f32.mrf.mxu1 }
0x1877   : > { %4044 = vrot.lane.b32.xlu0 %v3709_v22, %s6369_s19  ;;  %v4261_v22 = vld [vmem:[#allocation8] sm:$0xff] }
0x1878   : > { %v4967_v25 = vpop.f32.mrf.mxu1 }
0x187a   : > { %v3874_v26 = vpop.f32.mrf.mxu1 }
0x187b   : > { %4048 = vrot.lane.b32.xlu1 %v3874_v26, %s6370_s23 }
0x187c   : > { %v4977_v27 = vpop.f32.mrf.mxu1 }
0x18ab   : > { %v4039_v28 = vpop.f32.mrf.mxu1 }
0x18ac   : > { %4052 = vrot.lane.b32.xlu0 %v4039_v28, %s6371_s26  ;;  %v4254_v28 = vrot.slane %v6106_v7, %v2337_v12 }
0x18ad   : > { %v4987_v29 = vpop.f32.mrf.mxu1 }
0x18e9   : > { %v4045_v30 = vpop.permute.xlu0 %4044 }
0x18ea   : > { %v4055_v31 = vsel %vm519_vm2, %v3543_v51, %v4045_v30  ;;  %v4264_v51 = vld [vmem:[#allocation8 + $0x18] sm:$0xff] }
0x18ed   : > { %v4049_v5 = vpop.permute.xlu1 %4048 }
0x18ee   : > { %v4056_v34 = vsel %vm1193_vm4, %v4055_v31, %v4049_v5  ;;  %v4259_v5 = vrot.slane %v6106_v7, %v2342_v13 }
0x191e   : > { %v4053_v35 = vpop.permute.xlu0 %4052 }
0x191f   : > { %v4057_v36 = vsel %vm1195_vm5, %v4056_v34, %v4053_v35 }
0x1920   : > { %v4058_v37 = vadd.f32 %v4057_v36, %v6114_v38  ;;  %v4526_v38 = vld [vmem:[%s6320_s4 + $0x28] sm:$0xff] }
0x1921   : > { %4993 = vmatpush3.msra.mxu0 %v4526_v38 }
0x1922   : > { %v4059_v39 = vsel %vm442_vm1, %v4058_v37, 0.0  ;;  %4994 = vmatprep.subr.mxu0 %v5387_v0 }
0x1923   : > { %4060 = vadd.xlane.f32.xlu1 %v4059_v39  ;;  %4995 = vmatpush3.msra.mxu0 %v4525_v52 }
0x1924   : > { %5018 = vmatprep.subr.mxu0 %v5387_v0 }
0x19ac   : > { %v4061_v40 = vpop.xlane.xlu1 %4060 }
0x19ad   : > { %v4062_v41 = vmul.f32 0.03125, %v4061_v40 }
0x19af   : > { %v4063_v42 = vsub.f32 %v4058_v37, %v4062_v41 }
0x19b1   : > { %v4064_v46 = vmul.f32 %v4063_v42, %v4063_v42 }
0x19b3   : > { %v4065_v48 = vsel %vm442_vm1, %v4064_v46, 0.0 }
0x19b4   : > { %4066 = vadd.xlane.f32.xlu0 %v4065_v48 }
0x1a3d   : > { %v4067_v59 = vpop.xlane.xlu0 %4066 }
0x1a3e   : > { %v4068_v60 = vmul.f32 0.03125, %v4067_v59 }
0x1a40   : > { %v4069_v61 = vadd.f32 1e-05, %v4068_v60 }
0x1a42   : > { %5191 = vrsqrt.f32 %v4069_v61 }
0x1a4f   : > { %v5192_v18 = vpop.eup %5191 }
0x1a50   : > { %v4071_v63 = vmul.f32 %v5192_v18, %v4063_v42 }
0x1a52   : > { %v4076_v2 = vmul.f32 %v4075_v62, %v4071_v63 }
0x1a54   : > { %v4081_v3 = vadd.f32 %v4080_v1, %v4076_v2 }
0x1a56   : > { %4997 = vmatmul.mubr.msk.f32.vlgmr.msra.gmra.mxu0 %vm442_vm1, %v4081_v3 }
0x1a57   : > { %5026 = vmatprep.mubr.msk.f32.mxu0 %vm5388_vm0, %v5387_v0  ;;  %5019 = vmatpush3.msra.mxu0 %v4264_v51 }
0x1a58   : > { %5020 = vmatprep.subr.mxu0 %v5387_v0 }
0x1a59   : > { %5021 = vmatpush3.msra.mxu0 %v4263_v24 }
0x1a5a   : > { %5022 = vmatprep.subr.mxu0 %v5387_v0 }
0x1a5b   : > { %5023 = vmatpush3.msra.mxu0 %v4262_v54 }
0x1a5c   : > { %5024 = vmatprep.subr.mxu0 %v5387_v0  ;;  %v4567_v0 = vld [vmem:[%s6324_s8] ss:$0 sm:$0xff] }
0x1a5d   : > { %5025 = vmatpush3.msra.mxu0 %v4261_v22 }
0x1b16   : > { %v4155_v8 = vpop.f32.mrf.mxu0 }
0x1b17   : > { %v4156_v9 = vadd.f32 %v4155_v8, %v4085_v6 }
0x1b18   : > { %v4998_v10 = vpop.f32.mrf.mxu0 }
0x1b19   : > { %v4159_v11 = vmax.f32 %v4156_v9, 0.0 }
0x1b1b   : > { %5016 = vmatmul.mubr.msk.f32.vlgmr.msra.gmra.mxu1 %vm2247_vm6, %v4159_v11 }
0x1bdb   : > { %v4233_v15 = vpop.f32.mrf.mxu1 }
0x1bdc   : > { %v4234_v17 = vadd.f32 %v4233_v15, %v4163_v14 }
0x1bdd   : > { %v5017_v43 = vpop.f32.mrf.mxu1 }
0x1bde   : > { %v4237_v19 = vadd.f32 %v4234_v17, %v4081_v3 }
0x1be0   : > { %v4238_v45 = vsel %vm442_vm1, %v4237_v19, 0.0 }
0x1be1   : > { %4239 = vadd.xlane.f32.xlu0 %v4238_v45 }
0x1c6a   : > { %v4240_v20 = vpop.xlane.xlu0 %4239 }
0x1c6b   : > { %v4241_v23 = vmul.f32 0.03125, %v4240_v20 }
0x1c6d   : > { %v4242_v47 = vsub.f32 %v4237_v19, %v4241_v23 }
0x1c6f   : > { %v4243_v56 = vmul.f32 %v4242_v47, %v4242_v47 }
0x1c71   : > { %v4244_v44 = vsel %vm442_vm1, %v4243_v56, 0.0 }
0x1c72   : > { %4245 = vadd.xlane.f32.xlu1 %v4244_v44 }
0x1cfb   : > { %v4246_v25 = vpop.xlane.xlu1 %4245 }
0x1cfc   : > { %v4247_v26 = vmul.f32 0.03125, %v4246_v25 }
0x1cfe   : > { %v4248_v27 = vadd.f32 1e-05, %v4247_v26 }
0x1d00   : > { %5193 = vrsqrt.f32 %v4248_v27 }
0x1d0d   : > { %v5194_v29 = vpop.eup %5193 }
0x1d0e   : > { %v4250_v30 = vmul.f32 %v5194_v29, %v4242_v47 }
0x1d10   : > { %v4255_v31 = vmul.f32 %v4254_v28, %v4250_v30 }
0x1d12   : > { %v4260_v34 = vadd.f32 %v4259_v5, %v4255_v31 }
0x1d14   : > { %5027 = vmatmul.mubr.msk.f32.vlgmr.msra.gmra.mxu0 %vm442_vm1, %v4260_v34 }
0x1dd4   : > { %v4341_v12 = vpop.f32.mrf.mxu0 }
0x1dd5   : > { %v4342_v35 = vadd.f32 %v4567_v0, %v4341_v12 }
0x1dd6   : > { %v5028_v16 = vpop.f32.mrf.mxu0 }
0x1dd7   : > { %4345 = vst [vmem:[%s413_s22] sm:$0xff] %v4342_v35 }
0x1dd8   : > { %5316 = shalt.err (!%p5313_p4)
}
0x1dd9   : > { %s5317_s17 = scalar_lea.hbm %s6279_s6, 128  ;;  %s5321_s19 = scalar_lea.hbm %s6325_s9, 256 }
0x1dda   : > { %p5318_p10 = scmp.ne.s32.totalorder %s6279_s6, %s5317_s17  ;;  %p5322_p11 = scmp.lt.s32.totalorder %s6279_s6, %s6325_s9 }
0x1ddb   : > { %p5323_p2 = scmp.lt.s32.totalorder %s5321_s19, %s5317_s17 }
0x1ddc   : > { %p5319_p0 = pnand %p5318_p10, %p6372_p7 }
0x1ddd   : > { %p5324_p6 = por %p5323_p2, %p5322_p11 }
0x1dde   : > { %p5320_p8 = pneg %p5319_p0 }
0x1de0   : > { %p5325_p12 = pnand %p5324_p6, %p5320_p8 }
0x1de2   : > { %5328 = shalt.err (!%p5325_p12)
}
0x1de3   : > { %5041 = dma.vmem_to_hbm [thread:$0]  (%p6372_p7), %s4361_s20, 128, %s6279_s6, %s4347_s28  }
0x1de4 PF: > { %s6373_s24 = sld [smem:[#allocation17_spill]]  ;;  %s4372_s15 = sand.u32 1, %s5367_s30  }
0x1de5   : > { %p6375_p13 = scmp.ge.s32.totalorder %s5379_s12, 2  ;;  %s4373_s11 = scalar_lea.sflag [#allocation4], %s4372_s15 }
0x1dea   : > { %p6374_p9 = scmp.ne.s32.totalorder %s6373_s24, 0 }
0x1dec   : > { %p5058_p5 = pnand %p6375_p13, %p6374_p9 }
0x1dee   : > { %p5059_p1 = pneg %p5058_p5 }
0x1df0   : > { %5362 = dma.done.wait (%p5059_p1), %s4373_s11, 128  }
0x1df1   : > { %5364 = vsyncadd (%p5059_p1), %s4373_s11, 4294967168  ;;  %s6376_s12 = sld [smem:[#allocation18_spill]]  ;;  %s6379_s30 = smov %s5371_s10 }
0x1df2   : > { %s6377_s22 = sld [smem:[#allocation16_spill]] }
0x1df3   : > { %s6378_s11 = sld [smem:[#allocation19_spill]] }
0x1df7   : > { %p26_p3 = scmp.ge.s32.totalorder %s6376_s12, 4  }
0x1df8   : > { %s6380_s10 = smov %s6377_s22 }
0x1df9   :  { %28 = sbr.rel (!%p26_p3) target bundleno = 11 (0xb), region = 127 }
0x1dfe   :  { %4378 = vsyncpa [#allocation3], 1 }
0x1dff   :  { %4380 = vsyncpa [#allocation3 + $0x1], 1 }
0x1e00   :  { %4381 = vsyncpa [#allocation6], 1 }
0x1e01   :  { %4383 = vsyncpa [#allocation6 + $0x1], 1 }
0x1e02   :  { %4384 = vsyncpa [#allocation9], 1 }
0x1e03   :  { %4385 = vsyncpa [#allocation4], 1 }
0x1e04   :  { %4387 = vsyncpa [#allocation4 + $0x1], 1 }

</bundles_post_ra>
